<compile_context>
chip_gen: v7x
topology: tpu7x:2x2x1
jax: 0.10.0
libtpu: 0.0.40
codegen_flags: <defaults>
</compile_context>

<pallas_src>
import functools

import numpy as np
import jax
import jax.numpy as jnp
from jax.experimental import pallas as pl
from jax.experimental.pallas import tpu as pltpu

EPS = 1e-5


# ---------------------------------------------------------------------------
# Host-side constants: DFT matrices (rfft2/irfft2 as matmuls) and conv masks.
# ---------------------------------------------------------------------------

def _dft_matrices(H, W):
    """Real matrices implementing rfft2 / irfft2 over one (H, W) image.

    Forward (flat index h*W+w -> flat index m*Wf+k):
        F[m, k] = sum_{h,w} x[h, w] * exp(-2i*pi*(m*h/H + k*w/W))
        Re(F) = x_flat @ A ,  Im(F) = x_flat @ B
    Inverse ("backward" norm; the imaginary parts of the k=0 and k=W/2 bins
    are discarded, which is what torch / pocketfft irfft does):
        x_flat = Re(F) @ P + Im(F) @ Q
    """
    Wf = W // 2 + 1
    h = np.arange(H).reshape(H, 1, 1, 1)
    w = np.arange(W).reshape(1, W, 1, 1)
    m = np.arange(H).reshape(1, 1, H, 1)
    k = np.arange(Wf).reshape(1, 1, 1, Wf)
    phase = 2.0 * np.pi * (m * h / H + k * w / W)            # (h, w, m, k)
    A = np.cos(phase).reshape(H * W, H * Wf)
    B = (-np.sin(phase)).reshape(H * W, H * Wf)

    c = np.full(Wf, 2.0 / W)
    c[0] = 1.0 / W
    d = np.full(Wf, 2.0 / W)
    d[0] = 0.0
    if W % 2 == 0:
        c[-1] = 1.0 / W
        d[-1] = 0.0
    mh = 2.0 * np.pi * np.outer(np.arange(H), np.arange(H)) / H      # (m, h)
    kw = 2.0 * np.pi * np.outer(np.arange(Wf), np.arange(W)) / W     # (k, w)
    cos_mh, sin_mh = np.cos(mh), np.sin(mh)
    ckw = c[:, None] * np.cos(kw)
    dkw = d[:, None] * np.sin(kw)
    P = (np.einsum('mh,kw->mkhw', cos_mh, ckw)
         - np.einsum('mh,kw->mkhw', sin_mh, dkw)) / H
    Q = -(np.einsum('mh,kw->mkhw', sin_mh, ckw)
          + np.einsum('mh,kw->mkhw', cos_mh, dkw)) / H
    return A, B, P.reshape(H * Wf, H * W), Q.reshape(H * Wf, H * W)


def build_spectral_constants(N, H, W):
    """DFT matrices (block-diag over batch) and the 9 conv boundary masks."""
    A, B, P, Q = _dft_matrices(H, W)
    eye = np.eye(N)
    R = N * H * W
    r = np.arange(R)
    hh = (r // W) % H
    ww = r % W
    masks = []
    for dy in (-1, 0, 1):
        for dx in (-1, 0, 1):
            masks.append(((hh + dy >= 0) & (hh + dy < H)
                          & (ww + dx >= 0) & (ww + dx < W)).astype(np.float32))
    return {
        "dft_re": jnp.asarray(np.kron(eye, A), jnp.float32),    # (R, Rf)
        "dft_im": jnp.asarray(np.kron(eye, B), jnp.float32),    # (R, Rf)
        "idft_re": jnp.asarray(np.kron(eye, P), jnp.float32),   # (Rf, R)
        "idft_im": jnp.asarray(np.kron(eye, Q), jnp.float32),   # (Rf, R)
        "mask9": jnp.asarray(np.stack(masks, axis=0), jnp.float32),  # (9, R)
    }


# ---------------------------------------------------------------------------
# Fused FastFC-layer Pallas kernel (one pallas_call per layer).
# ---------------------------------------------------------------------------

def _make_fastfc_kernel(half, N, H, W):
    R = N * H * W
    PAD = 128          # lane-aligned interior offset; covers max shift |dy*W+dx| <= W+1

    def kernel(xs_ref,
               w_ll_ref, b_ll_ref, w_lg_ref, b_lg_ref, w_gl_ref, b_gl_ref,
               w_fin_ref, b_fin_ref,
               sp_in_w_ref, sp_in_b_ref, sp_in_g_ref, sp_in_be_ref, sp_in_a_ref,
               sp_mid_w_ref, sp_mid_b_ref, sp_mid_g_ref, sp_mid_be_ref, sp_mid_a_ref,
               sp_out_w_ref, sp_out_b_ref,
               bn1_g_ref, bn1_b_ref, af1_a_ref,
               bn2_g_ref, bn2_b_ref, af2_a_ref,
               dft_re_ref, dft_im_ref, idft_re_ref, idft_im_ref, mask_ref,
               out_ref, out_loc_ref, out_glo_ref,
               padbuf_ref, patch_s_ref, patch_l_ref):
        f32 = jnp.float32

        def bn_prelu(y, g, b, a):
            # Training-mode BatchNorm2d: batch statistics over all columns
            # (= all (n, h, w) positions), biased variance, then per-channel
            # PReLU.  (C, cols) layout -> reduce over the lane axis.
            mean = jnp.mean(y, axis=1, keepdims=True)
            var = jnp.mean((y - mean) * (y - mean), axis=1, keepdims=True)
            yn = (y - mean) * jax.lax.rsqrt(var + EPS) * g + b
            return jnp.where(yn >= 0.0, yn, a * yn)

        def fill_patches(cin, patch_ref):
            # padbuf rows [0:cin] hold the conv input; the zero 'same' padding
            # is the zero border of padbuf plus the boundary masks.  Builds the
            # (9*cin, R) im2col patch matrix; row order = (tap, cin) with
            # tap = (dy+1)*3 + (dx+1), matching the weight flattening below.
            tap = 0
            for dy in (-1, 0, 1):
                for dx in (-1, 0, 1):
                    s = dy * W + dx
                    m = mask_ref[tap:tap + 1, :]
                    patch_ref[tap * cin:(tap + 1) * cin, :] = (
                        padbuf_ref[0:cin, PAD + s:PAD + s + R] * m)
                    tap += 1

        # Zero-fill the padded staging buffer once (its borders stay zero).
        padbuf_ref[...] = jnp.zeros((2 * half, R + 2 * PAD), f32)

        x_loc = xs_ref[0:half, :]                     # (half, R)
        x_glo = xs_ref[half:2 * half, :]              # (half, R)

        # ---- conv_ll / conv_lg: one shared im2col, two K=9*half matmuls ----
        padbuf_ref[0:half, PAD:PAD + R] = x_loc
        fill_patches(half, patch_s_ref)
        p_loc = patch_s_ref[...]                      # (9*half, R)
        x_ll = jnp.dot(w_ll_ref[...], p_loc,
                       preferred_element_type=f32) + b_ll_ref[...]
        x_lg = jnp.dot(w_lg_ref[...], p_loc,
                       preferred_element_type=f32) + b_lg_ref[...]

        # ---- conv_gl --------------------------------------------------------
        padbuf_ref[0:half, PAD:PAD + R] = x_glo
        fill_patches(half, patch_s_ref)
        x_gl = jnp.dot(w_gl_ref[...], patch_s_ref[...],
                       preferred_element_type=f32) + b_gl_ref[...]

        # ---- Spectra(x_glo), fully in VMEM ----------------------------------
        skip = bn_prelu(
            jnp.dot(sp_in_w_ref[...], x_glo, preferred_element_type=f32)
            + sp_in_b_ref[...],
            sp_in_g_ref[...], sp_in_be_ref[...], sp_in_a_ref[...])   # (inter, R)

        # rfft2 over (H, W) as two matmuls with block-diag DFT matrices.
        fr = jnp.dot(skip, dft_re_ref[...], preferred_element_type=f32)   # (inter, Rf)
        fi = jnp.dot(skip, dft_im_ref[...], preferred_element_type=f32)

        # midConv is a 1x1 conv: it acts identically on the real and imag
        # halves of torch.cat((real, imag), -1); the BatchNorm statistics are
        # the joint statistics of both (equal-sized) halves.
        yr = jnp.dot(sp_mid_w_ref[...], fr,
                     preferred_element_type=f32) + sp_mid_b_ref[...]
        yi = jnp.dot(sp_mid_w_ref[...], fi,
                     preferred_element_type=f32) + sp_mid_b_ref[...]
        mean = 0.5 * (jnp.mean(yr, axis=1, keepdims=True)
                      + jnp.mean(yi, axis=1, keepdims=True))
        msq = 0.5 * (jnp.mean(yr * yr, axis=1, keepdims=True)
                     + jnp.mean(yi * yi, axis=1, keepdims=True))
        inv = jax.lax.rsqrt(msq - mean * mean + EPS)
        g, be, a = sp_mid_g_ref[...], sp_mid_be_ref[...], sp_mid_a_ref[...]
        mr = (yr - mean) * inv * g + be
        mr = jnp.where(mr >= 0.0, mr, a * mr)
        mi = (yi - mean) * inv * g + be
        mi = jnp.where(mi >= 0.0, mi, a * mi)

        # irfft2 as two matmuls, then +skip and the 1x1 outConv.
        spect = (jnp.dot(mr, idft_re_ref[...], preferred_element_type=f32)
                 + jnp.dot(mi, idft_im_ref[...], preferred_element_type=f32))  # (inter, R)
        x_gg = (jnp.dot(sp_out_w_ref[...], spect + skip,
                        preferred_element_type=f32) + sp_out_b_ref[...])        # (half, R)

        # ---- BN + PReLU + residual (bnaf1 / bnaf2) ---------------------------
        out_loc = bn_prelu(x_ll + x_gl, bn1_g_ref[...], bn1_b_ref[...],
                           af1_a_ref[...]) + x_loc
        out_glo = bn_prelu(x_gg + x_lg, bn2_g_ref[...], bn2_b_ref[...],
                           af2_a_ref[...]) + x_glo
        out_loc_ref[...] = out_loc
        out_glo_ref[...] = out_glo

        # ---- conv_final on concat(out_loc, out_glo) along channels ----------
        padbuf_ref[0:half, PAD:PAD + R] = out_loc
        padbuf_ref[half:2 * half, PAD:PAD + R] = out_glo
        fill_patches(2 * half, patch_l_ref)
        out_ref[...] = (jnp.dot(w_fin_ref[...], patch_l_ref[...],
                                preferred_element_type=f32) + b_fin_ref[...])

    return kernel, PAD


# ---------------------------------------------------------------------------
# Wrappers
# ---------------------------------------------------------------------------

def _prep_conv3x3(w, b):
    # (3, 3, Cin, Cout) -> (Cout, 9*Cin), flat order (ky, kx, cin); bias (Cout, 1).
    cin, cout = w.shape[2], w.shape[3]
    return (jnp.transpose(w, (3, 0, 1, 2)).reshape(cout, 9 * cin),
            b.reshape(cout, 1))


def _col(v):
    return v.reshape(-1, 1)


def fastfc_fused_layer(xs, p, consts, half, out_depth, N, H, W):
    """One fused FastFC layer.  xs = concat(x_loc, x_glo): (2*half, N*H*W)."""
    R = N * H * W
    w_ll, b_ll = _prep_conv3x3(p["w_ll"], p["b_ll"])
    w_lg, b_lg = _prep_conv3x3(p["w_lg"], p["b_lg"])
    w_gl, b_gl = _prep_conv3x3(p["w_gl"], p["b_gl"])
    w_fin, b_fin = _prep_conv3x3(p["w_final"], p["b_final"])
    sp = p["spectra"]

    kernel, pad = _make_fastfc_kernel(half, N, H, W)
    out, out_loc, out_glo = pl.pallas_call(
        kernel,
        out_shape=(jax.ShapeDtypeStruct((out_depth, R), jnp.float32),
                   jax.ShapeDtypeStruct((half, R), jnp.float32),
                   jax.ShapeDtypeStruct((half, R), jnp.float32)),
        scratch_shapes=[
            pltpu.VMEM((2 * half, R + 2 * pad), jnp.float32),  # zero-padded staging
            pltpu.VMEM((9 * half, R), jnp.float32),            # im2col (half-wide convs)
            pltpu.VMEM((9 * 2 * half, R), jnp.float32),        # im2col (final conv)
        ],
    )(xs,
      w_ll, b_ll, w_lg, b_lg, w_gl, b_gl, w_fin, b_fin,
      sp["in_w"].T, _col(sp["in_b"]), _col(sp["in_gamma"]),
      _col(sp["in_beta"]), _col(sp["in_alpha"]),
      sp["mid_w"].T, _col(sp["mid_b"]), _col(sp["mid_gamma"]),
      _col(sp["mid_beta"]), _col(sp["mid_alpha"]),
      sp["out_w"].T, _col(sp["out_b"]),
      _col(p["bn1_gamma"]), _col(p["bn1_beta"]), _col(p["af1_alpha"]),
      _col(p["bn2_gamma"]), _col(p["bn2_beta"]), _col(p["af2_alpha"]),
      consts["dft_re"], consts["dft_im"], consts["idft_re"], consts["idft_im"],
      consts["mask9"])
    return out, out_loc, out_glo


def fastfc_forward(x_cr, p, consts, out_depth, N, H, W):
    c_in = x_cr.shape[0]
    mid = c_in // 2
    x_loc = x_cr[:mid]
    # Matches the PyTorch module: for odd channel counts the middle channel is
    # dropped (x[:, mid+1:]).
    x_glo = x_cr[mid + 1:] if c_in % 2 else x_cr[mid:]
    xs = jnp.concatenate([x_loc, x_glo], axis=0)
    return fastfc_fused_layer(xs, p, consts, mid, out_depth, N, H, W)


@functools.partial(jax.jit, static_argnames=("return_all",))
def fourier_block_forward(x_nchw, params, consts, return_all=False):
    N, C, H, W = x_nchw.shape
    R = N * H * W
    x = jnp.transpose(x_nchw, (1, 0, 2, 3)).reshape(C, R)   # NCHW -> (C, N*H*W)
    out_loc = out_glo = None
    for p in params:
        out_depth = p["w_final"].shape[-1]
        x, out_loc, out_glo = fastfc_forward(x, p, consts, out_depth, N, H, W)

    def to_nchw(t):
        return jnp.transpose(t.reshape(t.shape[0], N, H, W), (1, 0, 2, 3))

    if return_all:
        return to_nchw(x), to_nchw(out_loc), to_nchw(out_glo)
    return to_nchw(x)


# ---------------------------------------------------------------------------
# Pure-JAX reference (same semantics, plain XLA ops) for a correctness check.
# ---------------------------------------------------------------------------

def _bn_prelu_ref(y, gamma, beta, alpha):
    axes = (0,) + tuple(range(2, y.ndim))
    shape = (1, -1) + (1,) * (y.ndim - 2)
    mean = jnp.mean(y, axis=axes, keepdims=True)
    var = jnp.mean((y - mean) ** 2, axis=axes, keepdims=True)
    yn = ((y - mean) * jax.lax.rsqrt(var + EPS) * gamma.reshape(shape)
          + beta.reshape(shape))
    a = alpha.reshape(shape)
    return jnp.where(yn >= 0.0, yn, a * yn)


def _conv3x3_ref(x, w, b):
    wt = jnp.transpose(w, (3, 2, 0, 1))                     # OIHW
    y = jax.lax.conv_general_dilated(
        x, wt, (1, 1), 'SAME', dimension_numbers=('NCHW', 'OIHW', 'NCHW'))
    return y + b.reshape(1, -1, 1, 1)


def _conv1x1_ref(x, w, b):
    return jnp.einsum('nchw,cd->ndhw', x, w) + b.reshape(1, -1, 1, 1)


def _spectra_ref(x, p):
    x = _bn_prelu_ref(_conv1x1_ref(x, p["in_w"], p["in_b"]),
                      p["in_gamma"], p["in_beta"], p["in_alpha"])
    skip = x
    rfft = jnp.fft.rfft2(x)
    cat = jnp.concatenate([jnp.real(rfft), jnp.imag(rfft)], axis=-1)
    cat = _bn_prelu_ref(_conv1x1_ref(cat, p["mid_w"], p["mid_b"]),
                        p["mid_gamma"], p["mid_beta"], p["mid_alpha"])
    mid = cat.shape[-1] // 2
    spect = jnp.fft.irfft2(jax.lax.complex(cat[..., :mid], cat[..., mid:]))
    return _conv1x1_ref(spect + skip, p["out_w"], p["out_b"])


def _fastfc_ref(x, p):
    C = x.shape[1]
    mid = C // 2
    x_loc = x[:, :mid]
    x_glo = x[:, mid + 1:] if C % 2 else x[:, mid:]
    x_ll = _conv3x3_ref(x_loc, p["w_ll"], p["b_ll"])
    x_lg = _conv3x3_ref(x_loc, p["w_lg"], p["b_lg"])
    x_gl = _conv3x3_ref(x_glo, p["w_gl"], p["b_gl"])
    x_gg = _spectra_ref(x_glo, p["spectra"])
    out_loc = _bn_prelu_ref(x_ll + x_gl, p["bn1_gamma"], p["bn1_beta"],
                            p["af1_alpha"]) + x_loc
    out_glo = _bn_prelu_ref(x_gg + x_lg, p["bn2_gamma"], p["bn2_beta"],
                            p["af2_alpha"]) + x_glo
    out = _conv3x3_ref(jnp.concatenate([out_loc, out_glo], axis=1),
                       p["w_final"], p["b_final"])
    return out, out_loc, out_glo


def fourier_block_ref(x, params):
    for p in params:
        x, _, _ = _fastfc_ref(x, p)
    return x


# ---------------------------------------------------------------------------
# Parameter init (same conventions as the PyTorch module at construction).
# ---------------------------------------------------------------------------

def _normal(key, shape, scale=0.1):
    return scale * jax.random.normal(key, shape, jnp.float32)


def init_spectra_params(key, in_depth):
    inter = in_depth // 2 if in_depth >= 2 else in_depth
    ks = jax.random.split(key, 6)
    ones = jnp.ones((inter,), jnp.float32)
    zeros = jnp.zeros((inter,), jnp.float32)
    alpha = jnp.full((inter,), 0.25, jnp.float32)
    return {
        "in_w": _normal(ks[0], (in_depth, inter)), "in_b": _normal(ks[1], (inter,)),
        "in_gamma": ones, "in_beta": zeros, "in_alpha": alpha,
        "mid_w": _normal(ks[2], (inter, inter)), "mid_b": _normal(ks[3], (inter,)),
        "mid_gamma": ones, "mid_beta": zeros, "mid_alpha": alpha,
        "out_w": _normal(ks[4], (inter, in_depth)), "out_b": _normal(ks[5], (in_depth,)),
    }


def init_fastfc_params(key, in_depth, out_depth):
    half = in_depth // 2
    ks = jax.random.split(key, 9)
    ones = jnp.ones((half,), jnp.float32)
    zeros = jnp.zeros((half,), jnp.float32)
    alpha = jnp.full((half,), 0.25, jnp.float32)
    return {
        "w_ll": _normal(ks[0], (3, 3, half, half)), "b_ll": _normal(ks[1], (half,)),
        "w_lg": _normal(ks[2], (3, 3, half, half)), "b_lg": _normal(ks[3], (half,)),
        "w_gl": _normal(ks[4], (3, 3, half, half)), "b_gl": _normal(ks[5], (half,)),
        "spectra": init_spectra_params(ks[6], half),
        "bn1_gamma": ones, "bn1_beta": zeros, "af1_alpha": alpha,
        "bn2_gamma": ones, "bn2_beta": zeros, "af2_alpha": alpha,
        "w_final": _normal(ks[7], (3, 3, 2 * half, out_depth)),
        "b_final": _normal(ks[8], (out_depth,)),
    }


def init_fourier_block_params(key, num_layer, in_depth, out_depth):
    keys = jax.random.split(key, num_layer)
    return [init_fastfc_params(k, in_depth, out_depth) for k in keys]


# ---------------------------------------------------------------------------

if __name__ == "__main__":
    num_layer, in_depth, out_depth = 2, 8, 8   # out_depth == in_depth (stacked layers)
    N, H, W = 2, 16, 16

    key = jax.random.PRNGKey(0)
    kx, kp = jax.random.split(key)
    x_nchw = jax.random.normal(kx, (N, in_depth, H, W), jnp.float32)
    params = init_fourier_block_params(kp, num_layer, in_depth, out_depth)
    consts = build_spectral_constants(N, H, W)

    out = fourier_block_forward(x_nchw, params, consts, return_all=False)
    out = jax.block_until_ready(out)
    assert out.shape == (N, out_depth, H, W)
    assert bool(jnp.all(jnp.isfinite(out)))

    # Correctness check against a plain-JAX (XLA) reference of the same module.
    ref = fourier_block_ref(x_nchw, params)
    err = float(jnp.max(jnp.abs(out - ref)))
    scale = float(jnp.max(jnp.abs(ref)))
    assert err <= 5e-2 * (1.0 + scale), (
        f"Pallas/XLA mismatch: max|diff|={err:.4e}, max|ref|={scale:.4e}")

    print("KERNEL_OK")
</pallas_src>

<mosaic_0001>
module attributes {stable_mosaic.version = 11 : i64} {
  func.func @kernel(%arg0: memref<8x512xf32, #tpu.memory_space<vmem>>, %arg1: memref<4x36xf32, #tpu.memory_space<vmem>>, %arg2: memref<4x1xf32, #tpu.memory_space<vmem>>, %arg3: memref<4x36xf32, #tpu.memory_space<vmem>>, %arg4: memref<4x1xf32, #tpu.memory_space<vmem>>, %arg5: memref<4x36xf32, #tpu.memory_space<vmem>>, %arg6: memref<4x1xf32, #tpu.memory_space<vmem>>, %arg7: memref<8x72xf32, #tpu.memory_space<vmem>>, %arg8: memref<8x1xf32, #tpu.memory_space<vmem>>, %arg9: memref<2x4xf32, #tpu.memory_space<vmem>>, %arg10: memref<2x1xf32, #tpu.memory_space<vmem>>, %arg11: memref<2x1xf32, #tpu.memory_space<vmem>>, %arg12: memref<2x1xf32, #tpu.memory_space<vmem>>, %arg13: memref<2x1xf32, #tpu.memory_space<vmem>>, %arg14: memref<2x2xf32, #tpu.memory_space<vmem>>, %arg15: memref<2x1xf32, #tpu.memory_space<vmem>>, %arg16: memref<2x1xf32, #tpu.memory_space<vmem>>, %arg17: memref<2x1xf32, #tpu.memory_space<vmem>>, %arg18: memref<2x1xf32, #tpu.memory_space<vmem>>, %arg19: memref<4x2xf32, #tpu.memory_space<vmem>>, %arg20: memref<4x1xf32, #tpu.memory_space<vmem>>, %arg21: memref<4x1xf32, #tpu.memory_space<vmem>>, %arg22: memref<4x1xf32, #tpu.memory_space<vmem>>, %arg23: memref<4x1xf32, #tpu.memory_space<vmem>>, %arg24: memref<4x1xf32, #tpu.memory_space<vmem>>, %arg25: memref<4x1xf32, #tpu.memory_space<vmem>>, %arg26: memref<4x1xf32, #tpu.memory_space<vmem>>, %arg27: memref<512x288xf32, #tpu.memory_space<vmem>>, %arg28: memref<512x288xf32, #tpu.memory_space<vmem>>, %arg29: memref<288x512xf32, #tpu.memory_space<vmem>>, %arg30: memref<288x512xf32, #tpu.memory_space<vmem>>, %arg31: memref<9x512xf32, #tpu.memory_space<vmem>>, %arg32: memref<8x512xf32, #tpu.memory_space<vmem>>, %arg33: memref<4x512xf32, #tpu.memory_space<vmem>>, %arg34: memref<4x512xf32, #tpu.memory_space<vmem>>, %arg35: memref<8x768xf32, #tpu.memory_space<vmem>>, %arg36: memref<36x512xf32, #tpu.memory_space<vmem>>, %arg37: memref<72x512xf32, #tpu.memory_space<vmem>>) attributes {dimension_semantics = [], scalar_prefetch = 0 : i64, scratch_operands = 3 : i64, tpu.core_type = #tpu.core_type<tc>} {
    %cst = arith.constant 0.000000e+00 : f32
    %0 = vector.broadcast %cst : f32 to vector<8x768xf32>
    %c0 = arith.constant 0 : index
    %c0_0 = arith.constant 0 : index
    %1 = vector.load %arg35[%c0, %c0_0] : memref<8x768xf32, #tpu.memory_space<vmem>>, vector<8x768xf32>
    tpu.vector_store %arg35[%c0, %c0_0], %0 {strides = array<i32>} : memref<8x768xf32, #tpu.memory_space<vmem>>, vector<8x768xf32>,
    %c0_1 = arith.constant 0 : index
    %c0_2 = arith.constant 0 : index
    %2 = vector.load %arg0[%c0_1, %c0_2] : memref<8x512xf32, #tpu.memory_space<vmem>>, vector<4x512xf32>
    %c4 = arith.constant 4 : index
    %c0_3 = arith.constant 0 : index
    %3 = vector.load %arg0[%c4, %c0_3] : memref<8x512xf32, #tpu.memory_space<vmem>>, vector<4x512xf32>
    %c0_4 = arith.constant 0 : index
    %c128 = arith.constant 128 : index
    %4 = vector.load %arg35[%c0_4, %c128] : memref<8x768xf32, #tpu.memory_space<vmem>>, vector<4x512xf32>
    tpu.vector_store %arg35[%c0_4, %c128], %2 {strides = array<i32>} : memref<8x768xf32, #tpu.memory_space<vmem>>, vector<4x512xf32>,
    %c0_5 = arith.constant 0 : index
    %c0_6 = arith.constant 0 : index
    %5 = vector.load %arg31[%c0_5, %c0_6] : memref<9x512xf32, #tpu.memory_space<vmem>>, vector<1x512xf32>
    %c0_7 = arith.constant 0 : index
    %c111 = arith.constant 111 : index
    %6 = vector.load %arg35[%c0_7, %c111] : memref<8x768xf32, #tpu.memory_space<vmem>>, vector<4x512xf32>
    %7 = vector.broadcast %5 : vector<1x512xf32> to vector<4x512xf32>
    %8 = arith.mulf %6, %7 : vector<4x512xf32>
    %c0_8 = arith.constant 0 : index
    %c0_9 = arith.constant 0 : index
    %9 = vector.load %arg36[%c0_8, %c0_9] : memref<36x512xf32, #tpu.memory_space<vmem>>, vector<4x512xf32>
    tpu.vector_store %arg36[%c0_8, %c0_9], %8 {strides = array<i32>} : memref<36x512xf32, #tpu.memory_space<vmem>>, vector<4x512xf32>,
    %c1 = arith.constant 1 : index
    %c0_10 = arith.constant 0 : index
    %10 = vector.load %arg31[%c1, %c0_10] : memref<9x512xf32, #tpu.memory_space<vmem>>, vector<1x512xf32>
    %c0_11 = arith.constant 0 : index
    %c112 = arith.constant 112 : index
    %11 = vector.load %arg35[%c0_11, %c112] : memref<8x768xf32, #tpu.memory_space<vmem>>, vector<4x512xf32>
    %12 = vector.broadcast %10 : vector<1x512xf32> to vector<4x512xf32>
    %13 = arith.mulf %11, %12 : vector<4x512xf32>
    %c4_12 = arith.constant 4 : index
    %c0_13 = arith.constant 0 : index
    %14 = vector.load %arg36[%c4_12, %c0_13] : memref<36x512xf32, #tpu.memory_space<vmem>>, vector<4x512xf32>
    tpu.vector_store %arg36[%c4_12, %c0_13], %13 {strides = array<i32>} : memref<36x512xf32, #tpu.memory_space<vmem>>, vector<4x512xf32>,
    %c2 = arith.constant 2 : index
    %c0_14 = arith.constant 0 : index
    %15 = vector.load %arg31[%c2, %c0_14] : memref<9x512xf32, #tpu.memory_space<vmem>>, vector<1x512xf32>
    %c0_15 = arith.constant 0 : index
    %c113 = arith.constant 113 : index
    %16 = vector.load %arg35[%c0_15, %c113] : memref<8x768xf32, #tpu.memory_space<vmem>>, vector<4x512xf32>
    %17 = vector.broadcast %15 : vector<1x512xf32> to vector<4x512xf32>
    %18 = arith.mulf %16, %17 : vector<4x512xf32>
    %c8 = arith.constant 8 : index
    %c0_16 = arith.constant 0 : index
    %19 = vector.load %arg36[%c8, %c0_16] : memref<36x512xf32, #tpu.memory_space<vmem>>, vector<4x512xf32>
    tpu.vector_store %arg36[%c8, %c0_16], %18 {strides = array<i32>} : memref<36x512xf32, #tpu.memory_space<vmem>>, vector<4x512xf32>,
    %c3 = arith.constant 3 : index
    %c0_17 = arith.constant 0 : index
    %20 = vector.load %arg31[%c3, %c0_17] : memref<9x512xf32, #tpu.memory_space<vmem>>, vector<1x512xf32>
    %c0_18 = arith.constant 0 : index
    %c127 = arith.constant 127 : index
    %21 = vector.load %arg35[%c0_18, %c127] : memref<8x768xf32, #tpu.memory_space<vmem>>, vector<4x512xf32>
    %22 = vector.broadcast %20 : vector<1x512xf32> to vector<4x512xf32>
    %23 = arith.mulf %21, %22 : vector<4x512xf32>
    %c12 = arith.constant 12 : index
    %c0_19 = arith.constant 0 : index
    %24 = vector.load %arg36[%c12, %c0_19] : memref<36x512xf32, #tpu.memory_space<vmem>>, vector<4x512xf32>
    tpu.vector_store %arg36[%c12, %c0_19], %23 {strides = array<i32>} : memref<36x512xf32, #tpu.memory_space<vmem>>, vector<4x512xf32>,
    %c4_20 = arith.constant 4 : index
    %c0_21 = arith.constant 0 : index
    %25 = vector.load %arg31[%c4_20, %c0_21] : memref<9x512xf32, #tpu.memory_space<vmem>>, vector<1x512xf32>
    %c0_22 = arith.constant 0 : index
    %c128_23 = arith.constant 128 : index
    %26 = vector.load %arg35[%c0_22, %c128_23] : memref<8x768xf32, #tpu.memory_space<vmem>>, vector<4x512xf32>
    %27 = vector.broadcast %25 : vector<1x512xf32> to vector<4x512xf32>
    %28 = arith.mulf %26, %27 : vector<4x512xf32>
    %c16 = arith.constant 16 : index
    %c0_24 = arith.constant 0 : index
    %29 = vector.load %arg36[%c16, %c0_24] : memref<36x512xf32, #tpu.memory_space<vmem>>, vector<4x512xf32>
    tpu.vector_store %arg36[%c16, %c0_24], %28 {strides = array<i32>} : memref<36x512xf32, #tpu.memory_space<vmem>>, vector<4x512xf32>,
    %c5 = arith.constant 5 : index
    %c0_25 = arith.constant 0 : index
    %30 = vector.load %arg31[%c5, %c0_25] : memref<9x512xf32, #tpu.memory_space<vmem>>, vector<1x512xf32>
    %c0_26 = arith.constant 0 : index
    %c129 = arith.constant 129 : index
    %31 = vector.load %arg35[%c0_26, %c129] : memref<8x768xf32, #tpu.memory_space<vmem>>, vector<4x512xf32>
    %32 = vector.broadcast %30 : vector<1x512xf32> to vector<4x512xf32>
    %33 = arith.mulf %31, %32 : vector<4x512xf32>
    %c20 = arith.constant 20 : index
    %c0_27 = arith.constant 0 : index
    %34 = vector.load %arg36[%c20, %c0_27] : memref<36x512xf32, #tpu.memory_space<vmem>>, vector<4x512xf32>
    tpu.vector_store %arg36[%c20, %c0_27], %33 {strides = array<i32>} : memref<36x512xf32, #tpu.memory_space<vmem>>, vector<4x512xf32>,
    %c6 = arith.constant 6 : index
    %c0_28 = arith.constant 0 : index
    %35 = vector.load %arg31[%c6, %c0_28] : memref<9x512xf32, #tpu.memory_space<vmem>>, vector<1x512xf32>
    %c0_29 = arith.constant 0 : index
    %c143 = arith.constant 143 : index
    %36 = vector.load %arg35[%c0_29, %c143] : memref<8x768xf32, #tpu.memory_space<vmem>>, vector<4x512xf32>
    %37 = vector.broadcast %35 : vector<1x512xf32> to vector<4x512xf32>
    %38 = arith.mulf %36, %37 : vector<4x512xf32>
    %c24 = arith.constant 24 : index
    %c0_30 = arith.constant 0 : index
    %39 = vector.load %arg36[%c24, %c0_30] : memref<36x512xf32, #tpu.memory_space<vmem>>, vector<4x512xf32>
    tpu.vector_store %arg36[%c24, %c0_30], %38 {strides = array<i32>} : memref<36x512xf32, #tpu.memory_space<vmem>>, vector<4x512xf32>,
    %c7 = arith.constant 7 : index
    %c0_31 = arith.constant 0 : index
    %40 = vector.load %arg31[%c7, %c0_31] : memref<9x512xf32, #tpu.memory_space<vmem>>, vector<1x512xf32>
    %c0_32 = arith.constant 0 : index
    %c144 = arith.constant 144 : index
    %41 = vector.load %arg35[%c0_32, %c144] : memref<8x768xf32, #tpu.memory_space<vmem>>, vector<4x512xf32>
    %42 = vector.broadcast %40 : vector<1x512xf32> to vector<4x512xf32>
    %43 = arith.mulf %41, %42 : vector<4x512xf32>
    %c28 = arith.constant 28 : index
    %c0_33 = arith.constant 0 : index
    %44 = vector.load %arg36[%c28, %c0_33] : memref<36x512xf32, #tpu.memory_space<vmem>>, vector<4x512xf32>
    tpu.vector_store %arg36[%c28, %c0_33], %43 {strides = array<i32>} : memref<36x512xf32, #tpu.memory_space<vmem>>, vector<4x512xf32>,
    %c8_34 = arith.constant 8 : index
    %c0_35 = arith.constant 0 : index
    %45 = vector.load %arg31[%c8_34, %c0_35] : memref<9x512xf32, #tpu.memory_space<vmem>>, vector<1x512xf32>
    %c0_36 = arith.constant 0 : index
    %c145 = arith.constant 145 : index
    %46 = vector.load %arg35[%c0_36, %c145] : memref<8x768xf32, #tpu.memory_space<vmem>>, vector<4x512xf32>
    %47 = vector.broadcast %45 : vector<1x512xf32> to vector<4x512xf32>
    %48 = arith.mulf %46, %47 : vector<4x512xf32>
    %c32 = arith.constant 32 : index
    %c0_37 = arith.constant 0 : index
    %49 = vector.load %arg36[%c32, %c0_37] : memref<36x512xf32, #tpu.memory_space<vmem>>, vector<4x512xf32>
    tpu.vector_store %arg36[%c32, %c0_37], %48 {strides = array<i32>} : memref<36x512xf32, #tpu.memory_space<vmem>>, vector<4x512xf32>,
    %c0_38 = arith.constant 0 : index
    %c0_39 = arith.constant 0 : index
    %50 = vector.load %arg36[%c0_38, %c0_39] : memref<36x512xf32, #tpu.memory_space<vmem>>, vector<36x512xf32>
    %c0_40 = arith.constant 0 : index
    %c0_41 = arith.constant 0 : index
    %51 = vector.load %arg1[%c0_40, %c0_41] : memref<4x36xf32, #tpu.memory_space<vmem>>, vector<4x36xf32>
    %cst_42 = arith.constant dense<0.000000e+00> : vector<4x512xf32>
    %52 = tpu.matmul %51, %50, %cst_42 {dimension_numbers = #tpu.dot_dimension_numbers<[1], [0], [0], [1], [0, 0, 1, 1], [], []>} : vector<4x36xf32>, vector<36x512xf32>, vector<4x512xf32> -> vector<4x512xf32>
    %c0_43 = arith.constant 0 : index
    %c0_44 = arith.constant 0 : index
    %53 = vector.load %arg2[%c0_43, %c0_44] : memref<4x1xf32, #tpu.memory_space<vmem>>, vector<4x1xf32>
    %54 = vector.broadcast %53 : vector<4x1xf32> to vector<4x512xf32>
    %55 = arith.addf %52, %54 : vector<4x512xf32>
    %c0_45 = arith.constant 0 : index
    %c0_46 = arith.constant 0 : index
    %56 = vector.load %arg3[%c0_45, %c0_46] : memref<4x36xf32, #tpu.memory_space<vmem>>, vector<4x36xf32>
    %cst_47 = arith.constant dense<0.000000e+00> : vector<4x512xf32>
    %57 = tpu.matmul %56, %50, %cst_47 {dimension_numbers = #tpu.dot_dimension_numbers<[1], [0], [0], [1], [0, 0, 1, 1], [], []>} : vector<4x36xf32>, vector<36x512xf32>, vector<4x512xf32> -> vector<4x512xf32>
    %c0_48 = arith.constant 0 : index
    %c0_49 = arith.constant 0 : index
    %58 = vector.load %arg4[%c0_48, %c0_49] : memref<4x1xf32, #tpu.memory_space<vmem>>, vector<4x1xf32>
    %59 = vector.broadcast %58 : vector<4x1xf32> to vector<4x512xf32>
    %60 = arith.addf %57, %59 : vector<4x512xf32>
    %c0_50 = arith.constant 0 : index
    %c128_51 = arith.constant 128 : index
    %61 = vector.load %arg35[%c0_50, %c128_51] : memref<8x768xf32, #tpu.memory_space<vmem>>, vector<4x512xf32>
    tpu.vector_store %arg35[%c0_50, %c128_51], %3 {strides = array<i32>} : memref<8x768xf32, #tpu.memory_space<vmem>>, vector<4x512xf32>,
    %c0_52 = arith.constant 0 : index
    %c0_53 = arith.constant 0 : index
    %62 = vector.load %arg31[%c0_52, %c0_53] : memref<9x512xf32, #tpu.memory_space<vmem>>, vector<1x512xf32>
    %c0_54 = arith.constant 0 : index
    %c111_55 = arith.constant 111 : index
    %63 = vector.load %arg35[%c0_54, %c111_55] : memref<8x768xf32, #tpu.memory_space<vmem>>, vector<4x512xf32>
    %64 = vector.broadcast %62 : vector<1x512xf32> to vector<4x512xf32>
    %65 = arith.mulf %63, %64 : vector<4x512xf32>
    %c0_56 = arith.constant 0 : index
    %c0_57 = arith.constant 0 : index
    %66 = vector.load %arg36[%c0_56, %c0_57] : memref<36x512xf32, #tpu.memory_space<vmem>>, vector<4x512xf32>
    tpu.vector_store %arg36[%c0_56, %c0_57], %65 {strides = array<i32>} : memref<36x512xf32, #tpu.memory_space<vmem>>, vector<4x512xf32>,
    %c1_58 = arith.constant 1 : index
    %c0_59 = arith.constant 0 : index
    %67 = vector.load %arg31[%c1_58, %c0_59] : memref<9x512xf32, #tpu.memory_space<vmem>>, vector<1x512xf32>
    %c0_60 = arith.constant 0 : index
    %c112_61 = arith.constant 112 : index
    %68 = vector.load %arg35[%c0_60, %c112_61] : memref<8x768xf32, #tpu.memory_space<vmem>>, vector<4x512xf32>
    %69 = vector.broadcast %67 : vector<1x512xf32> to vector<4x512xf32>
    %70 = arith.mulf %68, %69 : vector<4x512xf32>
    %c4_62 = arith.constant 4 : index
    %c0_63 = arith.constant 0 : index
    %71 = vector.load %arg36[%c4_62, %c0_63] : memref<36x512xf32, #tpu.memory_space<vmem>>, vector<4x512xf32>
    tpu.vector_store %arg36[%c4_62, %c0_63], %70 {strides = array<i32>} : memref<36x512xf32, #tpu.memory_space<vmem>>, vector<4x512xf32>,
    %c2_64 = arith.constant 2 : index
    %c0_65 = arith.constant 0 : index
    %72 = vector.load %arg31[%c2_64, %c0_65] : memref<9x512xf32, #tpu.memory_space<vmem>>, vector<1x512xf32>
    %c0_66 = arith.constant 0 : index
    %c113_67 = arith.constant 113 : index
    %73 = vector.load %arg35[%c0_66, %c113_67] : memref<8x768xf32, #tpu.memory_space<vmem>>, vector<4x512xf32>
    %74 = vector.broadcast %72 : vector<1x512xf32> to vector<4x512xf32>
    %75 = arith.mulf %73, %74 : vector<4x512xf32>
    %c8_68 = arith.constant 8 : index
    %c0_69 = arith.constant 0 : index
    %76 = vector.load %arg36[%c8_68, %c0_69] : memref<36x512xf32, #tpu.memory_space<vmem>>, vector<4x512xf32>
    tpu.vector_store %arg36[%c8_68, %c0_69], %75 {strides = array<i32>} : memref<36x512xf32, #tpu.memory_space<vmem>>, vector<4x512xf32>,
    %c3_70 = arith.constant 3 : index
    %c0_71 = arith.constant 0 : index
    %77 = vector.load %arg31[%c3_70, %c0_71] : memref<9x512xf32, #tpu.memory_space<vmem>>, vector<1x512xf32>
    %c0_72 = arith.constant 0 : index
    %c127_73 = arith.constant 127 : index
    %78 = vector.load %arg35[%c0_72, %c127_73] : memref<8x768xf32, #tpu.memory_space<vmem>>, vector<4x512xf32>
    %79 = vector.broadcast %77 : vector<1x512xf32> to vector<4x512xf32>
    %80 = arith.mulf %78, %79 : vector<4x512xf32>
    %c12_74 = arith.constant 12 : index
    %c0_75 = arith.constant 0 : index
    %81 = vector.load %arg36[%c12_74, %c0_75] : memref<36x512xf32, #tpu.memory_space<vmem>>, vector<4x512xf32>
    tpu.vector_store %arg36[%c12_74, %c0_75], %80 {strides = array<i32>} : memref<36x512xf32, #tpu.memory_space<vmem>>, vector<4x512xf32>,
    %c4_76 = arith.constant 4 : index
    %c0_77 = arith.constant 0 : index
    %82 = vector.load %arg31[%c4_76, %c0_77] : memref<9x512xf32, #tpu.memory_space<vmem>>, vector<1x512xf32>
    %c0_78 = arith.constant 0 : index
    %c128_79 = arith.constant 128 : index
    %83 = vector.load %arg35[%c0_78, %c128_79] : memref<8x768xf32, #tpu.memory_space<vmem>>, vector<4x512xf32>
    %84 = vector.broadcast %82 : vector<1x512xf32> to vector<4x512xf32>
    %85 = arith.mulf %83, %84 : vector<4x512xf32>
    %c16_80 = arith.constant 16 : index
    %c0_81 = arith.constant 0 : index
    %86 = vector.load %arg36[%c16_80, %c0_81] : memref<36x512xf32, #tpu.memory_space<vmem>>, vector<4x512xf32>
    tpu.vector_store %arg36[%c16_80, %c0_81], %85 {strides = array<i32>} : memref<36x512xf32, #tpu.memory_space<vmem>>, vector<4x512xf32>,
    %c5_82 = arith.constant 5 : index
    %c0_83 = arith.constant 0 : index
    %87 = vector.load %arg31[%c5_82, %c0_83] : memref<9x512xf32, #tpu.memory_space<vmem>>, vector<1x512xf32>
    %c0_84 = arith.constant 0 : index
    %c129_85 = arith.constant 129 : index
    %88 = vector.load %arg35[%c0_84, %c129_85] : memref<8x768xf32, #tpu.memory_space<vmem>>, vector<4x512xf32>
    %89 = vector.broadcast %87 : vector<1x512xf32> to vector<4x512xf32>
    %90 = arith.mulf %88, %89 : vector<4x512xf32>
    %c20_86 = arith.constant 20 : index
    %c0_87 = arith.constant 0 : index
    %91 = vector.load %arg36[%c20_86, %c0_87] : memref<36x512xf32, #tpu.memory_space<vmem>>, vector<4x512xf32>
    tpu.vector_store %arg36[%c20_86, %c0_87], %90 {strides = array<i32>} : memref<36x512xf32, #tpu.memory_space<vmem>>, vector<4x512xf32>,
    %c6_88 = arith.constant 6 : index
    %c0_89 = arith.constant 0 : index
    %92 = vector.load %arg31[%c6_88, %c0_89] : memref<9x512xf32, #tpu.memory_space<vmem>>, vector<1x512xf32>
    %c0_90 = arith.constant 0 : index
    %c143_91 = arith.constant 143 : index
    %93 = vector.load %arg35[%c0_90, %c143_91] : memref<8x768xf32, #tpu.memory_space<vmem>>, vector<4x512xf32>
    %94 = vector.broadcast %92 : vector<1x512xf32> to vector<4x512xf32>
    %95 = arith.mulf %93, %94 : vector<4x512xf32>
    %c24_92 = arith.constant 24 : index
    %c0_93 = arith.constant 0 : index
    %96 = vector.load %arg36[%c24_92, %c0_93] : memref<36x512xf32, #tpu.memory_space<vmem>>, vector<4x512xf32>
    tpu.vector_store %arg36[%c24_92, %c0_93], %95 {strides = array<i32>} : memref<36x512xf32, #tpu.memory_space<vmem>>, vector<4x512xf32>,
    %c7_94 = arith.constant 7 : index
    %c0_95 = arith.constant 0 : index
    %97 = vector.load %arg31[%c7_94, %c0_95] : memref<9x512xf32, #tpu.memory_space<vmem>>, vector<1x512xf32>
    %c0_96 = arith.constant 0 : index
    %c144_97 = arith.constant 144 : index
    %98 = vector.load %arg35[%c0_96, %c144_97] : memref<8x768xf32, #tpu.memory_space<vmem>>, vector<4x512xf32>
    %99 = vector.broadcast %97 : vector<1x512xf32> to vector<4x512xf32>
    %100 = arith.mulf %98, %99 : vector<4x512xf32>
    %c28_98 = arith.constant 28 : index
    %c0_99 = arith.constant 0 : index
    %101 = vector.load %arg36[%c28_98, %c0_99] : memref<36x512xf32, #tpu.memory_space<vmem>>, vector<4x512xf32>
    tpu.vector_store %arg36[%c28_98, %c0_99], %100 {strides = array<i32>} : memref<36x512xf32, #tpu.memory_space<vmem>>, vector<4x512xf32>,
    %c8_100 = arith.constant 8 : index
    %c0_101 = arith.constant 0 : index
    %102 = vector.load %arg31[%c8_100, %c0_101] : memref<9x512xf32, #tpu.memory_space<vmem>>, vector<1x512xf32>
    %c0_102 = arith.constant 0 : index
    %c145_103 = arith.constant 145 : index
    %103 = vector.load %arg35[%c0_102, %c145_103] : memref<8x768xf32, #tpu.memory_space<vmem>>, vector<4x512xf32>
    %104 = vector.broadcast %102 : vector<1x512xf32> to vector<4x512xf32>
    %105 = arith.mulf %103, %104 : vector<4x512xf32>
    %c32_104 = arith.constant 32 : index
    %c0_105 = arith.constant 0 : index
    %106 = vector.load %arg36[%c32_104, %c0_105] : memref<36x512xf32, #tpu.memory_space<vmem>>, vector<4x512xf32>
    tpu.vector_store %arg36[%c32_104, %c0_105], %105 {strides = array<i32>} : memref<36x512xf32, #tpu.memory_space<vmem>>, vector<4x512xf32>,
    %c0_106 = arith.constant 0 : index
    %c0_107 = arith.constant 0 : index
    %107 = vector.load %arg5[%c0_106, %c0_107] : memref<4x36xf32, #tpu.memory_space<vmem>>, vector<4x36xf32>
    %c0_108 = arith.constant 0 : index
    %c0_109 = arith.constant 0 : index
    %108 = vector.load %arg36[%c0_108, %c0_109] : memref<36x512xf32, #tpu.memory_space<vmem>>, vector<36x512xf32>
    %cst_110 = arith.constant dense<0.000000e+00> : vector<4x512xf32>
    %109 = tpu.matmul %107, %108, %cst_110 {dimension_numbers = #tpu.dot_dimension_numbers<[1], [0], [0], [1], [0, 0, 1, 1], [], []>} : vector<4x36xf32>, vector<36x512xf32>, vector<4x512xf32> -> vector<4x512xf32>
    %c0_111 = arith.constant 0 : index
    %c0_112 = arith.constant 0 : index
    %110 = vector.load %arg6[%c0_111, %c0_112] : memref<4x1xf32, #tpu.memory_space<vmem>>, vector<4x1xf32>
    %111 = vector.broadcast %110 : vector<4x1xf32> to vector<4x512xf32>
    %112 = arith.addf %109, %111 : vector<4x512xf32>
    %c0_113 = arith.constant 0 : index
    %c0_114 = arith.constant 0 : index
    %113 = vector.load %arg9[%c0_113, %c0_114] : memref<2x4xf32, #tpu.memory_space<vmem>>, vector<2x4xf32>
    %cst_115 = arith.constant dense<0.000000e+00> : vector<2x512xf32>
    %114 = tpu.matmul %113, %3, %cst_115 {dimension_numbers = #tpu.dot_dimension_numbers<[1], [0], [0], [1], [0, 0, 1, 1], [], []>} : vector<2x4xf32>, vector<4x512xf32>, vector<2x512xf32> -> vector<2x512xf32>
    %c0_116 = arith.constant 0 : index
    %c0_117 = arith.constant 0 : index
    %115 = vector.load %arg10[%c0_116, %c0_117] : memref<2x1xf32, #tpu.memory_space<vmem>>, vector<2x1xf32>
    %116 = vector.broadcast %115 : vector<2x1xf32> to vector<2x512xf32>
    %117 = arith.addf %114, %116 : vector<2x512xf32>
    %c0_118 = arith.constant 0 : index
    %c0_119 = arith.constant 0 : index
    %118 = vector.load %arg11[%c0_118, %c0_119] : memref<2x1xf32, #tpu.memory_space<vmem>>, vector<2x1xf32>
    %c0_120 = arith.constant 0 : index
    %c0_121 = arith.constant 0 : index
    %119 = vector.load %arg12[%c0_120, %c0_121] : memref<2x1xf32, #tpu.memory_space<vmem>>, vector<2x1xf32>
    %c0_122 = arith.constant 0 : index
    %c0_123 = arith.constant 0 : index
    %120 = vector.load %arg13[%c0_122, %c0_123] : memref<2x1xf32, #tpu.memory_space<vmem>>, vector<2x1xf32>
    %cst_124 = arith.constant dense<0.000000e+00> : vector<2xf32>
    %121 = vector.multi_reduction <add>, %117, %cst_124 [1] : vector<2x512xf32> to vector<2xf32>
    %122 = vector.shape_cast %121 : vector<2xf32> to vector<2x1xf32>
    %cst_125 = arith.constant 5.120000e+02 : f32
    %123 = vector.broadcast %cst_125 : f32 to vector<2x1xf32>
    %124 = arith.divf %122, %123 : vector<2x1xf32>
    %125 = vector.broadcast %124 : vector<2x1xf32> to vector<2x512xf32>
    %126 = arith.subf %117, %125 : vector<2x512xf32>
    %127 = vector.broadcast %124 : vector<2x1xf32> to vector<2x512xf32>
    %128 = arith.subf %117, %127 : vector<2x512xf32>
    %129 = arith.mulf %126, %128 : vector<2x512xf32>
    %cst_126 = arith.constant dense<0.000000e+00> : vector<2xf32>
    %130 = vector.multi_reduction <add>, %129, %cst_126 [1] : vector<2x512xf32> to vector<2xf32>
    %131 = vector.shape_cast %130 : vector<2xf32> to vector<2x1xf32>
    %cst_127 = arith.constant 5.120000e+02 : f32
    %132 = vector.broadcast %cst_127 : f32 to vector<2x1xf32>
    %133 = arith.divf %131, %132 : vector<2x1xf32>
    %134 = vector.broadcast %124 : vector<2x1xf32> to vector<2x512xf32>
    %135 = arith.subf %117, %134 : vector<2x512xf32>
    %cst_128 = arith.constant 9.99999974E-6 : f32
    %136 = vector.broadcast %cst_128 : f32 to vector<2x1xf32>
    %137 = arith.addf %133, %136 : vector<2x1xf32>
    %138 = math.rsqrt %137 : vector<2x1xf32>
    %139 = vector.broadcast %138 : vector<2x1xf32> to vector<2x512xf32>
    %140 = arith.mulf %135, %139 : vector<2x512xf32>
    %141 = vector.broadcast %118 : vector<2x1xf32> to vector<2x512xf32>
    %142 = arith.mulf %140, %141 : vector<2x512xf32>
    %143 = vector.broadcast %119 : vector<2x1xf32> to vector<2x512xf32>
    %144 = arith.addf %142, %143 : vector<2x512xf32>
    %cst_129 = arith.constant 0.000000e+00 : f32
    %145 = vector.broadcast %cst_129 : f32 to vector<2x512xf32>
    %146 = arith.cmpf oge, %144, %145 : vector<2x512xf32>
    %147 = vector.broadcast %120 : vector<2x1xf32> to vector<2x512xf32>
    %148 = arith.mulf %147, %144 : vector<2x512xf32>
    %149 = arith.select %146, %144, %148 : vector<2x512xi1>, vector<2x512xf32>
    %c0_130 = arith.constant 0 : index
    %c0_131 = arith.constant 0 : index
    %150 = vector.load %arg27[%c0_130, %c0_131] : memref<512x288xf32, #tpu.memory_space<vmem>>, vector<512x288xf32>
    %cst_132 = arith.constant dense<0.000000e+00> : vector<2x288xf32>
    %151 = tpu.matmul %149, %150, %cst_132 {dimension_numbers = #tpu.dot_dimension_numbers<[1], [0], [0], [1], [0, 0, 1, 1], [], []>} : vector<2x512xf32>, vector<512x288xf32>, vector<2x288xf32> -> vector<2x288xf32>
    %c0_133 = arith.constant 0 : index
    %c0_134 = arith.constant 0 : index
    %152 = vector.load %arg28[%c0_133, %c0_134] : memref<512x288xf32, #tpu.memory_space<vmem>>, vector<512x288xf32>
    %cst_135 = arith.constant dense<0.000000e+00> : vector<2x288xf32>
    %153 = tpu.matmul %149, %152, %cst_135 {dimension_numbers = #tpu.dot_dimension_numbers<[1], [0], [0], [1], [0, 0, 1, 1], [], []>} : vector<2x512xf32>, vector<512x288xf32>, vector<2x288xf32> -> vector<2x288xf32>
    %c0_136 = arith.constant 0 : index
    %c0_137 = arith.constant 0 : index
    %154 = vector.load %arg14[%c0_136, %c0_137] : memref<2x2xf32, #tpu.memory_space<vmem>>, vector<2x2xf32>
    %cst_138 = arith.constant dense<0.000000e+00> : vector<2x288xf32>
    %155 = tpu.matmul %154, %151, %cst_138 {dimension_numbers = #tpu.dot_dimension_numbers<[1], [0], [0], [1], [0, 0, 1, 1], [], []>} : vector<2x2xf32>, vector<2x288xf32>, vector<2x288xf32> -> vector<2x288xf32>
    %c0_139 = arith.constant 0 : index
    %c0_140 = arith.constant 0 : index
    %156 = vector.load %arg15[%c0_139, %c0_140] : memref<2x1xf32, #tpu.memory_space<vmem>>, vector<2x1xf32>
    %157 = vector.broadcast %156 : vector<2x1xf32> to vector<2x288xf32>
    %158 = arith.addf %155, %157 : vector<2x288xf32>
    %c0_141 = arith.constant 0 : index
    %c0_142 = arith.constant 0 : index
    %159 = vector.load %arg14[%c0_141, %c0_142] : memref<2x2xf32, #tpu.memory_space<vmem>>, vector<2x2xf32>
    %cst_143 = arith.constant dense<0.000000e+00> : vector<2x288xf32>
    %160 = tpu.matmul %159, %153, %cst_143 {dimension_numbers = #tpu.dot_dimension_numbers<[1], [0], [0], [1], [0, 0, 1, 1], [], []>} : vector<2x2xf32>, vector<2x288xf32>, vector<2x288xf32> -> vector<2x288xf32>
    %c0_144 = arith.constant 0 : index
    %c0_145 = arith.constant 0 : index
    %161 = vector.load %arg15[%c0_144, %c0_145] : memref<2x1xf32, #tpu.memory_space<vmem>>, vector<2x1xf32>
    %162 = vector.broadcast %161 : vector<2x1xf32> to vector<2x288xf32>
    %163 = arith.addf %160, %162 : vector<2x288xf32>
    %cst_146 = arith.constant dense<0.000000e+00> : vector<2xf32>
    %164 = vector.multi_reduction <add>, %158, %cst_146 [1] : vector<2x288xf32> to vector<2xf32>
    %165 = vector.shape_cast %164 : vector<2xf32> to vector<2x1xf32>
    %cst_147 = arith.constant 2.880000e+02 : f32
    %166 = vector.broadcast %cst_147 : f32 to vector<2x1xf32>
    %167 = arith.divf %165, %166 : vector<2x1xf32>
    %cst_148 = arith.constant dense<0.000000e+00> : vector<2xf32>
    %168 = vector.multi_reduction <add>, %163, %cst_148 [1] : vector<2x288xf32> to vector<2xf32>
    %169 = vector.shape_cast %168 : vector<2xf32> to vector<2x1xf32>
    %cst_149 = arith.constant 2.880000e+02 : f32
    %170 = vector.broadcast %cst_149 : f32 to vector<2x1xf32>
    %171 = arith.divf %169, %170 : vector<2x1xf32>
    %172 = arith.addf %167, %171 : vector<2x1xf32>
    %cst_150 = arith.constant 5.000000e-01 : f32
    %173 = vector.broadcast %cst_150 : f32 to vector<2x1xf32>
    %174 = arith.mulf %173, %172 : vector<2x1xf32>
    %175 = arith.mulf %158, %158 : vector<2x288xf32>
    %cst_151 = arith.constant dense<0.000000e+00> : vector<2xf32>
    %176 = vector.multi_reduction <add>, %175, %cst_151 [1] : vector<2x288xf32> to vector<2xf32>
    %177 = vector.shape_cast %176 : vector<2xf32> to vector<2x1xf32>
    %cst_152 = arith.constant 2.880000e+02 : f32
    %178 = vector.broadcast %cst_152 : f32 to vector<2x1xf32>
    %179 = arith.divf %177, %178 : vector<2x1xf32>
    %180 = arith.mulf %163, %163 : vector<2x288xf32>
    %cst_153 = arith.constant dense<0.000000e+00> : vector<2xf32>
    %181 = vector.multi_reduction <add>, %180, %cst_153 [1] : vector<2x288xf32> to vector<2xf32>
    %182 = vector.shape_cast %181 : vector<2xf32> to vector<2x1xf32>
    %cst_154 = arith.constant 2.880000e+02 : f32
    %183 = vector.broadcast %cst_154 : f32 to vector<2x1xf32>
    %184 = arith.divf %182, %183 : vector<2x1xf32>
    %185 = arith.addf %179, %184 : vector<2x1xf32>
    %cst_155 = arith.constant 5.000000e-01 : f32
    %186 = vector.broadcast %cst_155 : f32 to vector<2x1xf32>
    %187 = arith.mulf %186, %185 : vector<2x1xf32>
    %188 = arith.mulf %174, %174 : vector<2x1xf32>
    %189 = arith.subf %187, %188 : vector<2x1xf32>
    %cst_156 = arith.constant 9.99999974E-6 : f32
    %190 = vector.broadcast %cst_156 : f32 to vector<2x1xf32>
    %191 = arith.addf %189, %190 : vector<2x1xf32>
    %192 = math.rsqrt %191 : vector<2x1xf32>
    %c0_157 = arith.constant 0 : index
    %c0_158 = arith.constant 0 : index
    %193 = vector.load %arg16[%c0_157, %c0_158] : memref<2x1xf32, #tpu.memory_space<vmem>>, vector<2x1xf32>
    %c0_159 = arith.constant 0 : index
    %c0_160 = arith.constant 0 : index
    %194 = vector.load %arg17[%c0_159, %c0_160] : memref<2x1xf32, #tpu.memory_space<vmem>>, vector<2x1xf32>
    %c0_161 = arith.constant 0 : index
    %c0_162 = arith.constant 0 : index
    %195 = vector.load %arg18[%c0_161, %c0_162] : memref<2x1xf32, #tpu.memory_space<vmem>>, vector<2x1xf32>
    %196 = vector.broadcast %174 : vector<2x1xf32> to vector<2x288xf32>
    %197 = arith.subf %158, %196 : vector<2x288xf32>
    %198 = vector.broadcast %192 : vector<2x1xf32> to vector<2x288xf32>
    %199 = arith.mulf %197, %198 : vector<2x288xf32>
    %200 = vector.broadcast %193 : vector<2x1xf32> to vector<2x288xf32>
    %201 = arith.mulf %199, %200 : vector<2x288xf32>
    %202 = vector.broadcast %194 : vector<2x1xf32> to vector<2x288xf32>
    %203 = arith.addf %201, %202 : vector<2x288xf32>
    %cst_163 = arith.constant 0.000000e+00 : f32
    %204 = vector.broadcast %cst_163 : f32 to vector<2x288xf32>
    %205 = arith.cmpf oge, %203, %204 : vector<2x288xf32>
    %206 = vector.broadcast %195 : vector<2x1xf32> to vector<2x288xf32>
    %207 = arith.mulf %206, %203 : vector<2x288xf32>
    %208 = arith.select %205, %203, %207 : vector<2x288xi1>, vector<2x288xf32>
    %209 = vector.broadcast %174 : vector<2x1xf32> to vector<2x288xf32>
    %210 = arith.subf %163, %209 : vector<2x288xf32>
    %211 = vector.broadcast %192 : vector<2x1xf32> to vector<2x288xf32>
    %212 = arith.mulf %210, %211 : vector<2x288xf32>
    %213 = vector.broadcast %193 : vector<2x1xf32> to vector<2x288xf32>
    %214 = arith.mulf %212, %213 : vector<2x288xf32>
    %215 = vector.broadcast %194 : vector<2x1xf32> to vector<2x288xf32>
    %216 = arith.addf %214, %215 : vector<2x288xf32>
    %cst_164 = arith.constant 0.000000e+00 : f32
    %217 = vector.broadcast %cst_164 : f32 to vector<2x288xf32>
    %218 = arith.cmpf oge, %216, %217 : vector<2x288xf32>
    %219 = vector.broadcast %195 : vector<2x1xf32> to vector<2x288xf32>
    %220 = arith.mulf %219, %216 : vector<2x288xf32>
    %221 = arith.select %218, %216, %220 : vector<2x288xi1>, vector<2x288xf32>
    %c0_165 = arith.constant 0 : index
    %c0_166 = arith.constant 0 : index
    %222 = vector.load %arg29[%c0_165, %c0_166] : memref<288x512xf32, #tpu.memory_space<vmem>>, vector<288x512xf32>
    %cst_167 = arith.constant dense<0.000000e+00> : vector<2x512xf32>
    %223 = tpu.matmul %208, %222, %cst_167 {dimension_numbers = #tpu.dot_dimension_numbers<[1], [0], [0], [1], [0, 0, 1, 1], [], []>} : vector<2x288xf32>, vector<288x512xf32>, vector<2x512xf32> -> vector<2x512xf32>
    %c0_168 = arith.constant 0 : index
    %c0_169 = arith.constant 0 : index
    %224 = vector.load %arg30[%c0_168, %c0_169] : memref<288x512xf32, #tpu.memory_space<vmem>>, vector<288x512xf32>
    %cst_170 = arith.constant dense<0.000000e+00> : vector<2x512xf32>
    %225 = tpu.matmul %221, %224, %cst_170 {dimension_numbers = #tpu.dot_dimension_numbers<[1], [0], [0], [1], [0, 0, 1, 1], [], []>} : vector<2x288xf32>, vector<288x512xf32>, vector<2x512xf32> -> vector<2x512xf32>
    %226 = arith.addf %223, %225 : vector<2x512xf32>
    %c0_171 = arith.constant 0 : index
    %c0_172 = arith.constant 0 : index
    %227 = vector.load %arg19[%c0_171, %c0_172] : memref<4x2xf32, #tpu.memory_space<vmem>>, vector<4x2xf32>
    %228 = arith.addf %226, %149 : vector<2x512xf32>
    %cst_173 = arith.constant dense<0.000000e+00> : vector<4x512xf32>
    %229 = tpu.matmul %227, %228, %cst_173 {dimension_numbers = #tpu.dot_dimension_numbers<[1], [0], [0], [1], [0, 0, 1, 1], [], []>} : vector<4x2xf32>, vector<2x512xf32>, vector<4x512xf32> -> vector<4x512xf32>
    %c0_174 = arith.constant 0 : index
    %c0_175 = arith.constant 0 : index
    %230 = vector.load %arg20[%c0_174, %c0_175] : memref<4x1xf32, #tpu.memory_space<vmem>>, vector<4x1xf32>
    %231 = vector.broadcast %230 : vector<4x1xf32> to vector<4x512xf32>
    %232 = arith.addf %229, %231 : vector<4x512xf32>
    %233 = arith.addf %55, %112 : vector<4x512xf32>
    %c0_176 = arith.constant 0 : index
    %c0_177 = arith.constant 0 : index
    %234 = vector.load %arg21[%c0_176, %c0_177] : memref<4x1xf32, #tpu.memory_space<vmem>>, vector<4x1xf32>
    %c0_178 = arith.constant 0 : index
    %c0_179 = arith.constant 0 : index
    %235 = vector.load %arg22[%c0_178, %c0_179] : memref<4x1xf32, #tpu.memory_space<vmem>>, vector<4x1xf32>
    %c0_180 = arith.constant 0 : index
    %c0_181 = arith.constant 0 : index
    %236 = vector.load %arg23[%c0_180, %c0_181] : memref<4x1xf32, #tpu.memory_space<vmem>>, vector<4x1xf32>
    %cst_182 = arith.constant dense<0.000000e+00> : vector<4xf32>
    %237 = vector.multi_reduction <add>, %233, %cst_182 [1] : vector<4x512xf32> to vector<4xf32>
    %238 = vector.shape_cast %237 : vector<4xf32> to vector<4x1xf32>
    %cst_183 = arith.constant 5.120000e+02 : f32
    %239 = vector.broadcast %cst_183 : f32 to vector<4x1xf32>
    %240 = arith.divf %238, %239 : vector<4x1xf32>
    %241 = vector.broadcast %240 : vector<4x1xf32> to vector<4x512xf32>
    %242 = arith.subf %233, %241 : vector<4x512xf32>
    %243 = vector.broadcast %240 : vector<4x1xf32> to vector<4x512xf32>
    %244 = arith.subf %233, %243 : vector<4x512xf32>
    %245 = arith.mulf %242, %244 : vector<4x512xf32>
    %cst_184 = arith.constant dense<0.000000e+00> : vector<4xf32>
    %246 = vector.multi_reduction <add>, %245, %cst_184 [1] : vector<4x512xf32> to vector<4xf32>
    %247 = vector.shape_cast %246 : vector<4xf32> to vector<4x1xf32>
    %cst_185 = arith.constant 5.120000e+02 : f32
    %248 = vector.broadcast %cst_185 : f32 to vector<4x1xf32>
    %249 = arith.divf %247, %248 : vector<4x1xf32>
    %250 = vector.broadcast %240 : vector<4x1xf32> to vector<4x512xf32>
    %251 = arith.subf %233, %250 : vector<4x512xf32>
    %cst_186 = arith.constant 9.99999974E-6 : f32
    %252 = vector.broadcast %cst_186 : f32 to vector<4x1xf32>
    %253 = arith.addf %249, %252 : vector<4x1xf32>
    %254 = math.rsqrt %253 : vector<4x1xf32>
    %255 = vector.broadcast %254 : vector<4x1xf32> to vector<4x512xf32>
    %256 = arith.mulf %251, %255 : vector<4x512xf32>
    %257 = vector.broadcast %234 : vector<4x1xf32> to vector<4x512xf32>
    %258 = arith.mulf %256, %257 : vector<4x512xf32>
    %259 = vector.broadcast %235 : vector<4x1xf32> to vector<4x512xf32>
    %260 = arith.addf %258, %259 : vector<4x512xf32>
    %cst_187 = arith.constant 0.000000e+00 : f32
    %261 = vector.broadcast %cst_187 : f32 to vector<4x512xf32>
    %262 = arith.cmpf oge, %260, %261 : vector<4x512xf32>
    %263 = vector.broadcast %236 : vector<4x1xf32> to vector<4x512xf32>
    %264 = arith.mulf %263, %260 : vector<4x512xf32>
    %265 = arith.select %262, %260, %264 : vector<4x512xi1>, vector<4x512xf32>
    %266 = arith.addf %265, %2 : vector<4x512xf32>
    %267 = arith.addf %232, %60 : vector<4x512xf32>
    %c0_188 = arith.constant 0 : index
    %c0_189 = arith.constant 0 : index
    %268 = vector.load %arg24[%c0_188, %c0_189] : memref<4x1xf32, #tpu.memory_space<vmem>>, vector<4x1xf32>
    %c0_190 = arith.constant 0 : index
    %c0_191 = arith.constant 0 : index
    %269 = vector.load %arg25[%c0_190, %c0_191] : memref<4x1xf32, #tpu.memory_space<vmem>>, vector<4x1xf32>
    %c0_192 = arith.constant 0 : index
    %c0_193 = arith.constant 0 : index
    %270 = vector.load %arg26[%c0_192, %c0_193] : memref<4x1xf32, #tpu.memory_space<vmem>>, vector<4x1xf32>
    %cst_194 = arith.constant dense<0.000000e+00> : vector<4xf32>
    %271 = vector.multi_reduction <add>, %267, %cst_194 [1] : vector<4x512xf32> to vector<4xf32>
    %272 = vector.shape_cast %271 : vector<4xf32> to vector<4x1xf32>
    %cst_195 = arith.constant 5.120000e+02 : f32
    %273 = vector.broadcast %cst_195 : f32 to vector<4x1xf32>
    %274 = arith.divf %272, %273 : vector<4x1xf32>
    %275 = vector.broadcast %274 : vector<4x1xf32> to vector<4x512xf32>
    %276 = arith.subf %267, %275 : vector<4x512xf32>
    %277 = vector.broadcast %274 : vector<4x1xf32> to vector<4x512xf32>
    %278 = arith.subf %267, %277 : vector<4x512xf32>
    %279 = arith.mulf %276, %278 : vector<4x512xf32>
    %cst_196 = arith.constant dense<0.000000e+00> : vector<4xf32>
    %280 = vector.multi_reduction <add>, %279, %cst_196 [1] : vector<4x512xf32> to vector<4xf32>
    %281 = vector.shape_cast %280 : vector<4xf32> to vector<4x1xf32>
    %cst_197 = arith.constant 5.120000e+02 : f32
    %282 = vector.broadcast %cst_197 : f32 to vector<4x1xf32>
    %283 = arith.divf %281, %282 : vector<4x1xf32>
    %284 = vector.broadcast %274 : vector<4x1xf32> to vector<4x512xf32>
    %285 = arith.subf %267, %284 : vector<4x512xf32>
    %cst_198 = arith.constant 9.99999974E-6 : f32
    %286 = vector.broadcast %cst_198 : f32 to vector<4x1xf32>
    %287 = arith.addf %283, %286 : vector<4x1xf32>
    %288 = math.rsqrt %287 : vector<4x1xf32>
    %289 = vector.broadcast %288 : vector<4x1xf32> to vector<4x512xf32>
    %290 = arith.mulf %285, %289 : vector<4x512xf32>
    %291 = vector.broadcast %268 : vector<4x1xf32> to vector<4x512xf32>
    %292 = arith.mulf %290, %291 : vector<4x512xf32>
    %293 = vector.broadcast %269 : vector<4x1xf32> to vector<4x512xf32>
    %294 = arith.addf %292, %293 : vector<4x512xf32>
    %cst_199 = arith.constant 0.000000e+00 : f32
    %295 = vector.broadcast %cst_199 : f32 to vector<4x512xf32>
    %296 = arith.cmpf oge, %294, %295 : vector<4x512xf32>
    %297 = vector.broadcast %270 : vector<4x1xf32> to vector<4x512xf32>
    %298 = arith.mulf %297, %294 : vector<4x512xf32>
    %299 = arith.select %296, %294, %298 : vector<4x512xi1>, vector<4x512xf32>
    %300 = arith.addf %299, %3 : vector<4x512xf32>
    %c0_200 = arith.constant 0 : index
    %c0_201 = arith.constant 0 : index
    %301 = vector.load %arg33[%c0_200, %c0_201] : memref<4x512xf32, #tpu.memory_space<vmem>>, vector<4x512xf32>
    tpu.vector_store %arg33[%c0_200, %c0_201], %266 {strides = array<i32>} : memref<4x512xf32, #tpu.memory_space<vmem>>, vector<4x512xf32>,
    %c0_202 = arith.constant 0 : index
    %c0_203 = arith.constant 0 : index
    %302 = vector.load %arg34[%c0_202, %c0_203] : memref<4x512xf32, #tpu.memory_space<vmem>>, vector<4x512xf32>
    tpu.vector_store %arg34[%c0_202, %c0_203], %300 {strides = array<i32>} : memref<4x512xf32, #tpu.memory_space<vmem>>, vector<4x512xf32>,
    %c0_204 = arith.constant 0 : index
    %c128_205 = arith.constant 128 : index
    %303 = vector.load %arg35[%c0_204, %c128_205] : memref<8x768xf32, #tpu.memory_space<vmem>>, vector<4x512xf32>
    tpu.vector_store %arg35[%c0_204, %c128_205], %266 {strides = array<i32>} : memref<8x768xf32, #tpu.memory_space<vmem>>, vector<4x512xf32>,
    %c4_206 = arith.constant 4 : index
    %c128_207 = arith.constant 128 : index
    %304 = vector.load %arg35[%c4_206, %c128_207] : memref<8x768xf32, #tpu.memory_space<vmem>>, vector<4x512xf32>
    tpu.vector_store %arg35[%c4_206, %c128_207], %300 {strides = array<i32>} : memref<8x768xf32, #tpu.memory_space<vmem>>, vector<4x512xf32>,
    %c0_208 = arith.constant 0 : index
    %c0_209 = arith.constant 0 : index
    %305 = vector.load %arg31[%c0_208, %c0_209] : memref<9x512xf32, #tpu.memory_space<vmem>>, vector<1x512xf32>
    %c0_210 = arith.constant 0 : index
    %c111_211 = arith.constant 111 : index
    %306 = vector.load %arg35[%c0_210, %c111_211] : memref<8x768xf32, #tpu.memory_space<vmem>>, vector<8x512xf32>
    %307 = vector.broadcast %305 : vector<1x512xf32> to vector<8x512xf32>
    %308 = arith.mulf %306, %307 : vector<8x512xf32>
    %c0_212 = arith.constant 0 : index
    %c0_213 = arith.constant 0 : index
    %309 = vector.load %arg37[%c0_212, %c0_213] : memref<72x512xf32, #tpu.memory_space<vmem>>, vector<8x512xf32>
    tpu.vector_store %arg37[%c0_212, %c0_213], %308 {strides = array<i32>} : memref<72x512xf32, #tpu.memory_space<vmem>>, vector<8x512xf32>,
    %c1_214 = arith.constant 1 : index
    %c0_215 = arith.constant 0 : index
    %310 = vector.load %arg31[%c1_214, %c0_215] : memref<9x512xf32, #tpu.memory_space<vmem>>, vector<1x512xf32>
    %c0_216 = arith.constant 0 : index
    %c112_217 = arith.constant 112 : index
    %311 = vector.load %arg35[%c0_216, %c112_217] : memref<8x768xf32, #tpu.memory_space<vmem>>, vector<8x512xf32>
    %312 = vector.broadcast %310 : vector<1x512xf32> to vector<8x512xf32>
    %313 = arith.mulf %311, %312 : vector<8x512xf32>
    %c8_218 = arith.constant 8 : index
    %c0_219 = arith.constant 0 : index
    %314 = vector.load %arg37[%c8_218, %c0_219] : memref<72x512xf32, #tpu.memory_space<vmem>>, vector<8x512xf32>
    tpu.vector_store %arg37[%c8_218, %c0_219], %313 {strides = array<i32>} : memref<72x512xf32, #tpu.memory_space<vmem>>, vector<8x512xf32>,
    %c2_220 = arith.constant 2 : index
    %c0_221 = arith.constant 0 : index
    %315 = vector.load %arg31[%c2_220, %c0_221] : memref<9x512xf32, #tpu.memory_space<vmem>>, vector<1x512xf32>
    %c0_222 = arith.constant 0 : index
    %c113_223 = arith.constant 113 : index
    %316 = vector.load %arg35[%c0_222, %c113_223] : memref<8x768xf32, #tpu.memory_space<vmem>>, vector<8x512xf32>
    %317 = vector.broadcast %315 : vector<1x512xf32> to vector<8x512xf32>
    %318 = arith.mulf %316, %317 : vector<8x512xf32>
    %c16_224 = arith.constant 16 : index
    %c0_225 = arith.constant 0 : index
    %319 = vector.load %arg37[%c16_224, %c0_225] : memref<72x512xf32, #tpu.memory_space<vmem>>, vector<8x512xf32>
    tpu.vector_store %arg37[%c16_224, %c0_225], %318 {strides = array<i32>} : memref<72x512xf32, #tpu.memory_space<vmem>>, vector<8x512xf32>,
    %c3_226 = arith.constant 3 : index
    %c0_227 = arith.constant 0 : index
    %320 = vector.load %arg31[%c3_226, %c0_227] : memref<9x512xf32, #tpu.memory_space<vmem>>, vector<1x512xf32>
    %c0_228 = arith.constant 0 : index
    %c127_229 = arith.constant 127 : index
    %321 = vector.load %arg35[%c0_228, %c127_229] : memref<8x768xf32, #tpu.memory_space<vmem>>, vector<8x512xf32>
    %322 = vector.broadcast %320 : vector<1x512xf32> to vector<8x512xf32>
    %323 = arith.mulf %321, %322 : vector<8x512xf32>
    %c24_230 = arith.constant 24 : index
    %c0_231 = arith.constant 0 : index
    %324 = vector.load %arg37[%c24_230, %c0_231] : memref<72x512xf32, #tpu.memory_space<vmem>>, vector<8x512xf32>
    tpu.vector_store %arg37[%c24_230, %c0_231], %323 {strides = array<i32>} : memref<72x512xf32, #tpu.memory_space<vmem>>, vector<8x512xf32>,
    %c4_232 = arith.constant 4 : index
    %c0_233 = arith.constant 0 : index
    %325 = vector.load %arg31[%c4_232, %c0_233] : memref<9x512xf32, #tpu.memory_space<vmem>>, vector<1x512xf32>
    %c0_234 = arith.constant 0 : index
    %c128_235 = arith.constant 128 : index
    %326 = vector.load %arg35[%c0_234, %c128_235] : memref<8x768xf32, #tpu.memory_space<vmem>>, vector<8x512xf32>
    %327 = vector.broadcast %325 : vector<1x512xf32> to vector<8x512xf32>
    %328 = arith.mulf %326, %327 : vector<8x512xf32>
    %c32_236 = arith.constant 32 : index
    %c0_237 = arith.constant 0 : index
    %329 = vector.load %arg37[%c32_236, %c0_237] : memref<72x512xf32, #tpu.memory_space<vmem>>, vector<8x512xf32>
    tpu.vector_store %arg37[%c32_236, %c0_237], %328 {strides = array<i32>} : memref<72x512xf32, #tpu.memory_space<vmem>>, vector<8x512xf32>,
    %c5_238 = arith.constant 5 : index
    %c0_239 = arith.constant 0 : index
    %330 = vector.load %arg31[%c5_238, %c0_239] : memref<9x512xf32, #tpu.memory_space<vmem>>, vector<1x512xf32>
    %c0_240 = arith.constant 0 : index
    %c129_241 = arith.constant 129 : index
    %331 = vector.load %arg35[%c0_240, %c129_241] : memref<8x768xf32, #tpu.memory_space<vmem>>, vector<8x512xf32>
    %332 = vector.broadcast %330 : vector<1x512xf32> to vector<8x512xf32>
    %333 = arith.mulf %331, %332 : vector<8x512xf32>
    %c40 = arith.constant 40 : index
    %c0_242 = arith.constant 0 : index
    %334 = vector.load %arg37[%c40, %c0_242] : memref<72x512xf32, #tpu.memory_space<vmem>>, vector<8x512xf32>
    tpu.vector_store %arg37[%c40, %c0_242], %333 {strides = array<i32>} : memref<72x512xf32, #tpu.memory_space<vmem>>, vector<8x512xf32>,
    %c6_243 = arith.constant 6 : index
    %c0_244 = arith.constant 0 : index
    %335 = vector.load %arg31[%c6_243, %c0_244] : memref<9x512xf32, #tpu.memory_space<vmem>>, vector<1x512xf32>
    %c0_245 = arith.constant 0 : index
    %c143_246 = arith.constant 143 : index
    %336 = vector.load %arg35[%c0_245, %c143_246] : memref<8x768xf32, #tpu.memory_space<vmem>>, vector<8x512xf32>
    %337 = vector.broadcast %335 : vector<1x512xf32> to vector<8x512xf32>
    %338 = arith.mulf %336, %337 : vector<8x512xf32>
    %c48 = arith.constant 48 : index
    %c0_247 = arith.constant 0 : index
    %339 = vector.load %arg37[%c48, %c0_247] : memref<72x512xf32, #tpu.memory_space<vmem>>, vector<8x512xf32>
    tpu.vector_store %arg37[%c48, %c0_247], %338 {strides = array<i32>} : memref<72x512xf32, #tpu.memory_space<vmem>>, vector<8x512xf32>,
    %c7_248 = arith.constant 7 : index
    %c0_249 = arith.constant 0 : index
    %340 = vector.load %arg31[%c7_248, %c0_249] : memref<9x512xf32, #tpu.memory_space<vmem>>, vector<1x512xf32>
    %c0_250 = arith.constant 0 : index
    %c144_251 = arith.constant 144 : index
    %341 = vector.load %arg35[%c0_250, %c144_251] : memref<8x768xf32, #tpu.memory_space<vmem>>, vector<8x512xf32>
    %342 = vector.broadcast %340 : vector<1x512xf32> to vector<8x512xf32>
    %343 = arith.mulf %341, %342 : vector<8x512xf32>
    %c56 = arith.constant 56 : index
    %c0_252 = arith.constant 0 : index
    %344 = vector.load %arg37[%c56, %c0_252] : memref<72x512xf32, #tpu.memory_space<vmem>>, vector<8x512xf32>
    tpu.vector_store %arg37[%c56, %c0_252], %343 {strides = array<i32>} : memref<72x512xf32, #tpu.memory_space<vmem>>, vector<8x512xf32>,
    %c8_253 = arith.constant 8 : index
    %c0_254 = arith.constant 0 : index
    %345 = vector.load %arg31[%c8_253, %c0_254] : memref<9x512xf32, #tpu.memory_space<vmem>>, vector<1x512xf32>
    %c0_255 = arith.constant 0 : index
    %c145_256 = arith.constant 145 : index
    %346 = vector.load %arg35[%c0_255, %c145_256] : memref<8x768xf32, #tpu.memory_space<vmem>>, vector<8x512xf32>
    %347 = vector.broadcast %345 : vector<1x512xf32> to vector<8x512xf32>
    %348 = arith.mulf %346, %347 : vector<8x512xf32>
    %c64 = arith.constant 64 : index
    %c0_257 = arith.constant 0 : index
    %349 = vector.load %arg37[%c64, %c0_257] : memref<72x512xf32, #tpu.memory_space<vmem>>, vector<8x512xf32>
    tpu.vector_store %arg37[%c64, %c0_257], %348 {strides = array<i32>} : memref<72x512xf32, #tpu.memory_space<vmem>>, vector<8x512xf32>,
    %c0_258 = arith.constant 0 : index
    %c0_259 = arith.constant 0 : index
    %350 = vector.load %arg7[%c0_258, %c0_259] : memref<8x72xf32, #tpu.memory_space<vmem>>, vector<8x72xf32>
    %c0_260 = arith.constant 0 : index
    %c0_261 = arith.constant 0 : index
    %351 = vector.load %arg37[%c0_260, %c0_261] : memref<72x512xf32, #tpu.memory_space<vmem>>, vector<72x512xf32>
    %cst_262 = arith.constant dense<0.000000e+00> : vector<8x512xf32>
    %352 = tpu.matmul %350, %351, %cst_262 {dimension_numbers = #tpu.dot_dimension_numbers<[1], [0], [0], [1], [0, 0, 1, 1], [], []>} : vector<8x72xf32>, vector<72x512xf32>, vector<8x512xf32> -> vector<8x512xf32>
    %c0_263 = arith.constant 0 : index
    %c0_264 = arith.constant 0 : index
    %353 = vector.load %arg8[%c0_263, %c0_264] : memref<8x1xf32, #tpu.memory_space<vmem>>, vector<8x1xf32>
    %354 = vector.broadcast %353 : vector<8x1xf32> to vector<8x512xf32>
    %355 = arith.addf %352, %354 : vector<8x512xf32>
    %c0_265 = arith.constant 0 : index
    %c0_266 = arith.constant 0 : index
    %356 = vector.load %arg32[%c0_265, %c0_266] : memref<8x512xf32, #tpu.memory_space<vmem>>, vector<8x512xf32>
    tpu.vector_store %arg32[%c0_265, %c0_266], %355 {strides = array<i32>} : memref<8x512xf32, #tpu.memory_space<vmem>>, vector<8x512xf32>,
    return
  }
}

</mosaic_0001>

<bundles_post_ra>
// kernel: fourier_block_forward.2
= control target key start
LH: loop header
LB: loop body
LE: loop exit
PB: predicated region body
PF: predicated region fallthrough
CT: control target
= control target key end

     0   :  { %s6842_s6 = smov 1   ;;  %s6843_s10 = smov 2   ;;  %s9199_s0 = inlined_call_operand.smem [shape: u32[35], index: -1, kind: input, shape index: {}] }
   0x1   :  { %s6897_s5 = sld [smem:[%s9199_s0]]   ;;  %s6844_s14 = smov 3  }
   0x2   :  { %s6902_s9 = sld [smem:[%s9199_s0 + %s6842_s6]]   ;;  %s6845_s18 = smov 4  }
   0x3   :  { %s6907_s13 = sld [smem:[%s9199_s0 + %s6843_s10]]   ;;  %s6846_s22 = smov 5  }
   0x4   :  { %s6912_s17 = sld [smem:[%s9199_s0 + %s6844_s14]]   ;;  %s6847_s26 = smov 6  }
   0x5   :  { %s6917_s21 = sld [smem:[%s9199_s0 + %s6845_s18]]   ;;  %s6848_s30 = smov 7  }
   0x6   :  { %s6922_s25 = sld [smem:[%s9199_s0 + %s6846_s22]]   ;;  %s6849_s4 = smov 8  }
   0x7   :  { %s6927_s29 = sld [smem:[%s9199_s0 + %s6847_s26]]   ;;  %s6850_s10 = smov 9  }
   0x8   :  { %s6932_s3 = sld [smem:[%s9199_s0 + %s6848_s30]]   ;;  %s6851_s15 = smov 10  }
   0x9   :  { %9205 = sst [smem:[#allocation11_spill]] %s6907_s13  ;;  %s6852_s20 = smov 11  }
   0xa   :  { %s6937_s8 = sld [smem:[%s9199_s0 + %s6849_s4]]   ;;  %s6853_s26 = smov 12  }
   0xb   :  { %9206 = sst [smem:[#allocation12_spill]] %s6917_s21  ;;  %s6854_s1 = smov 13  }
   0xc   :  { %s6942_s14 = sld [smem:[%s9199_s0 + %s6850_s10]]   ;;  %s6855_s7 = smov 14  }
   0xd   :  { %9207 = sst [smem:[#allocation13_spill]] %s6927_s29  ;;  %s6857_s22 = smov 16  }
   0xe   :  { %9208 = sst [smem:[#allocation14_spill]] %s6932_s3  ;;  %s6858_s28 = smov 17  }
   0xf   :  { %s6947_s19 = sld [smem:[%s9199_s0 + %s6851_s15]]   ;;  %s6856_s15 = smov 15  }
  0x10   :  { %9209 = sst [smem:[#allocation15_spill]] %s6937_s8 }
  0x11   :  { %s6952_s24 = sld [smem:[%s9199_s0 + %s6852_s20]]  }
  0x12   :  { %s6957_s30 = sld [smem:[%s9199_s0 + %s6853_s26]]  }
  0x13   :  { %s6962_s6 = sld [smem:[%s9199_s0 + %s6854_s1]]  }
  0x14   :  { %s6967_s12 = sld [smem:[%s9199_s0 + %s6855_s7]]   ;;  %s6859_s7 = smov 18  }
  0x15   :  { %s6972_s20 = sld [smem:[%s9199_s0 + %s6856_s15]]   ;;  %s6860_s15 = smov 19  }
  0x16   :  { %s6977_s27 = sld [smem:[%s9199_s0 + %s6857_s22]]   ;;  %s6861_s22 = smov 20  }
  0x17   :  { %s6982_s4 = sld [smem:[%s9199_s0 + %s6858_s28]]   ;;  %s6862_s28 = smov 21  }
  0x18   :  { %s6987_s3 = sld [smem:[%s9199_s0 + %s6859_s7]]   ;;  %s6863_s7 = smov 22  }
  0x19   :  { %s6992_s8 = sld [smem:[%s9199_s0 + %s6860_s15]]   ;;  %s6864_s15 = smov 23  }
  0x1a   :  { %s6997_s29 = sld [smem:[%s9199_s0 + %s6861_s22]]   ;;  %s6865_s22 = smov 24  }
  0x1b   :  { %s7002_s13 = sld [smem:[%s9199_s0 + %s6862_s28]]   ;;  %s6866_s28 = smov 25  }
  0x1c   :  { %9210 = sst [smem:[#allocation16_spill]] %s6977_s27 }
  0x1d   :  { %9211 = sst [smem:[#allocation17_spill]] %s6982_s4 }
  0x1e   :  { %9212 = sst [smem:[#allocation18_spill]] %s6987_s3 }
  0x1f   :  { %9213 = sst [smem:[#allocation19_spill]] %s6992_s8 }
  0x20   :  { %9214 = sst [smem:[#allocation20_spill]] %s6997_s29 }
  0x21   :  { %9215 = sst [smem:[#allocation21_spill]] %s7002_s13 }
  0x22   :  { %s7007_s21 = sld [smem:[%s9199_s0 + %s6863_s7]]   ;;  %s6867_s7 = smov 26  }
  0x23   :  { %s7012_s8 = sld [smem:[%s9199_s0 + %s6864_s15]]   ;;  %s6868_s15 = smov 27  }
  0x24   :  { %s7017_s29 = sld [smem:[%s9199_s0 + %s6865_s22]]   ;;  %s6869_s22 = smov 28  }
  0x25   :  { %s7022_s13 = sld [smem:[%s9199_s0 + %s6866_s28]]   ;;  %s6870_s28 = smov 29  }
  0x28   :  { %9216 = sst [smem:[#allocation22_spill]] %s7007_s21 }
  0x29   :  { %9217 = sst [smem:[#allocation23_spill]] %s7012_s8 }
  0x2a   :  { %9218 = sst [smem:[#allocation24_spill]] %s7017_s29 }
  0x2b   :  { %9219 = sst [smem:[#allocation25_spill]] %s7022_s13 }
  0x2c   :  { %s7027_s21 = sld [smem:[%s9199_s0 + %s6867_s7]]   ;;  %s6871_s7 = smov 30  }
  0x2d   :  { %s7032_s8 = sld [smem:[%s9199_s0 + %s6868_s15]]   ;;  %s6872_s15 = smov 31  }
  0x2e   :  { %s7037_s29 = sld [smem:[%s9199_s0 + %s6869_s22]]   ;;  %s6873_s22 = smov 32  }
  0x2f   :  { %s7042_s13 = sld [smem:[%s9199_s0 + %s6870_s28]]   ;;  %s6874_s28 = smov 33  }
  0x30   :  { %s7052_s4 = sld [smem:[%s9199_s0 + %s6872_s15]]  }
  0x31   :  { %s7057_s3 = sld [smem:[%s9199_s0 + %s6873_s22]]  }
  0x32   :  { %9220 = sst [smem:[#allocation26_spill]] %s7027_s21 }
  0x33   :  { %s7047_s21 = sld [smem:[%s9199_s0 + %s6871_s7]]   ;;  %s6875_s7 = smov 34  }
  0x34   :  { %s7067_s27 = sld [smem:[%s9199_s0 + %s6875_s7]]  }
  0x35   :  { %9221 = sst [smem:[#allocation27_spill]] %s7042_s13 }
  0x36   :  { %s7062_s13 = sld [smem:[%s9199_s0 + %s6874_s28]]  }
  0x37   :  { %75 = vsyncpa [#allocation6], 0  ;;  %v166_v0 = vlaneseq  ;;  %v6876_v1 = vmov 0.0   ;;  %v5647_v3 = vld [vmem:[%s7052_s4 + $0x1] ss:$8 sm:$0xf] }
  0x38   :  { %141 = vst [vmem:[#allocation2] sm:$0xff] %v6876_v1  ;;  %142 = vst [vmem:[#allocation2 + $0x8] sm:$0xff] %v6876_v1  ;;  %905 = vmatprep.mubr.f32.mxu0 %v6876_v1  ;;  %976 = vmatprep.mubr.f32.mxu1 %v6876_v1  ;;  %v5649_v7 = vld [vmem:[%s7052_s4 + $0x3] ss:$8 sm:$0xf]  ;;  %s6877_s0 = smov 112  }
  0x39   :  { %143 = vst [vmem:[#allocation2 + $0x10] sm:$0xff] %v6876_v1  ;;  %144 = vst [vmem:[#allocation2 + $0x18] sm:$0xff] %v6876_v1  ;;  %v167_v2 = vshrl.u32 %v166_v0, 7  ;;  %v159_v12 = vld [vmem:[%s7052_s4] ss:$8 sm:$0xf] }
  0x3a   :  { %145 = vst [vmem:[#allocation2 + $0x20] sm:$0xff] %v6876_v1  ;;  %146 = vst [vmem:[#allocation2 + $0x28] sm:$0xff] %v6876_v1  ;;  %s6878_s15 = smov 127   ;;  %v7089_v15 = vld [vmem:[%s6897_s5] sm:$0xf] }
  0x3b   :  { %v7070_v4 = vsub.s32 2, %v167_v2  ;;  %v7072_v5 = vsub.s32 0, %v167_v2  ;;  %v7074_v6 = vsub.s32 1, %v167_v2  ;;  %9222 = vst [vmem:[#allocation28_spill] sm:$0xff] %v7089_v15  ;;  %v7092_v16 = vld [vmem:[%s6897_s5 + $0x8] sm:$0xf] }
  0x3c   :  { %9223 = vst [vmem:[#allocation29_spill] sm:$0xff] %v7092_v16  ;;  %155 = vst [vmem:[#allocation2 + $0x8] sm:$0xf] %v7089_v15  ;;  %v7097_v17 = vld [vmem:[%s6897_s5 + $0x18] sm:$0xf] }
  0x3d   :  { %v251_v8 = vrot.slane %v5647_v3, %v7070_v4  ;;  %v243_v9 = vrot.slane %v5647_v3, %v7072_v5  ;;  %v396_v10 = vrot.slane %v5649_v7, %v7072_v5  ;;  %v247_v11 = vrot.slane %v5647_v3, %v7074_v6  ;;  %156 = vst [vmem:[#allocation2 + $0x10] sm:$0xf] %v7092_v16  ;;  %v7100_v18 = vld [vmem:[%s6897_s5 + $0x10] sm:$0xf] }
  0x3e   :  { %v404_v13 = vrot.slane %v5649_v7, %v7070_v4  ;;  %v400_v14 = vrot.slane %v5649_v7, %v7074_v6  ;;  %9224 = vst [vmem:[#allocation30_spill] sm:$0xff] %v7097_v17  ;;  %9225 = vst [vmem:[#allocation31_spill] sm:$0xff] %v7100_v18 }
  0x3f   :  { %260 = vrot.lane.b32.xlu1 %v251_v8, %s6877_s0  ;;  %256 = vrot.lane.b32.xlu0 %v243_v9, %s6877_s0 }
  0x43   :  { %409 = vrot.lane.b32.xlu1 %v396_v10, %s6878_s15  ;;  %258 = vrot.lane.b32.xlu0 %v247_v11, %s6877_s0 }
  0x44   :  { %76 = vsyncpa [#allocation8], 0  ;;  %158 = vst [vmem:[#allocation2 + $0x20] sm:$0xf] %v7097_v17  ;;  %v173_v19 = vrot.slane %v159_v12, %v7074_v6  ;;  %v169_v20 = vrot.slane %v159_v12, %v7072_v5  ;;  %s6879_s16 = smov 111   ;;  %v177_v23 = vrot.slane %v159_v12, %v7070_v4  ;;  %s6880_s18 = smov 113  }
  0x45   :  { %157 = vst [vmem:[#allocation2 + $0x18] sm:$0xf] %v7100_v18  ;;  %v5648_v21 = vld [vmem:[%s7052_s4 + $0x2] ss:$8 sm:$0xf]  ;;  %v7117_v26 = vsub.s32 3, %v167_v2 }
  0x46   :  { %v322_v22 = vrot.slane %v5648_v21, %v7072_v5  ;;  %v330_v24 = vrot.slane %v5648_v21, %v7070_v4  ;;  %v326_v25 = vrot.slane %v5648_v21, %v7074_v6  ;;  %v5651_v29 = vld [vmem:[%s7052_s4 + $0x5] ss:$8 sm:$0xf]  ;;  %v5653_v32 = vld [vmem:[%s7052_s4 + $0x7] ss:$8 sm:$0xf] }
  0x47   :  { %413 = vrot.lane.b32.xlu1 %v404_v13, %s6878_s15  ;;  %411 = vrot.lane.b32.xlu0 %v400_v14, %s6878_s15  ;;  %v408_v27 = vrot.slane %v5649_v7, %v7117_v26  ;;  %v255_v28 = vrot.slane %v5647_v3, %v7117_v26  ;;  %v514_v30 = vrot.slane %v5651_v29, %v7074_v6  ;;  %s6881_s22 = smov 1   ;;  %s6882_s23 = smov 16   ;;  %v5652_v39 = vld [vmem:[%s7052_s4 + $0x6] ss:$8 sm:$0xf]  ;;  %vm264_vm0 = vcmask 916480  }
  0x48   :  { %v510_v31 = vrot.slane %v5651_v29, %v7072_v5  ;;  %v659_v33 = vrot.slane %v5653_v32, %v7072_v5  ;;  %v518_v34 = vrot.slane %v5651_v29, %v7070_v4  ;;  %v667_v35 = vrot.slane %v5653_v32, %v7070_v4  ;;  %v151_v42 = vld [vmem:[%s6897_s5] sm:$0xf0]  ;;  %v7147_v43 = vld [vmem:[#allocation2 + $0x8] sm:$0xf]  ;;  %s6883_s26 = smov 15   ;;  %s6884_s28 = smov 17  }
  0x49   :  { %v663_v36 = vrot.slane %v5653_v32, %v7074_v6  ;;  %v334_v37 = vrot.slane %v5648_v21, %v7117_v26  ;;  %v181_v38 = vrot.slane %v159_v12, %v7117_v26  ;;  %v591_v40 = vrot.slane %v5652_v39, %v7074_v6  ;;  %v7149_v44 = vld [vmem:[#allocation2 + $0x8] sm:$0xf]  ;;  %v7173_v56 = vld [vmem:[#allocation2 + $0x10] sm:$0xf]  ;;  %v152_v60 = vld [vmem:[%s6897_s5 + $0x8] sm:$0xf0] }
  0x4a   :  { %v587_v41 = vrot.slane %v5652_v39, %v7072_v5  ;;  %v7151_v45 = vld [vmem:[#allocation2 + $0x8] sm:$0xf]  ;;  %v522_v47 = vrot.slane %v5651_v29, %v7117_v26  ;;  %v595_v48 = vrot.slane %v5652_v39, %v7070_v4  ;;  %v7163_v51 = vrot.slane %v151_v42, 4  ;;  %v7175_v57 = vld [vmem:[#allocation2 + $0x10] sm:$0xf]  ;;  %s9240_s1 = sld [smem:[#allocation26_spill]] }
  0x4b   :  { %184 = vrot.lane.b32.xlu1 %v173_v19, %s6879_s16  ;;  %182 = vrot.lane.b32.xlu0 %v169_v20, %s6879_s16  ;;  %v7153_v46 = vld [vmem:[#allocation2 + $0x8] sm:$0xf]  ;;  %v7177_v58 = vld [vmem:[#allocation2 + $0x10] sm:$0xf]  ;;  %v599_v61 = vrot.slane %v5652_v39, %v7117_v26  ;;  %v671_v62 = vrot.slane %v5653_v32, %v7117_v26  ;;  %v7190_v1 = vrot.slane %v152_v60, 4  ;;  %vm190_vm1 = vcmask 908288  }
  0x4c   :  { %v7159_v49 = vld [vmem:[#allocation2 + $0x8] sm:$0xf]  ;;  %v7179_v59 = vld [vmem:[#allocation2 + $0x10] sm:$0xf]  ;;  %v7208_v13 = vld [vmem:[#allocation2 + $0x18] sm:$0xf] }
  0x4d   :  { %v7161_v50 = vld [vmem:[#allocation2 + $0x8] sm:$0xf]  ;;  %v7186_v63 = vld [vmem:[#allocation2 + $0x10] sm:$0xf]  ;;  %v7210_v14 = vld [vmem:[#allocation2 + $0x18] sm:$0xf] }
  0x4e   :  { %v7165_v52 = vld [vmem:[#allocation2 + $0x8] sm:$0xf]  ;;  %v7188_v0 = vld [vmem:[#allocation2 + $0x10] sm:$0xf]  ;;  %v7212_v19 = vld [vmem:[#allocation2 + $0x18] sm:$0xf] }
  0x4f   :  { %335 = vrot.lane.b32.xlu1 %v322_v22, %s6880_s18  ;;  %186 = vrot.lane.b32.xlu0 %v177_v23, %s6879_s16  ;;  %v7167_v53 = vld [vmem:[#allocation2 + $0x8] sm:$0xf]  ;;  %v7192_v2 = vld [vmem:[#allocation2 + $0x10] sm:$0xf]  ;;  %v153_v20 = vld [vmem:[%s6897_s5 + $0x10] sm:$0xf0] }
  0x50   :  { %v7169_v54 = vld [vmem:[#allocation2 + $0x8] sm:$0xf]  ;;  %v7194_v3 = vld [vmem:[#allocation2 + $0x10] sm:$0xf]  ;;  %v7215_v21 = vld [vmem:[#allocation2 + $0x18] sm:$0xf] }
  0x51   :  { %1147 = vst [vmem:[#allocation2 + $0x8] sm:$0xf] %v7163_v51  ;;  %v5654_v55 = vld [vmem:[%s7052_s4 + $0x20] ss:$8 sm:$0xf]  ;;  %vm417_vm2 = vcmask 1039360  }
  0x52   :  { %v7196_v7 = vld [vmem:[#allocation2 + $0x10] sm:$0xf]  ;;  %v740_v8 = vrot.slane %v5654_v55, %v7074_v6  ;;  %v736_v9 = vrot.slane %v5654_v55, %v7072_v5  ;;  %v748_v10 = vrot.slane %v5654_v55, %v7117_v26  ;;  %v744_v11 = vrot.slane %v5654_v55, %v7070_v4  ;;  %v7217_v22 = vld [vmem:[#allocation2 + $0x18] sm:$0xf]  ;;  %v7248_v39 = vld [vmem:[#allocation2 + $0x20] sm:$0xf] }
  0x53   :  { %339 = vrot.lane.b32.xlu1 %v330_v24, %s6880_s18  ;;  %337 = vrot.lane.b32.xlu0 %v326_v25, %s6880_s18  ;;  %1148 = vst [vmem:[#allocation2 + $0x10] sm:$0xf] %v7190_v1  ;;  %v5667_v12 = vld [vmem:[%s7052_s4 + $0x1] ss:$8 sm:$0xf]  ;;  %v7221_v24 = vrot.slane %v153_v20, 4 }
  0x54   :  { %v7219_v23 = vld [vmem:[#allocation2 + $0x18] sm:$0xf]  ;;  %v1236_v25 = vrot.slane %v5667_v12, %v7074_v6  ;;  %v7253_v42 = vld [vmem:[#allocation2 + $0x20] sm:$0xf]  ;;  %vm343_vm3 = vcmask 924672   ;;  %vm451_vm4 = vcmask 7168  }
  0x55   :  { %v7229_v29 = vld [vmem:[#allocation2 + $0x18] sm:$0xf]  ;;  %v313_v15 = vld [vmem:[#allocation2] sm:$0xf]  ;;  %vm298_vm5 = vcmask 130048   ;;  %vm372_vm6 = vcmask 121856  }
  0x56   :  { %vm219_vm7 = vcmask 138240   ;;  %vm828_vm8 = vcmask 1043456   ;;  %vm824_vm9 = vcmask 293888   ;;  %vm1964_vm10 = vcmask 31744   ;;  %s9245_s2 = sld [smem:[#allocation15_spill]]  ;;  %s6887_s7 = smov [#allocation5]  }
  0x57   :  { %415 = vrot.lane.b32.xlu1 %v408_v27, %s6878_s15  ;;  %262 = vrot.lane.b32.xlu0 %v255_v28, %s6877_s0  ;;  %v1232_v27 = vrot.slane %v5667_v12, %v7072_v5  ;;  %v7227_v28 = vld [vmem:[#allocation2 + $0x18] sm:$0xf]  ;;  %vm2121_vm11 = vcmask 1041408   ;;  %s5589_s10 = sshll.u32 %s6887_s7, 4  ;;  %s6888_s11 = smov [#allocation7]   ;;  %s5590_s10 = int_to_ptr.vmem [resolvable:$true] %s5589_s10 }
  0x58   :  { %p6799_p1 = scmp.lt.s32.totalorder %s5590_s10, %s5590_s10 }
  0x5b   :  { %525 = vrot.lane.b32.xlu1 %v514_v30, %s6881_s22  ;;  %523 = vrot.lane.b32.xlu0 %v510_v31, %s6881_s22  ;;  %v7231_v30 = vld [vmem:[#allocation2 + $0x18] sm:$0xf] }
  0x5c   :  { %v5669_v31 = vld [vmem:[%s7052_s4 + $0x3] ss:$8 sm:$0xf]  ;;  %1149 = vst [vmem:[#allocation2 + $0x18] sm:$0xf] %v7221_v24 }
  0x5d   :  { %v1379_v32 = vrot.slane %v5669_v31, %v7072_v5 }
  0x5f   :  { %672 = vrot.lane.b32.xlu1 %v659_v33, %s6882_s23  ;;  %527 = vrot.lane.b32.xlu0 %v518_v34, %s6881_s22  ;;  %v1240_v33 = vrot.slane %v5667_v12, %v7070_v4  ;;  %v1387_v34 = vrot.slane %v5669_v31, %v7070_v4 }
  0x63   :  { %676 = vrot.lane.b32.xlu1 %v667_v35, %s6882_s23  ;;  %674 = vrot.lane.b32.xlu0 %v663_v36, %s6882_s23  ;;  %v1383_v35 = vrot.slane %v5669_v31, %v7074_v6  ;;  %v1151_v36 = vld [vmem:[%s7052_s4] ss:$8 sm:$0xf] }
  0x64   :  { %v1165_v55 = vrot.slane %v1151_v36, %v7074_v6  ;;  %v1161_v60 = vrot.slane %v1151_v36, %v7072_v5 }
  0x67   :  { %341 = vrot.lane.b32.xlu1 %v334_v37, %s6880_s18  ;;  %188 = vrot.lane.b32.xlu0 %v181_v38, %s6879_s16  ;;  %v7244_v37 = vld [vmem:[#allocation2 + $0x20] sm:$0xf] }
  0x68   :  { %v7246_v38 = vld [vmem:[#allocation2 + $0x20] sm:$0xf] }
  0x6b   :  { %602 = vrot.lane.b32.xlu1 %v591_v40, %s6883_s26  ;;  %600 = vrot.lane.b32.xlu0 %v587_v41, %s6883_s26  ;;  %v7250_v40 = vld [vmem:[#allocation2 + $0x20] sm:$0xf]  ;;  %v154_v41 = vld [vmem:[%s6897_s5 + $0x18] sm:$0xf0]  ;;  %s9226_s5 = sld [smem:[#allocation16_spill]] }
  0x6f   :  { %529 = vrot.lane.b32.xlu1 %v522_v47, %s6881_s22  ;;  %604 = vrot.lane.b32.xlu0 %v595_v48, %s6883_s26  ;;  %v7255_v47 = vld [vmem:[#allocation2 + $0x20] sm:$0xf]  ;;  %v7257_v48 = vrot.slane %v154_v41, 4  ;;  %v5673_v41 = vld [vmem:[%s7052_s4 + $0x7] ss:$8 sm:$0xf] }
  0x73   :  { %606 = vrot.lane.b32.xlu1 %v599_v61, %s6883_s26  ;;  %678 = vrot.lane.b32.xlu0 %v671_v62, %s6882_s23  ;;  %v7263_v61 = vld [vmem:[#allocation2 + $0x20] sm:$0xf] }
  0x74   :  { %v7265_v62 = vld [vmem:[#allocation2 + $0x20] sm:$0xf] }
  0x77   :  { %751 = vrot.lane.b32.xlu1 %v740_v8, %s6884_s28  ;;  %749 = vrot.lane.b32.xlu0 %v736_v9, %s6884_s28  ;;  %v7267_v8 = vld [vmem:[#allocation2 + $0x20] sm:$0xf] }
  0x78   :  { %v5668_v9 = vld [vmem:[%s7052_s4 + $0x2] ss:$8 sm:$0xf]  ;;  %1150 = vst [vmem:[#allocation2 + $0x20] sm:$0xf] %v7257_v48 }
  0x79   :  { %v1316_v20 = vrot.slane %v5668_v9, %v7070_v4 }
  0x7b   :  { %755 = vrot.lane.b32.xlu1 %v748_v10, %s6884_s28  ;;  %753 = vrot.lane.b32.xlu0 %v744_v11, %s6884_s28  ;;  %v1308_v10 = vrot.slane %v5668_v9, %v7072_v5  ;;  %v1169_v11 = vrot.slane %v1151_v36, %v7070_v4 }
  0x7f   :  { %1247 = vrot.lane.b32.xlu1 %v1236_v25, %s6877_s0  ;;  %1245 = vrot.lane.b32.xlu0 %v1232_v27, %s6877_s0  ;;  %v1312_v25 = vrot.slane %v5668_v9, %v7074_v6  ;;  %v1391_v27 = vrot.slane %v5669_v31, %v7117_v26 }
  0x83   :  { %1392 = vrot.lane.b32.xlu1 %v1379_v32, %s6878_s15  ;;  %1249 = vrot.lane.b32.xlu0 %v1240_v33, %s6877_s0  ;;  %v1244_v32 = vrot.slane %v5667_v12, %v7117_v26  ;;  %v5671_v33 = vld [vmem:[%s7052_s4 + $0x5] ss:$8 sm:$0xf]  ;;  %v1644_v12 = vrot.slane %v5673_v41, %v7070_v4 }
  0x84   :  { %v1497_v31 = vrot.slane %v5671_v33, %v7070_v4 }
  0x87   :  { %1396 = vrot.lane.b32.xlu1 %v1387_v34, %s6878_s15  ;;  %1394 = vrot.lane.b32.xlu0 %v1383_v35, %s6878_s15  ;;  %v1493_v34 = vrot.slane %v5671_v33, %v7074_v6  ;;  %v1489_v35 = vrot.slane %v5671_v33, %v7072_v5 }
  0x8b   :  { %1176 = vrot.lane.b32.xlu1 %v1165_v55, %s6879_s16  ;;  %1174 = vrot.lane.b32.xlu0 %v1161_v60, %s6879_s16  ;;  %v1636_v55 = vrot.slane %v5673_v41, %v7072_v5  ;;  %v1640_v60 = vrot.slane %v5673_v41, %v7074_v6 }
  0x8f   :  { %1321 = vrot.lane.b32.xlu1 %v1308_v10, %s6880_s18  ;;  %1178 = vrot.lane.b32.xlu0 %v1169_v11, %s6879_s16  ;;  %v1320_v10 = vrot.slane %v5668_v9, %v7117_v26  ;;  %v1173_v11 = vrot.slane %v1151_v36, %v7117_v26  ;;  %v1648_v36 = vrot.slane %v5673_v41, %v7117_v26 }
  0x93   :  { %1325 = vrot.lane.b32.xlu1 %v1316_v20, %s6880_s18  ;;  %1323 = vrot.lane.b32.xlu0 %v1312_v25, %s6880_s18  ;;  %v5672_v20 = vld [vmem:[%s7052_s4 + $0x6] ss:$8 sm:$0xf] }
  0x94   :  { %v1569_v25 = vrot.slane %v5672_v20, %v7074_v6  ;;  %v1577_v9 = vrot.slane %v5672_v20, %v7117_v26 }
  0x97   :  { %1398 = vrot.lane.b32.xlu1 %v1391_v27, %s6878_s15  ;;  %1251 = vrot.lane.b32.xlu0 %v1244_v32, %s6877_s0  ;;  %v1565_v27 = vrot.slane %v5672_v20, %v7072_v5  ;;  %v1501_v32 = vrot.slane %v5671_v33, %v7117_v26 }
  0x9b   :  { %1504 = vrot.lane.b32.xlu1 %v1493_v34, %s6881_s22  ;;  %1502 = vrot.lane.b32.xlu0 %v1489_v35, %s6881_s22  ;;  %v1573_v34 = vrot.slane %v5672_v20, %v7070_v4  ;;  %v5674_v35 = vld [vmem:[%s7052_s4 + $0x20] ss:$8 sm:$0xf] }
  0x9c   :  { %v1712_v33 = vrot.slane %v5674_v35, %v7072_v5  ;;  %v1720_v41 = vrot.slane %v5674_v35, %v7070_v4 }
  0x9f   :  { %1649 = vrot.lane.b32.xlu1 %v1636_v55, %s6882_s23  ;;  %1506 = vrot.lane.b32.xlu0 %v1497_v31, %s6881_s22 }
  0xa3   :  { %1653 = vrot.lane.b32.xlu1 %v1644_v12, %s6882_s23  ;;  %1651 = vrot.lane.b32.xlu0 %v1640_v60, %s6882_s23  ;;  %v1716_v12 = vrot.slane %v5674_v35, %v7074_v6 }
  0xa7   :  { %1327 = vrot.lane.b32.xlu1 %v1320_v10, %s6880_s18  ;;  %1180 = vrot.lane.b32.xlu0 %v1173_v11, %s6879_s16  ;;  %v1724_v11 = vrot.slane %v5674_v35, %v7117_v26 }
  0xab   :  { %1580 = vrot.lane.b32.xlu1 %v1569_v25, %s6883_s26  ;;  %1578 = vrot.lane.b32.xlu0 %v1565_v27, %s6883_s26 }
  0xaf   :  { %1508 = vrot.lane.b32.xlu1 %v1501_v32, %s6881_s22  ;;  %1582 = vrot.lane.b32.xlu0 %v1573_v34, %s6883_s26 }
  0xb1   :  { %v7315_v55 = vpop.permute.xlu1 %260  ;;  %v257_v31 = vpop.permute.xlu0 %256 }
  0xb3   :  { %1655 = vrot.lane.b32.xlu0 %v1648_v36, %s6882_s23  ;;  %1584 = vrot.lane.b32.xlu1 %v1577_v9, %s6883_s26 }
  0xb5   :  { %v410_v60 = vpop.permute.xlu1 %409  ;;  %v259_v10 = vpop.permute.xlu0 %258 }
  0xb6   :  { %v265_v27 = vsel %vm264_vm0, %v257_v31, %v259_v10  ;;  %v266_v35 = vsel %vm264_vm0, %v259_v10, %v7315_v55 }
  0xb7   :  { %1725 = vrot.lane.b32.xlu0 %v1712_v33, %s6884_s28  ;;  %1727 = vrot.lane.b32.xlu1 %v1716_v12, %s6884_s28  ;;  %v274_v33 = vmul.f32 %v265_v27, %v7149_v44  ;;  %v275_v16 = vmul.f32 %v266_v35, %v7175_v57 }
  0xb9   :  { %v7325_v20 = vpop.permute.xlu1 %413  ;;  %v412_v25 = vpop.permute.xlu0 %411  ;;  %v284_v18 = vrot.slane %v274_v33, 4  ;;  %v285_v27 = vrot.slane %v275_v16, 4 }
  0xbb   :  { %1729 = vrot.lane.b32.xlu0 %v1720_v41, %s6884_s28  ;;  %1731 = vrot.lane.b32.xlu1 %v1724_v11, %s6884_s28 }
  0xbd   :  { %v185_v32 = vpop.permute.xlu1 %184  ;;  %v183_v34 = vpop.permute.xlu0 %182 }
  0xbe   :  { %v191_v36 = vsel %vm190_vm1, %v183_v34, %v185_v32 }
  0xbf   :  { %v200_v9 = vmul.f32 %v191_v36, %v7147_v43  ;;  %v418_v43 = vsel %vm417_vm2, %v410_v60, %v412_v25 }
  0xc1   :  { %v336_v12 = vpop.permute.xlu1 %335  ;;  %v187_v17 = vpop.permute.xlu0 %186  ;;  %211 = vrot.lane.b32.xlu0 %v200_v9, %s6884_s28 }
  0xc2   :  { %v192_v41 = vsel %vm190_vm1, %v185_v32, %v187_v17  ;;  %v427_v32 = vmul.f32 %v418_v43, %v7165_v52 }
  0xc3   :  { %v201_v11 = vmul.f32 %v192_v41, %v7173_v56  ;;  %v419_v56 = vsel %vm417_vm2, %v412_v25, %v7325_v20 }
  0xc4   :  { %v437_v41 = vrot.slane %v427_v32, 4  ;;  %v428_v16 = vmul.f32 %v419_v56, %v7186_v63  ;;  %v352_v32 = vmul.f32 %v336_v12, %v313_v15 }
  0xc5   :  { %v340_v36 = vpop.permute.xlu1 %339  ;;  %v338_v44 = vpop.permute.xlu0 %337  ;;  %213 = vrot.lane.b32.xlu1 %v201_v11, %s6884_s28  ;;  %290 = vrot.lane.b32.xlu0 %v284_v18, %s6882_s23  ;;  %v234_v11 = vld [vmem:[#allocation2] sm:$0xf] }
  0xc6   :  { %v344_v10 = vsel %vm343_vm3, %v336_v12, %v338_v44  ;;  %v345_v57 = vsel %vm343_vm3, %v338_v44, %v340_v36  ;;  %v273_v25 = vmul.f32 %v257_v31, %v234_v11  ;;  %v438_v44 = vrot.slane %v428_v16, 4 }
  0xc7   :  { %v353_v9 = vmul.f32 %v344_v10, %v7159_v49  ;;  %v354_v18 = vmul.f32 %v345_v57, %v7177_v58  ;;  %v160_v49 = vld [vmem:[#allocation2] sm:$0xf] }
  0xc8   :  { %v199_v43 = vmul.f32 %v183_v34, %v160_v49  ;;  %v283_v56 = vrot.slane %v273_v25, 4  ;;  %v7375_v25 = vld [vmem:[%s7052_s4 + $0x4] ss:$8 sm:$0xf] }
  0xc9   :  { %v416_v33 = vpop.permute.xlu1 %415  ;;  %v263_v35 = vpop.permute.xlu0 %262  ;;  %292 = vrot.lane.b32.xlu1 %v285_v27, %s6882_s23  ;;  %364 = vrot.lane.b32.xlu0 %v353_v9, %s6883_s26  ;;  %v387_v27 = vld [vmem:[#allocation2] sm:$0xf] }
  0xca   :  { %v426_v63 = vmul.f32 %v410_v60, %v387_v27  ;;  %v267_v34 = vsel %vm264_vm0, %v7315_v55, %v263_v35  ;;  %v277_v12 = vmul.f32 %v263_v35, %v7246_v38 }
  0xcb   :  { %v276_v49 = vmul.f32 %v267_v34, %v7208_v13 }
  0xcc   :  { %v436_v31 = vrot.slane %v426_v63, 4  ;;  %v287_v55 = vrot.slane %v277_v12, 4  ;;  %v430_v63 = vmul.f32 %v416_v33, %v7244_v37 }
  0xcd   :  { %v526_v10 = vpop.permute.xlu1 %525  ;;  %v7352_v52 = vpop.permute.xlu0 %523  ;;  %366 = vrot.lane.b32.xlu1 %v354_v18, %s6883_s26  ;;  %443 = vrot.lane.b32.xlu0 %v437_v41, %s6881_s22 }
  0xce   :  { %v440_v37 = vrot.slane %v430_v63, 4  ;;  %v486_v63 = vrot.slane %v7375_v25, %v7117_v26 }
  0xd1   :  { %v7356_v9 = vpop.permute.xlu1 %672  ;;  %v7358_v58 = vpop.permute.xlu0 %527  ;;  %445 = vrot.lane.b32.xlu1 %v438_v44, %s6881_s22  ;;  %209 = vrot.lane.b32.xlu0 %v199_v43, %s6884_s28 }
  0xd5   :  { %v7362_v57 = vpop.permute.xlu1 %676  ;;  %v675_v18 = vpop.permute.xlu0 %674  ;;  %288 = vrot.lane.b32.xlu1 %v283_v56, %s6882_s23  ;;  %362 = vrot.lane.b32.xlu0 %v352_v32, %s6883_s26  ;;  %v532_v56 = vsel %vm451_vm4, %v526_v10, %v7358_v58 }
  0xd9   :  { %v342_v41 = vpop.permute.xlu1 %341  ;;  %v189_v16 = vpop.permute.xlu0 %188  ;;  %441 = vrot.lane.b32.xlu1 %v436_v31, %s6881_s22 }
  0xda   :  { %v193_v60 = vsel %vm190_vm1, %v187_v17, %v189_v16  ;;  %v203_v15 = vmul.f32 %v189_v16, %v7250_v40  ;;  %v478_v17 = vrot.slane %v7375_v25, %v7074_v6  ;;  %v286_v40 = vrot.slane %v276_v49, 4 }
  0xdb   :  { %v202_v11 = vmul.f32 %v193_v60, %v7217_v22  ;;  %v420_v22 = vsel %vm417_vm2, %v7325_v20, %v416_v33  ;;  %v346_v13 = vsel %vm343_vm3, %v340_v36, %v342_v41  ;;  %v356_v32 = vmul.f32 %v342_v41, %v7248_v39 }
  0xdc   :  { %v492_v38 = vmul.f32 %v478_v17, %v7194_v3  ;;  %v355_v3 = vmul.f32 %v346_v13, %v7227_v28  ;;  %v429_v20 = vmul.f32 %v420_v22, %v7210_v14  ;;  %v531_v36 = vsel %vm451_vm4, %v7352_v52, %v526_v10 }
  0xdd   :  { %v603_v43 = vpop.permute.xlu1 %602  ;;  %v7377_v44 = vpop.permute.xlu0 %600  ;;  %217 = vrot.lane.b32.xlu1 %v203_v15, %s6884_s28  ;;  %215 = vrot.lane.b32.xlu0 %v202_v11, %s6884_s28  ;;  %v541_v28 = vmul.f32 %v532_v56, %v7212_v19  ;;  %v540_v14 = vmul.f32 %v531_v36, %v7188_v0  ;;  %v474_v10 = vrot.slane %v7375_v25, %v7072_v5 }
  0xde   :  { %496 = vst [vmem:[#allocation3 + $0x48] sm:$0xf] %v492_v38  ;;  %v439_v39 = vrot.slane %v429_v20, 4  ;;  %v681_v16 = vsel %vm298_vm5, %v675_v18, %v7362_v57  ;;  %v680_v15 = vsel %vm298_vm5, %v7356_v9, %v675_v18  ;;  %v608_v12 = vsel %vm372_vm6, %v7377_v44, %v603_v43  ;;  %v505_v20 = vld [vmem:[#allocation2 + $0x28] sm:$0xf] }
  0xdf   :  { %v551_v60 = vrot.slane %v541_v28, 4  ;;  %v550_v19 = vrot.slane %v540_v14, 4  ;;  %v491_v0 = vmul.f32 %v474_v10, %v7151_v45  ;;  %v482_v45 = vrot.slane %v7375_v25, %v7070_v4  ;;  %v582_v14 = vld [vmem:[#allocation2 + $0x28] sm:$0xf] }
  0xe0   :  { %v690_v18 = vmul.f32 %v681_v16, %v7219_v23  ;;  %v539_v23 = vmul.f32 %v7352_v52, %v7161_v50  ;;  %v688_v50 = vmul.f32 %v7356_v9, %v7167_v53  ;;  %v616_v52 = vmul.f32 %v7377_v44, %v7169_v54  ;;  %v654_v10 = vld [vmem:[#allocation2 + $0x28] sm:$0xf] }
  0xe1   :  { %v7387_v35 = vpop.permute.xlu1 %529  ;;  %v7389_v27 = vpop.permute.xlu0 %604  ;;  %296 = vrot.lane.b32.xlu1 %v287_v55, %s6882_s23  ;;  %294 = vrot.lane.b32.xlu0 %v286_v40, %s6882_s23  ;;  %495 = vst [vmem:[#allocation3 + $0x40] sm:$0xf] %v491_v0  ;;  %v617_v40 = vmul.f32 %v608_v12, %v7192_v2  ;;  %v493_v38 = vmul.f32 %v482_v45, %v7215_v21 }
  0xe2   :  { %v609_v11 = vsel %vm372_vm6, %v603_v43, %v7389_v27  ;;  %v689_v43 = vmul.f32 %v680_v15, %v7196_v7  ;;  %v700_v2 = vrot.slane %v690_v18, 4  ;;  %v494_v7 = vmul.f32 %v486_v63, %v7267_v8  ;;  %v1153_v63 = vld [vmem:[#allocation2 + $0x8] sm:$0xf] }
  0xe3   :  { %v618_v55 = vmul.f32 %v609_v11, %v7231_v30  ;;  %497 = vst [vmem:[#allocation3 + $0x50] sm:$0xf] %v493_v38  ;;  %v533_v21 = vsel %vm451_vm4, %v7358_v58, %v7387_v35  ;;  %v549_v8 = vrot.slane %v539_v23, 4  ;;  %v543_v56 = vmul.f32 %v7387_v35, %v505_v20 }
  0xe4   :  { %v699_v30 = vrot.slane %v689_v43, 4  ;;  %498 = vst [vmem:[#allocation3 + $0x58] sm:$0xf] %v494_v7  ;;  %v542_v25 = vmul.f32 %v533_v21, %v7253_v42 }
  0xe5   :  { %v7401_v31 = vpop.permute.xlu1 %606  ;;  %v7403_v34 = vpop.permute.xlu0 %678  ;;  %370 = vrot.lane.b32.xlu1 %v356_v32, %s6883_s26  ;;  %368 = vrot.lane.b32.xlu0 %v355_v3, %s6883_s26  ;;  %v553_v35 = vrot.slane %v543_v56, 4  ;;  %v1371_v56 = vld [vmem:[#allocation2 + $0x8] sm:$0xf] }
  0xe6   :  { %v610_v53 = vsel %vm372_vm6, %v7389_v27, %v7401_v31  ;;  %v682_v54 = vsel %vm298_vm5, %v7362_v57, %v7403_v34  ;;  %v620_v57 = vmul.f32 %v7401_v31, %v582_v14 }
  0xe7   :  { %v619_v44 = vmul.f32 %v610_v53, %v7265_v62  ;;  %v691_v28 = vmul.f32 %v682_v54, %v7255_v47  ;;  %v1300_v54 = vld [vmem:[#allocation2 + $0x8] sm:$0xf] }
  0xe9   :  { %v7409_v33 = vpop.permute.xlu1 %751  ;;  %v7411_v41 = vpop.permute.xlu0 %749  ;;  %449 = vrot.lane.b32.xlu1 %v440_v37, %s6881_s22  ;;  %447 = vrot.lane.b32.xlu0 %v439_v39, %s6881_s22  ;;  %v552_v37 = vrot.slane %v542_v25, 4  ;;  %v698_v39 = vrot.slane %v688_v50, 4 }
  0xea   :  { %v757_v47 = vsel %vm219_vm7, %v7411_v41, %v7409_v33  ;;  %v765_v45 = vmul.f32 %v7411_v41, %v7153_v46  ;;  %v1224_v46 = vld [vmem:[#allocation2 + $0x8] sm:$0xf]  ;;  %v1225_v41 = vld [vmem:[#allocation2 + $0x10] sm:$0xf] }
  0xeb   :  { %v766_v12 = vmul.f32 %v757_v47, %v7179_v59 }
  0xed   :  { %v7426_v49 = vpop.permute.xlu1 %755  ;;  %v7428_v17 = vpop.permute.xlu0 %753  ;;  %558 = vrot.lane.b32.xlu1 %v551_v60, %s6878_s15  ;;  %556 = vrot.lane.b32.xlu0 %v550_v19, %s6878_s15  ;;  %v692_v60 = vmul.f32 %v7403_v34, %v654_v10  ;;  %v701_v19 = vrot.slane %v691_v28, 4 }
  0xee   :  { %v758_v31 = vsel %vm219_vm7, %v7409_v33, %v7428_v17  ;;  %v759_v59 = vsel %vm219_vm7, %v7428_v17, %v7426_v49 }
  0xef   :  { %v702_v15 = vrot.slane %v692_v60, 4  ;;  %v767_v18 = vmul.f32 %v758_v31, %v7229_v29  ;;  %v768_v38 = vmul.f32 %v759_v59, %v7263_v61 }
  0xf1   :  { %v7439_v22 = vpop.permute.xlu1 %1247  ;;  %v7441_v13 = vpop.permute.xlu0 %1245  ;;  %630 = vrot.lane.b32.xlu1 %v618_v55, %s6880_s18  ;;  %628 = vrot.lane.b32.xlu0 %v617_v40, %s6880_s18  ;;  %v731_v55 = vld [vmem:[#allocation2 + $0x28] sm:$0xf] }
  0xf2   :  { %v769_v43 = vmul.f32 %v7426_v49, %v731_v55  ;;  %v1253_v29 = vsel %vm264_vm0, %v7441_v13, %v7439_v22 }
  0xf3   :  { %v1262_v7 = vmul.f32 %v1253_v29, %v1224_v46  ;;  %v1299_v29 = vld [vmem:[#allocation2] sm:$0xf] }
  0xf5   :  { %v7453_v32 = vpop.permute.xlu1 %1392  ;;  %v7455_v3 = vpop.permute.xlu0 %1249  ;;  %707 = vrot.lane.b32.xlu1 %v700_v2, %s6877_s0  ;;  %705 = vrot.lane.b32.xlu0 %v699_v30, %s6877_s0  ;;  %v1154_v2 = vld [vmem:[#allocation2 + $0x10] sm:$0xf]  ;;  %v1272_v25 = vrot.slane %v1262_v7, 4 }
  0xf6   :  { %v1254_v17 = vsel %vm264_vm0, %v7439_v22, %v7455_v3 }
  0xf7   :  { %v1263_v21 = vmul.f32 %v1254_v17, %v1225_v41 }
  0xf9   :  { %v7464_v58 = vpop.permute.xlu1 %1396  ;;  %v7466_v36 = vpop.permute.xlu0 %1394  ;;  %626 = vrot.lane.b32.xlu1 %v616_v52, %s6880_s18  ;;  %554 = vrot.lane.b32.xlu0 %v549_v8, %s6878_s15  ;;  %v1273_v20 = vrot.slane %v1263_v21, 4 }
  0xfa   :  { %v1401_v53 = vsel %vm417_vm2, %v7466_v36, %v7464_v58 }
  0xfd   :  { %v1177_v42 = vpop.permute.xlu1 %1176  ;;  %v7477_v9 = vpop.permute.xlu0 %1174  ;;  %560 = vrot.lane.b32.xlu1 %v552_v37, %s6878_s15  ;;  %703 = vrot.lane.b32.xlu0 %v698_v39, %s6877_s0  ;;  %v1372_v37 = vld [vmem:[#allocation2 + $0x10] sm:$0xf]  ;;  %v1400_v39 = vsel %vm417_vm2, %v7453_v32, %v7466_v36  ;;  %v1223_v36 = vld [vmem:[#allocation2] sm:$0xf] }
  0xfe   :  { %v1182_v23 = vsel %vm190_vm1, %v7477_v9, %v1177_v42  ;;  %v1409_v10 = vmul.f32 %v1400_v39, %v1371_v56  ;;  %v1374_v39 = vld [vmem:[#allocation2 + $0x20] sm:$0xf] }
  0xff   :  { %v1191_v50 = vmul.f32 %v1182_v23, %v1153_v63  ;;  %v1226_v63 = vld [vmem:[#allocation2 + $0x18] sm:$0xf] }
 0x101   :  { %v7483_v27 = vpop.permute.xlu1 %1321  ;;  %v7485_v16 = vpop.permute.xlu0 %1178  ;;  %632 = vrot.lane.b32.xlu1 %v619_v44, %s6880_s18  ;;  %562 = vrot.lane.b32.xlu0 %v553_v35, %s6878_s15 }
 0x102   :  { %v1183_v49 = vsel %vm190_vm1, %v1177_v42, %v7485_v16  ;;  %v1301_v42 = vld [vmem:[#allocation2 + $0x10] sm:$0xf]  ;;  %v1337_v17 = vmul.f32 %v7483_v27, %v1299_v29 }
 0x103   :  { %v1192_v22 = vmul.f32 %v1183_v49, %v1154_v2  ;;  %v1227_v2 = vld [vmem:[#allocation2 + $0x20] sm:$0xf] }
 0x104   :  { %v1156_v49 = vld [vmem:[#allocation2 + $0x20] sm:$0xf] }
 0x105   :  { %v7494_v62 = vpop.permute.xlu1 %1325  ;;  %v1324_v0 = vpop.permute.xlu0 %1323  ;;  %709 = vrot.lane.b32.xlu1 %v701_v19, %s6877_s0  ;;  %634 = vrot.lane.b32.xlu0 %v620_v57, %s6880_s18  ;;  %v1410_v57 = vmul.f32 %v1401_v53, %v1372_v37 }
 0x106   :  { %v1329_v44 = vsel %vm343_vm3, %v7483_v27, %v1324_v0  ;;  %v1330_v35 = vsel %vm343_vm3, %v1324_v0, %v7494_v62  ;;  %v1261_v0 = vmul.f32 %v7441_v13, %v1223_v36  ;;  %v1482_v36 = vld [vmem:[#allocation2 + $0x18] sm:$0xf] }
 0x107   :  { %v1338_v60 = vmul.f32 %v1329_v44, %v1300_v54  ;;  %v1339_v19 = vmul.f32 %v1330_v35, %v1301_v42  ;;  %v1420_v31 = vrot.slane %v1410_v57, 4  ;;  %v1302_v54 = vld [vmem:[#allocation2 + $0x18] sm:$0xf] }
 0x108   :  { %v1271_v59 = vrot.slane %v1261_v0, 4 }
 0x109   :  { %v7502_v34 = vpop.permute.xlu1 %1398  ;;  %v7504_v11 = vpop.permute.xlu0 %1251  ;;  %777 = vrot.lane.b32.xlu1 %v766_v12, %s6879_s16  ;;  %711 = vrot.lane.b32.xlu0 %v702_v15, %s6877_s0  ;;  %v1419_v12 = vrot.slane %v1409_v10, 4 }
 0x10a   :  { %v1402_v53 = vsel %vm417_vm2, %v7464_v58, %v7502_v34  ;;  %v1481_v58 = vld [vmem:[#allocation2 + $0x10] sm:$0xf] }
 0x10d   :  { %v7514_v40 = vpop.permute.xlu1 %1504  ;;  %v7516_v33 = vpop.permute.xlu0 %1502  ;;  %775 = vrot.lane.b32.xlu1 %v765_v45, %s6879_s16  ;;  %779 = vrot.lane.b32.xlu0 %v767_v18, %s6879_s16  ;;  %v1370_v45 = vld [vmem:[#allocation2] sm:$0xf] }
 0x10e   :  { %v1152_v18 = vld [vmem:[#allocation2] sm:$0xf] }
 0x111   :  { %v7532_v30 = vpop.permute.xlu1 %1649  ;;  %v7534_v61 = vpop.permute.xlu0 %1506  ;;  %783 = vrot.lane.b32.xlu1 %v769_v43, %s6879_s16  ;;  %781 = vrot.lane.b32.xlu0 %v768_v38, %s6879_s16  ;;  %v1408_v43 = vmul.f32 %v7453_v32, %v1370_v45  ;;  %v1190_v38 = vmul.f32 %v7477_v9, %v1152_v18  ;;  %v1255_v32 = vsel %vm264_vm0, %v7455_v3, %v7504_v11  ;;  %v1155_v9 = vld [vmem:[#allocation2 + $0x18] sm:$0xf] }
 0x112   :  { %v1264_v27 = vmul.f32 %v1255_v32, %v1226_v63 }
 0x113   :  { %v1418_v13 = vrot.slane %v1408_v43, 4  ;;  %v1628_v43 = vld [vmem:[#allocation2 + $0x10] sm:$0xf] }
 0x114   :  { %v1274_v56 = vrot.slane %v1264_v27, 4 }
 0x115   :  { %v7538_v52 = vpop.permute.xlu1 %1653  ;;  %v7540_v8 = vpop.permute.xlu0 %1651  ;;  %1204 = vrot.lane.b32.xlu1 %v1192_v22, %s6884_s28  ;;  %1202 = vrot.lane.b32.xlu0 %v1191_v50, %s6884_s28  ;;  %v1265_v50 = vmul.f32 %v7504_v11, %v1227_v2  ;;  %v1303_v11 = vld [vmem:[#allocation2 + $0x20] sm:$0xf]  ;;  %v1557_v2 = vld [vmem:[#allocation2 + $0x10] sm:$0xf] }
 0x116   :  { %v1658_v63 = vsel %vm298_vm5, %v7540_v8, %v7538_v52 }
 0x117   :  { %v1275_v37 = vrot.slane %v1265_v50, 4 }
 0x119   :  { %v7554_v28 = vpop.permute.xlu1 %1327  ;;  %v1181_v14 = vpop.permute.xlu0 %1180  ;;  %1280 = vrot.lane.b32.xlu1 %v1273_v20, %s6882_s23  ;;  %1278 = vrot.lane.b32.xlu0 %v1272_v25, %s6882_s23 }
 0x11a   :  { %v1184_v7 = vsel %vm190_vm1, %v7485_v16, %v1181_v14  ;;  %v1194_v25 = vmul.f32 %v1181_v14, %v1156_v49  ;;  %v1373_v16 = vld [vmem:[#allocation2 + $0x18] sm:$0xf]  ;;  %v1331_v42 = vsel %vm343_vm3, %v7494_v62, %v7554_v28  ;;  %v1412_v14 = vmul.f32 %v7502_v34, %v1374_v39 }
 0x11b   :  { %v1193_v22 = vmul.f32 %v1184_v7, %v1155_v9  ;;  %v1411_v35 = vmul.f32 %v1402_v53, %v1373_v16  ;;  %v1340_v10 = vmul.f32 %v1331_v42, %v1302_v54  ;;  %v1341_v57 = vmul.f32 %v7554_v28, %v1303_v11  ;;  %v1558_v9 = vld [vmem:[#allocation2 + $0x18] sm:$0xf]  ;;  %v1627_v42 = vld [vmem:[#allocation2 + $0x8] sm:$0xf] }
 0x11c   :  { %v1511_v62 = vsel %vm451_vm4, %v7514_v40, %v7534_v61  ;;  %v1422_v34 = vrot.slane %v1412_v14, 4  ;;  %v1483_v14 = vld [vmem:[#allocation2 + $0x20] sm:$0xf] }
 0x11d   :  { %v7558_v47 = vpop.permute.xlu1 %1580  ;;  %v7560_v15 = vpop.permute.xlu0 %1578  ;;  %1351 = vrot.lane.b32.xlu1 %v1339_v19, %s6883_s26  ;;  %1349 = vrot.lane.b32.xlu0 %v1338_v60, %s6883_s26  ;;  %v1510_v19 = vsel %vm451_vm4, %v7516_v33, %v7514_v40  ;;  %v1421_v0 = vrot.slane %v1411_v35, 4  ;;  %v1556_v35 = vld [vmem:[#allocation2 + $0x8] sm:$0xf] }
 0x11e   :  { %v1586_v32 = vsel %vm372_vm6, %v7560_v15, %v7558_v47 }
 0x11f   :  { %v1595_v50 = vmul.f32 %v1586_v32, %v1557_v2 }
 0x121   :  { %v7565_v55 = vpop.permute.xlu0 %1582  ;;  %1427 = vrot.lane.b32.xlu1 %v1420_v31, %s6881_s22  ;;  %1425 = vrot.lane.b32.xlu0 %v1419_v12, %s6881_s22  ;;  %v7571_v46 = vpop.permute.xlu1 %1508  ;;  %v1519_v12 = vmul.f32 %v1510_v19, %v1481_v58  ;;  %v1520_v31 = vmul.f32 %v1511_v62, %v1482_v36  ;;  %v1665_v19 = vmul.f32 %v7532_v30, %v1627_v42 }
 0x122   :  { %v1587_v49 = vsel %vm372_vm6, %v7558_v47, %v7565_v55  ;;  %v1594_v36 = vmul.f32 %v7560_v15, %v1556_v35 }
 0x123   :  { %v1529_v40 = vrot.slane %v1519_v12, 4 }
 0x125   :  { %v7573_v41 = vpop.permute.xlu0 %1655  ;;  %1276 = vrot.lane.b32.xlu1 %v1271_v59, %s6882_s23  ;;  %1200 = vrot.lane.b32.xlu0 %v1190_v38, %s6884_s28  ;;  %v7578_v23 = vpop.permute.xlu1 %1584  ;;  %v1530_v59 = vrot.slane %v1520_v31, 4  ;;  %v1657_v38 = vsel %vm298_vm5, %v7532_v30, %v7540_v8 }
 0x126   :  { %v1666_v27 = vmul.f32 %v1657_v38, %v1628_v43  ;;  %v1559_v43 = vld [vmem:[#allocation2 + $0x20] sm:$0xf] }
 0x128   :  { %v1676_v39 = vrot.slane %v1666_v27, 4 }
 0x129   :  { %1423 = vrot.lane.b32.xlu1 %v1418_v13, %s6881_s22  ;;  %1347 = vrot.lane.b32.xlu0 %v1337_v17, %s6883_s26  ;;  %v7587_v21 = vpop.permute.xlu0 %1725  ;;  %v7590_v20 = vpop.permute.xlu1 %1727  ;;  %v1629_v17 = vld [vmem:[#allocation2 + $0x18] sm:$0xf] }
 0x12a   :  { %v1667_v8 = vmul.f32 %v1658_v63, %v1629_v17 }
 0x12c   :  { %v1677_v53 = vrot.slane %v1667_v8, 4 }
 0x12d   :  { %1208 = vrot.lane.b32.xlu1 %v1194_v25, %s6884_s28  ;;  %1206 = vrot.lane.b32.xlu0 %v1193_v22, %s6884_s28  ;;  %v7594_v3 = vpop.permute.xlu0 %1729  ;;  %v7604_v44 = vpop.permute.xlu1 %1731  ;;  %v1596_v22 = vmul.f32 %v1587_v49, %v1558_v9  ;;  %v1631_v49 = vld [vmem:[#allocation2 + $0x28] sm:$0xf] }
 0x12e   :  { %v1669_v8 = vmul.f32 %v7573_v41, %v1631_v49 }
 0x131   :  { %1284 = vrot.lane.b32.xlu1 %v1275_v37, %s6882_s23  ;;  %1282 = vrot.lane.b32.xlu0 %v1274_v56, %s6882_s23  ;;  %v1480_v56 = vld [vmem:[#allocation2 + $0x8] sm:$0xf] }
 0x132   :  { %v1518_v47 = vmul.f32 %v7516_v33, %v1480_v56 }
 0x133   :  { %v212_v60 = vpop.permute.xlu0 %211 }
 0x134   :  { %v1528_v33 = vrot.slane %v1518_v47, 4 }
 0x135   :  { %1355 = vrot.lane.b32.xlu1 %v1341_v57, %s6883_s26  ;;  %1353 = vrot.lane.b32.xlu0 %v1340_v10, %s6883_s26  ;;  %v1512_v10 = vsel %vm451_vm4, %v7534_v61, %v7571_v46  ;;  %v1484_v61 = vld [vmem:[#allocation2 + $0x28] sm:$0xf] }
 0x136   :  { %v1521_v62 = vmul.f32 %v1512_v10, %v1483_v14  ;;  %v1703_v10 = vld [vmem:[#allocation2 + $0x8] sm:$0xf] }
 0x137   :  { %v7616_v28 = vpop.permute.xlu1 %213  ;;  %v291_v45 = vpop.permute.xlu0 %290 }
 0x138   :  { %v221_v18 = vsel %vm219_vm7, %v212_v60, %v7616_v28  ;;  %v1531_v30 = vrot.slane %v1521_v62, 4 }
 0x139   :  { %229 = vst [vmem:[#allocation3 + $0x8] sm:$0xf] %v221_v18  ;;  %1431 = vrot.lane.b32.xlu1 %v1422_v34, %s6881_s22  ;;  %1429 = vrot.lane.b32.xlu0 %v1421_v0, %s6881_s22  ;;  %v1522_v18 = vmul.f32 %v7571_v46, %v1484_v61  ;;  %v1707_v61 = vld [vmem:[#allocation2 + $0x28] sm:$0xf] }
 0x13b   :  { %v7625_v29 = vpop.permute.xlu1 %292  ;;  %v365_v13 = vpop.permute.xlu0 %364  ;;  %v1532_v63 = vrot.slane %v1522_v18, 4 }
 0x13c   :  { %v300_v7 = vsel %vm298_vm5, %v291_v45, %v7625_v29 }
 0x13d   :  { %308 = vst [vmem:[#allocation3 + $0x8] sm:$0xf0] %v300_v7  ;;  %1537 = vrot.lane.b32.xlu1 %v1530_v59, %s6878_s15  ;;  %1535 = vrot.lane.b32.xlu0 %v1529_v40, %s6878_s15  ;;  %v1630_v40 = vld [vmem:[#allocation2 + $0x20] sm:$0xf]  ;;  %v1659_v59 = vsel %vm298_vm5, %v7538_v52, %v7573_v41 }
 0x13e   :  { %v1668_v2 = vmul.f32 %v1659_v59, %v1630_v40  ;;  %v1447_v40 = vld [vmem:[#allocation2 + $0x10] sm:$0xf] }
 0x13f   :  { %v7640_v25 = vpop.permute.xlu1 %366  ;;  %v444_v16 = vpop.permute.xlu0 %443 }
 0x140   :  { %v374_v37 = vsel %vm372_vm6, %v365_v13, %v7640_v25 }
 0x141   :  { %382 = vst [vmem:[#allocation3 + $0x28] sm:$0xf] %v374_v37  ;;  %1608 = vrot.lane.b32.xlu1 %v1596_v22, %s6880_s18  ;;  %1606 = vrot.lane.b32.xlu0 %v1595_v50, %s6880_s18  ;;  %v1678_v50 = vrot.slane %v1668_v2, 4  ;;  %v1704_v37 = vld [vmem:[#allocation2 + $0x10] sm:$0xf] }
 0x143   :  { %v7647_v54 = vpop.permute.xlu1 %445  ;;  %v210_v11 = vpop.permute.xlu0 %209 }
 0x144   :  { %v453_v57 = vsel %vm451_vm4, %v444_v16, %v7647_v54  ;;  %v220_v58 = vsel %vm219_vm7, %v210_v11, %v212_v60  ;;  %v1675_v60 = vrot.slane %v1665_v19, 4  ;;  %v1741_v19 = vmul.f32 %v7587_v21, %v1703_v10 }
 0x145   :  { %461 = vst [vmem:[#allocation3 + $0x28] sm:$0xf0] %v453_v57  ;;  %228 = vst [vmem:[#allocation3] sm:$0xf] %v220_v58  ;;  %1684 = vrot.lane.b32.xlu1 %v1677_v53, %s6877_s0  ;;  %1682 = vrot.lane.b32.xlu0 %v1676_v39, %s6877_s0  ;;  %v1734_v57 = vsel %vm219_vm7, %v7590_v20, %v7594_v3 }
 0x147   :  { %v289_v0 = vpop.permute.xlu1 %288  ;;  %v363_v34 = vpop.permute.xlu0 %362 }
 0x148   :  { %v299_v12 = vsel %vm298_vm5, %v289_v0, %v291_v45  ;;  %v373_v31 = vsel %vm372_vm6, %v363_v34, %v365_v13  ;;  %v1588_v45 = vsel %vm372_vm6, %v7565_v55, %v7578_v23  ;;  %v798_v13 = vld [vmem:[#allocation3 + $0x8] sm:$0xff]  ;;  %v1560_v55 = vld [vmem:[#allocation2 + $0x28] sm:$0xf]  ;;  %v1706_v34 = vld [vmem:[#allocation2 + $0x20] sm:$0xf] }
 0x149   :  { %307 = vst [vmem:[#allocation3] sm:$0xf0] %v299_v12  ;;  %381 = vst [vmem:[#allocation3 + $0x20] sm:$0xf] %v373_v31  ;;  %1604 = vrot.lane.b32.xlu1 %v1594_v36, %s6880_s18  ;;  %1533 = vrot.lane.b32.xlu0 %v1528_v33, %s6878_s15  ;;  %v1597_v32 = vmul.f32 %v1588_v45, %v1559_v43  ;;  %v1598_v22 = vmul.f32 %v7578_v23, %v1560_v55  ;;  %v1679_v23 = vrot.slane %v1669_v8, 4 }
 0x14a   :  { %v1958_v45 = vld [vmem:[%s6947_s19] sm:$0x3]  ;;  %s9233_s19 = sld [smem:[#allocation27_spill]] }
 0x14b   :  { %v442_v15 = vpop.permute.xlu1 %441 }
 0x14c   :  { %v452_v38 = vsel %vm451_vm4, %v442_v15, %v444_v16  ;;  %v802_v17 = vld [vmem:[#allocation3 + $0x28] sm:$0xff] }
 0x14d   :  { %460 = vst [vmem:[#allocation3 + $0x20] sm:$0xf0] %v452_v38  ;;  %1539 = vrot.lane.b32.xlu1 %v1531_v30, %s6878_s15  ;;  %1680 = vrot.lane.b32.xlu0 %v1675_v60, %s6877_s0  ;;  %v7673_v46 = vpack.c.bf16 %v802_v17, %v798_v13  ;;  %v1745_v60 = vmul.f32 %v7604_v44, %v1707_v61 }
 0x14f   :  { %5872 = vmatprep.subr.bf16.mxu0 %v7673_v46  ;;  %v218_v52 = vpop.permute.xlu1 %217  ;;  %v216_v9 = vpop.permute.xlu0 %215 }
 0x150   :  { %v222_v7 = vsel %vm219_vm7, %v7616_v28, %v216_v9  ;;  %v223_v27 = vsel %vm219_vm7, %v216_v9, %v218_v52  ;;  %v1733_v28 = vsel %vm219_vm7, %v7587_v21, %v7590_v20  ;;  %v797_v53 = vld [vmem:[#allocation3] sm:$0xff]  ;;  %v1735_v20 = vsel %vm219_vm7, %v7594_v3, %v7604_v44 }
 0x151   :  { %230 = vst [vmem:[#allocation3 + $0x10] sm:$0xf] %v222_v7  ;;  %231 = vst [vmem:[#allocation3 + $0x18] sm:$0xf] %v223_v27  ;;  %1610 = vrot.lane.b32.xlu1 %v1597_v32, %s6880_s18  ;;  %1541 = vrot.lane.b32.xlu0 %v1532_v63, %s6878_s15  ;;  %v1742_v42 = vmul.f32 %v1733_v28, %v1704_v37  ;;  %v1744_v31 = vmul.f32 %v1735_v20, %v1706_v34  ;;  %v6885_v63 = vmov 0  }
 0x152   :  { %v7712_v21 = vld [vmem:[%s7052_s4 + $0x4] ss:$8 sm:$0xf]  ;;  %6710 = vset.pattern.permute.xlu0 %v6885_v63  ;;  %6711 = vset.pattern.permute.xlu1 %v6885_v63 }
 0x153   :  { %v297_v16 = vpop.permute.xlu1 %296  ;;  %v295_v56 = vpop.permute.xlu0 %294 }
 0x154   :  { %v301_v47 = vsel %vm298_vm5, %v7625_v29, %v295_v56  ;;  %v302_v39 = vsel %vm298_vm5, %v295_v56, %v297_v16  ;;  %v801_v11 = vld [vmem:[#allocation3 + $0x20] sm:$0xff]  ;;  %v1705_v29 = vld [vmem:[#allocation2 + $0x18] sm:$0xf]  ;;  %v1454_v16 = vrot.slane %v7712_v21, %v7072_v5  ;;  %v1446_v56 = vld [vmem:[#allocation2 + $0x8] sm:$0xf] }
 0x155   :  { %309 = vst [vmem:[#allocation3 + $0x10] sm:$0xf0] %v301_v47  ;;  %310 = vst [vmem:[#allocation3 + $0x18] sm:$0xf0] %v302_v39  ;;  %1686 = vrot.lane.b32.xlu1 %v1678_v50, %s6877_s0  ;;  %1612 = vrot.lane.b32.xlu0 %v1598_v22, %s6880_s18  ;;  %v7691_v41 = vpack.c.bf16 %v801_v11, %v797_v53  ;;  %v1743_v36 = vmul.f32 %v1734_v57, %v1705_v29 }
 0x157   :  { %v371_v35 = vpop.permute.xlu1 %370  ;;  %5874 = vmatpush1.bf16.msra.mxu0 %v7691_v41  ;;  %v369_v14 = vpop.permute.xlu0 %368 }
 0x158   :  { %v375_v58 = vsel %vm372_vm6, %v7640_v25, %v369_v14  ;;  %v376_v33 = vsel %vm372_vm6, %v369_v14, %v371_v35  ;;  %v1448_v35 = vld [vmem:[#allocation2 + $0x18] sm:$0xf] }
 0x159   :  { %383 = vst [vmem:[#allocation3 + $0x30] sm:$0xf] %v375_v58  ;;  %384 = vst [vmem:[#allocation3 + $0x38] sm:$0xf] %v376_v33  ;;  %1753 = vrot.lane.b32.xlu1 %v1742_v42, %s6879_s16  ;;  %1688 = vrot.lane.b32.xlu0 %v1679_v23, %s6877_s0  ;;  %v1471_v23 = vmul.f32 %v1454_v16, %v1446_v56  ;;  %v1462_v42 = vrot.slane %v7712_v21, %v7070_v4 }
 0x15a   :  { %v1466_v33 = vrot.slane %v7712_v21, %v7117_v26 }
 0x15b   :  { %v450_v62 = vpop.permute.xlu1 %449  ;;  %v448_v0 = vpop.permute.xlu0 %447 }
 0x15c   :  { %v454_v25 = vsel %vm451_vm4, %v7647_v54, %v448_v0  ;;  %v455_v12 = vsel %vm451_vm4, %v448_v0, %v450_v62  ;;  %v1458_v54 = vrot.slane %v7712_v21, %v7074_v6  ;;  %v800_v43 = vld [vmem:[#allocation3 + $0x18] sm:$0xff]  ;;  %v799_v13 = vld [vmem:[#allocation3 + $0x10] sm:$0xff] }
 0x15d   :  { %462 = vst [vmem:[#allocation3 + $0x30] sm:$0xf0] %v454_v25  ;;  %463 = vst [vmem:[#allocation3 + $0x38] sm:$0xf0] %v455_v12  ;;  %1751 = vrot.lane.b32.xlu1 %v1741_v19, %s6879_s16  ;;  %1755 = vrot.lane.b32.xlu0 %v1743_v36, %s6879_s16  ;;  %v1473_v19 = vmul.f32 %v1462_v42, %v1448_v35  ;;  %v1449_v36 = vld [vmem:[#allocation2 + $0x20] sm:$0xf] }
 0x15e   :  { %v1472_v52 = vmul.f32 %v1458_v54, %v1447_v40 }
 0x15f   :  { %v559_v18 = vpop.permute.xlu1 %558  ;;  %v557_v30 = vpop.permute.xlu0 %556 }
 0x160   :  { %v565_v3 = vsel %vm417_vm2, %v557_v30, %v559_v18 }
 0x161   :  { %573 = vst [vmem:[#allocation3 + $0x48] sm:$0xf0] %v565_v3  ;;  %1759 = vrot.lane.b32.xlu1 %v1745_v60, %s6879_s16  ;;  %1757 = vrot.lane.b32.xlu0 %v1744_v31, %s6879_s16  ;;  %v1474_v31 = vmul.f32 %v1466_v33, %v1449_v36 }
 0x163   :  { %v631_v15 = vpop.permute.xlu1 %630  ;;  %v629_v59 = vpop.permute.xlu0 %628 }
 0x164   :  { %v637_v38 = vsel %vm343_vm3, %v629_v59, %v631_v15  ;;  %v804_v44 = vld [vmem:[#allocation3 + $0x38] sm:$0xff]  ;;  %v803_v17 = vld [vmem:[#allocation3 + $0x30] sm:$0xff] }
 0x165   :  { %645 = vst [vmem:[#allocation3 + $0x68] sm:$0xf] %v637_v38  ;;  %v7722_v2 = vpack.c.bf16 %v804_v44, %v800_v43  ;;  %v7724_v32 = vpack.c.bf16 %v803_v17, %v799_v13  ;;  %1961 = vperm.xlu0 %6710, %v1958_v45  }
 0x167   :  { %v708_v9 = vpop.permute.xlu1 %707  ;;  %5880 = vmatprep.subr.bf16.mxu1 %v7722_v2  ;;  %v706_v49 = vpop.permute.xlu0 %705 }
 0x168   :  { %v714_v55 = vsel %vm264_vm0, %v706_v49, %v708_v9  ;;  %5882 = vmatpush1.bf16.msra.mxu1 %v7724_v32  ;;  %v806_v7 = vld [vmem:[#allocation3 + $0x48] sm:$0xff] }
 0x169   :  { %722 = vst [vmem:[#allocation3 + $0x68] sm:$0xf0] %v714_v55  ;;  %1476 = vst [vmem:[#allocation3 + $0x48] sm:$0xf] %v1472_v52 }
 0x16b   :  { %v627_v27 = vpop.permute.xlu1 %626  ;;  %v555_v8 = vpop.permute.xlu0 %554 }
 0x16c   :  { %v636_v50 = vsel %vm343_vm3, %v627_v27, %v629_v59  ;;  %v564_v22 = vsel %vm417_vm2, %v555_v8, %v557_v30 }
 0x16d   :  { %644 = vst [vmem:[#allocation3 + $0x60] sm:$0xf] %v636_v50  ;;  %572 = vst [vmem:[#allocation3 + $0x40] sm:$0xf0] %v564_v22 }
 0x16f   :  { %v561_v37 = vpop.permute.xlu1 %560  ;;  %v704_v28 = vpop.permute.xlu0 %703 }
 0x170   :  { %v566_v47 = vsel %vm417_vm2, %v559_v18, %v561_v37  ;;  %v713_v39 = vsel %vm264_vm0, %v704_v28, %v706_v49  ;;  %v810_v53 = vld [vmem:[#allocation3 + $0x68] sm:$0xff]  ;;  %v817_v49 = vld [vmem:[%s6902_s9] sm:$0xf]  ;;  %s9227_s9 = sld [smem:[#allocation18_spill]] }
 0x171   :  { %574 = vst [vmem:[#allocation3 + $0x50] sm:$0xf0] %v566_v47  ;;  %721 = vst [vmem:[#allocation3 + $0x60] sm:$0xf0] %v713_v39  ;;  %v7735_v11 = vpack.c.bf16 %v810_v53, %v806_v7  ;;  %v983_v47 = vld [vmem:[%s6912_s17] sm:$0xf] }
 0x172   :  { %s9228_s17 = sld [smem:[#allocation17_spill]] }
 0x173   :  { %v633_v14 = vpop.permute.xlu1 %632  ;;  %5876 = vmatprep.subr.bf16.mxu0 %v7735_v11  ;;  %v563_v10 = vpop.permute.xlu0 %562 }
 0x174   :  { %v638_v29 = vsel %vm343_vm3, %v631_v15, %v633_v14  ;;  %v567_v57 = vsel %vm417_vm2, %v561_v37, %v563_v10  ;;  %v805_v58 = vld [vmem:[#allocation3 + $0x40] sm:$0xff]  ;;  %v7765_v37 = vld [vmem:[#allocation2] sm:$0xff] }
 0x175   :  { %646 = vst [vmem:[#allocation3 + $0x70] sm:$0xf] %v638_v29  ;;  %575 = vst [vmem:[#allocation3 + $0x58] sm:$0xf0] %v567_v57 }
 0x176   :  { %1475 = vst [vmem:[#allocation3 + $0x40] sm:$0xf] %v1471_v23 }
 0x177   :  { %v710_v62 = vpop.permute.xlu1 %709  ;;  %v635_v0 = vpop.permute.xlu0 %634 }
 0x178   :  { %v715_v34 = vsel %vm264_vm0, %v708_v9, %v710_v62  ;;  %v639_v61 = vsel %vm343_vm3, %v633_v14, %v635_v0  ;;  %v809_v20 = vld [vmem:[#allocation3 + $0x60] sm:$0xff]  ;;  %v807_v25 = vld [vmem:[#allocation3 + $0x50] sm:$0xff] }
 0x179   :  { %723 = vst [vmem:[#allocation3 + $0x70] sm:$0xf0] %v715_v34  ;;  %647 = vst [vmem:[#allocation3 + $0x78] sm:$0xf] %v639_v61  ;;  %v5877_v12 = vpack.c.bf16 %v809_v20, %v805_v58 }
 0x17a   :  { %1477 = vst [vmem:[#allocation3 + $0x50] sm:$0xf] %v1473_v19 }
 0x17b   :  { %v778_v60 = vpop.permute.xlu1 %777  ;;  %5878 = vmatpush1.bf16.msra.mxu0 %v5877_v12  ;;  %v712_v18 = vpop.permute.xlu0 %711 }
 0x17c   :  { %v716_v21 = vsel %vm264_vm0, %v710_v62, %v712_v18  ;;  %v808_v30 = vld [vmem:[#allocation3 + $0x58] sm:$0xff] }
 0x17d   :  { %724 = vst [vmem:[#allocation3 + $0x78] sm:$0xf0] %v716_v21  ;;  %1478 = vst [vmem:[#allocation3 + $0x58] sm:$0xf] %v1474_v31 }
 0x17f   :  { %v776_v3 = vpop.permute.xlu1 %775  ;;  %v780_v54 = vpop.permute.xlu0 %779 }
 0x180   :  { %v785_v40 = vsel %vm190_vm1, %v776_v3, %v778_v60  ;;  %v786_v15 = vsel %vm190_vm1, %v778_v60, %v780_v54  ;;  %v811_v45 = vld [vmem:[#allocation3 + $0x70] sm:$0xff] }
 0x181   :  { %793 = vst [vmem:[#allocation3 + $0x80] sm:$0xf] %v785_v40  ;;  %794 = vst [vmem:[#allocation3 + $0x88] sm:$0xf] %v786_v15  ;;  %v5885_v63 = vpack.c.bf16 %v811_v45, %v807_v25 }
 0x183   :  { %v784_v59 = vpop.permute.xlu1 %783  ;;  %v782_v43 = vpop.permute.xlu0 %781 }
 0x184   :  { %v787_v38 = vsel %vm190_vm1, %v780_v54, %v782_v43  ;;  %v788_v44 = vsel %vm190_vm1, %v782_v43, %v784_v59  ;;  %v812_v13 = vld [vmem:[#allocation3 + $0x78] sm:$0xff] }
 0x185   :  { %795 = vst [vmem:[#allocation3 + $0x90] sm:$0xf] %v787_v38  ;;  %796 = vst [vmem:[#allocation3 + $0x98] sm:$0xf] %v788_v44  ;;  %v5883_v17 = vpack.c.bf16 %v812_v13, %v808_v30 }
 0x187   :  { %v7751_v52 = vpop.permute.xlu1 %1204  ;;  %5884 = vmatprep.subr.bf16.mxu1 %v5883_v17  ;;  %v1203_v9 = vpop.permute.xlu0 %1202 }
 0x188   :  { %v1211_v55 = vsel %vm219_vm7, %v1203_v9, %v7751_v52  ;;  %5886 = vmatpush1.bf16.msra.mxu1 %v5885_v63  ;;  %v814_v7 = vld [vmem:[#allocation3 + $0x88] sm:$0xf]  ;;  %v813_v27 = vld [vmem:[#allocation3 + $0x80] sm:$0xf] }
 0x189   :  { %1219 = vst [vmem:[#allocation3 + $0x8] sm:$0xf] %v1211_v55  ;;  %5655 = vmatprep.subr.msk.mxu0 %vm828_vm8, %v814_v7 }
 0x18a   :  { %5656 = vmatpush1.msk.msra.mxu0 %vm828_vm8, %v813_v27 }
 0x18b   :  { %v7758_v8 = vpop.permute.xlu1 %1280  ;;  %5888 = vmatprep.subr.bf16.mxu0 %v7673_v46  ;;  %v1279_v50 = vpop.permute.xlu0 %1278  ;;  %5657 = vmatmul.mubr.msk.f32.vlgmr.msra.gmra.mrb[0].mxu0 %vm824_vm9, %v817_v49 }
 0x18c   :  { %v1287_v22 = vsel %vm298_vm5, %v1279_v50, %v7758_v8  ;;  %5890 = vmatpush1.bf16.msra.mxu0 %v7691_v41  ;;  %v816_v16 = vld [vmem:[#allocation3 + $0x98] sm:$0xf]  ;;  %v815_v56 = vld [vmem:[#allocation3 + $0x90] sm:$0xf]  ;;  %1057 = vmatprep.mubr.f32.mxu0 %v7765_v37 }
 0x18d   :  { %1295 = vst [vmem:[#allocation3 + $0x8] sm:$0xf0] %v1287_v22  ;;  %5658 = vmatprep.subr.msk.mxu1 %vm828_vm8, %v816_v16  ;;  %5892 = vmatprep.subr.bf16.mxu0 %v7735_v11 }
 0x18e   :  { %5659 = vmatpush1.msk.msra.mxu1 %vm828_vm8, %v815_v56 }
 0x18f   :  { %v1352_v46 = vpop.permute.xlu1 %1351  ;;  %5896 = vmatprep.subr.bf16.mxu1 %v7722_v2  ;;  %v1350_v28 = vpop.permute.xlu0 %1349  ;;  %5660 = vmatmul.mubr.msk.f32.vlgmr.msra.gmra.mrb[0].mxu1 %vm824_vm9, %v817_v49 }
 0x190   :  { %v1358_v41 = vsel %vm372_vm6, %v1350_v28, %v1352_v46  ;;  %5894 = vmatpush1.bf16.msra.mxu0 %v5877_v12  ;;  %5898 = vmatpush1.bf16.msra.mxu1 %v7724_v32 }
 0x191   :  { %1366 = vst [vmem:[#allocation3 + $0x28] sm:$0xf] %v1358_v41  ;;  %5661 = vmatprep.subr.msk.mxu0 %vm828_vm8, %v814_v7  ;;  %5900 = vmatprep.subr.bf16.mxu1 %v5883_v17 }
 0x192   :  { %1128 = vmatprep.mubr.f32.mxu1 %v7765_v37 }
 0x193   :  { %v1428_v39 = vpop.permute.xlu1 %1427  ;;  %v1426_v53 = vpop.permute.xlu0 %1425 }
 0x194   :  { %v1434_v11 = vsel %vm451_vm4, %v1426_v53, %v1428_v39  ;;  %5662 = vmatpush1.msk.msra.mxu0 %vm828_vm8, %v813_v27  ;;  %5902 = vmatpush1.bf16.msra.mxu1 %v5885_v63  ;;  %v1775_v57 = vld [vmem:[#allocation3 + $0x8] sm:$0xff] }
 0x195   :  { %1442 = vst [vmem:[#allocation3 + $0x28] sm:$0xf0] %v1434_v11  ;;  %5664 = vmatprep.subr.msk.mxu1 %vm828_vm8, %v816_v16  ;;  %5663 = vmatmul.mubr.msk.f32.vlgmr.msra.gmra.mrb[2].mxu0 %vm824_vm9, %v983_v47 }
 0x196   :  { %1879 = vmatprep.mubr.f32.mxu0 %v7765_v37 }
 0x197   :  { %v1277_v2 = vpop.permute.xlu1 %1276  ;;  %v1201_v32 = vpop.permute.xlu0 %1200 }
 0x198   :  { %v1286_v23 = vsel %vm298_vm5, %v1277_v2, %v1279_v50  ;;  %v1210_v42 = vsel %vm219_vm7, %v1201_v32, %v1203_v9  ;;  %5665 = vmatpush1.msk.msra.mxu1 %vm828_vm8, %v815_v56 }
 0x199   :  { %1294 = vst [vmem:[#allocation3] sm:$0xf0] %v1286_v23  ;;  %1218 = vst [vmem:[#allocation3] sm:$0xf] %v1210_v42  ;;  %5666 = vmatmul.mubr.msk.f32.vlgmr.msra.gmra.mrb[2].mxu1 %vm824_vm9, %v983_v47 }
 0x19a   :  { %1950 = vmatprep.mubr.f32.mxu1 %v7765_v37 }
 0x19b   :  { %v1424_v35 = vpop.permute.xlu1 %1423  ;;  %v1348_v14 = vpop.permute.xlu0 %1347 }
 0x19c   :  { %v1433_v10 = vsel %vm451_vm4, %v1424_v35, %v1426_v53  ;;  %v1357_v29 = vsel %vm372_vm6, %v1348_v14, %v1350_v28  ;;  %v1779_v58 = vld [vmem:[#allocation3 + $0x28] sm:$0xff] }
 0x19d   :  { %1441 = vst [vmem:[#allocation3 + $0x20] sm:$0xf0] %v1433_v10  ;;  %1365 = vst [vmem:[#allocation3 + $0x20] sm:$0xf] %v1357_v29  ;;  %v5903_v33 = vpack.c.bf16 %v1779_v58, %v1775_v57 }
 0x19f   :  { %v1209_v19 = vpop.permute.xlu1 %1208  ;;  %5904 = vmatprep.subr.bf16.mxu0 %v5903_v33  ;;  %v1207_v36 = vpop.permute.xlu0 %1206 }
 0x1a0   :  { %v1212_v62 = vsel %vm219_vm7, %v7751_v52, %v1207_v36  ;;  %v1213_v0 = vsel %vm219_vm7, %v1207_v36, %v1209_v19  ;;  %v1774_v12 = vld [vmem:[#allocation3] sm:$0xff] }
 0x1a1   :  { %1220 = vst [vmem:[#allocation3 + $0x10] sm:$0xf] %v1212_v62  ;;  %1221 = vst [vmem:[#allocation3 + $0x18] sm:$0xf] %v1213_v0 }
 0x1a3   :  { %v1285_v34 = vpop.permute.xlu1 %1284  ;;  %v1283_v61 = vpop.permute.xlu0 %1282 }
 0x1a4   :  { %v1288_v20 = vsel %vm298_vm5, %v7758_v8, %v1283_v61  ;;  %v1289_v25 = vsel %vm298_vm5, %v1283_v61, %v1285_v34  ;;  %v1778_v31 = vld [vmem:[#allocation3 + $0x20] sm:$0xff] }
 0x1a5   :  { %1296 = vst [vmem:[#allocation3 + $0x10] sm:$0xf0] %v1288_v20  ;;  %1297 = vst [vmem:[#allocation3 + $0x18] sm:$0xf0] %v1289_v25  ;;  %v5905_v60 = vpack.c.bf16 %v1778_v31, %v1774_v12 }
 0x1a7   :  { %v1356_v18 = vpop.permute.xlu1 %1355  ;;  %5906 = vmatpush1.bf16.msra.mxu0 %v5905_v60  ;;  %v1354_v21 = vpop.permute.xlu0 %1353 }
 0x1a8   :  { %v1359_v30 = vsel %vm372_vm6, %v1352_v46, %v1354_v21  ;;  %v1360_v3 = vsel %vm372_vm6, %v1354_v21, %v1356_v18 }
 0x1a9   :  { %1367 = vst [vmem:[#allocation3 + $0x30] sm:$0xf] %v1359_v30  ;;  %1368 = vst [vmem:[#allocation3 + $0x38] sm:$0xf] %v1360_v3 }
 0x1ab   :  { %v1432_v54 = vpop.permute.xlu1 %1431  ;;  %v1430_v40 = vpop.permute.xlu0 %1429 }
 0x1ac   :  { %v1435_v15 = vsel %vm451_vm4, %v1428_v39, %v1430_v40  ;;  %v1436_v59 = vsel %vm451_vm4, %v1430_v40, %v1432_v54  ;;  %v1777_v17 = vld [vmem:[#allocation3 + $0x18] sm:$0xff]  ;;  %v1776_v9 = vld [vmem:[#allocation3 + $0x10] sm:$0xff] }
 0x1ad   :  { %1443 = vst [vmem:[#allocation3 + $0x30] sm:$0xf0] %v1435_v15  ;;  %1444 = vst [vmem:[#allocation3 + $0x38] sm:$0xf0] %v1436_v59 }
 0x1af   :  { %v1538_v43 = vpop.permute.xlu1 %1537  ;;  %v1536_v45 = vpop.permute.xlu0 %1535 }
 0x1b0   :  { %v1544_v38 = vsel %vm417_vm2, %v1536_v45, %v1538_v43 }
 0x1b1   :  { %1552 = vst [vmem:[#allocation3 + $0x48] sm:$0xf0] %v1544_v38  ;;  %v1957_v38 = vld [vmem:[%s6942_s14] sm:$0x3]  ;;  %s9232_s14 = sld [smem:[#allocation13_spill]] }
 0x1b3   :  { %v1609_v44 = vpop.permute.xlu1 %1608  ;;  %v1607_v13 = vpop.permute.xlu0 %1606 }
 0x1b4   :  { %v1615_v63 = vsel %vm343_vm3, %v1607_v13, %v1609_v44  ;;  %v1781_v52 = vld [vmem:[#allocation3 + $0x38] sm:$0xff]  ;;  %v1780_v49 = vld [vmem:[#allocation3 + $0x30] sm:$0xff] }
 0x1b5   :  { %1623 = vst [vmem:[#allocation3 + $0x68] sm:$0xf] %v1615_v63  ;;  %v5911_v55 = vpack.c.bf16 %v1781_v52, %v1777_v17  ;;  %v5913_v7 = vpack.c.bf16 %v1780_v49, %v1776_v9 }
 0x1b7   :  { %v1685_v27 = vpop.permute.xlu1 %1684  ;;  %5912 = vmatprep.subr.bf16.mxu1 %v5911_v55  ;;  %v1683_v8 = vpop.permute.xlu0 %1682 }
 0x1b8   :  { %v1691_v50 = vsel %vm264_vm0, %v1683_v8, %v1685_v27  ;;  %5914 = vmatpush1.bf16.msra.mxu1 %v5913_v7  ;;  %v1783_v53 = vld [vmem:[#allocation3 + $0x48] sm:$0xff] }
 0x1b9   :  { %1699 = vst [vmem:[#allocation3 + $0x68] sm:$0xf0] %v1691_v50 }
 0x1bb   :  { %v1605_v22 = vpop.permute.xlu1 %1604  ;;  %v1534_v16 = vpop.permute.xlu0 %1533 }
 0x1bc   :  { %v1614_v56 = vsel %vm343_vm3, %v1605_v22, %v1607_v13  ;;  %v1543_v46 = vsel %vm417_vm2, %v1534_v16, %v1536_v45  ;;  %v1773_v45 = vld [vmem:[%s6922_s25] sm:$0xf]  ;;  %s9229_s25 = sld [smem:[#allocation12_spill]] }
 0x1bd   :  { %1622 = vst [vmem:[#allocation3 + $0x60] sm:$0xf] %v1614_v56  ;;  %1551 = vst [vmem:[#allocation3 + $0x40] sm:$0xf0] %v1543_v46 }
 0x1bf   :  { %v1540_v28 = vpop.permute.xlu1 %1539  ;;  %v1681_v41 = vpop.permute.xlu0 %1680 }
 0x1c0   :  { %v1545_v47 = vsel %vm417_vm2, %v1538_v43, %v1540_v28  ;;  %v1690_v39 = vsel %vm264_vm0, %v1681_v41, %v1683_v8  ;;  %v1787_v11 = vld [vmem:[#allocation3 + $0x68] sm:$0xff] }
 0x1c1   :  { %1553 = vst [vmem:[#allocation3 + $0x50] sm:$0xf0] %v1545_v47  ;;  %1698 = vst [vmem:[#allocation3 + $0x60] sm:$0xf0] %v1690_v39  ;;  %v5907_v2 = vpack.c.bf16 %v1787_v11, %v1783_v53  ;;  %v2118_v11 = vld [vmem:[%s6952_s24] sm:$0x3] }
 0x1c2   :  { %s9235_s24 = sld [smem:[#allocation22_spill]] }
 0x1c3   :  { %v1611_v32 = vpop.permute.xlu1 %1610  ;;  %5908 = vmatprep.subr.bf16.mxu0 %v5907_v2  ;;  %v1542_v23 = vpop.permute.xlu0 %1541  ;;  %v2120_v2 = vld [vmem:[%s6962_s6] sm:$0x3]  ;;  %s9237_s6 = sld [smem:[#allocation19_spill]] }
 0x1c4   :  { %v1616_v42 = vsel %vm343_vm3, %v1609_v44, %v1611_v32  ;;  %v1546_v35 = vsel %vm417_vm2, %v1540_v28, %v1542_v23  ;;  %v1782_v58 = vld [vmem:[#allocation3 + $0x40] sm:$0xff]  ;;  %v2196_v23 = vld [vmem:[%s7032_s8 + $0x20] sm:$0xff] }
 0x1c5   :  { %1624 = vst [vmem:[#allocation3 + $0x70] sm:$0xf] %v1616_v42  ;;  %1554 = vst [vmem:[#allocation3 + $0x58] sm:$0xf0] %v1546_v35  ;;  %v2192_v42 = vld [vmem:[%s7032_s8] sm:$0xff] }
 0x1c7   :  { %v1687_v14 = vpop.permute.xlu1 %1686  ;;  %v1613_v10 = vpop.permute.xlu0 %1612 }
 0x1c8   :  { %v1692_v29 = vsel %vm264_vm0, %v1685_v27, %v1687_v14  ;;  %v1617_v57 = vsel %vm343_vm3, %v1611_v32, %v1613_v10  ;;  %v1786_v33 = vld [vmem:[#allocation3 + $0x60] sm:$0xff]  ;;  %v1784_v40 = vld [vmem:[#allocation3 + $0x50] sm:$0xff]  ;;  %v2193_v32 = vld [vmem:[%s7032_s8 + $0x8] sm:$0xff] }
 0x1c9   :  { %1700 = vst [vmem:[#allocation3 + $0x70] sm:$0xf0] %v1692_v29  ;;  %1625 = vst [vmem:[#allocation3 + $0x78] sm:$0xf] %v1617_v57  ;;  %v5909_v19 = vpack.c.bf16 %v1786_v33, %v1782_v58  ;;  %v5919_v35 = vpack.c.bf16 %v2196_v23, %v2193_v32  ;;  %v2199_v10 = vld [vmem:[%s7032_s8 + $0x38] sm:$0xff]  ;;  %v2202_v29 = vld [vmem:[%s7032_s8 + $0x50] sm:$0xff] }
 0x1ca   :  { %v5923_v58 = vpack.c.bf16 %v2202_v29, %v2199_v10  ;;  %v2198_v33 = vld [vmem:[%s7032_s8 + $0x30] sm:$0xff]  ;;  %v2229_v32 = vld [vmem:[%s7032_s8 + $0x128] sm:$0xff]  ;;  %v2232_v23 = vld [vmem:[%s7032_s8 + $0x140] sm:$0xff] }
 0x1cb   :  { %v1754_v36 = vpop.permute.xlu1 %1753  ;;  %5910 = vmatpush1.bf16.msra.mxu0 %v5909_v19  ;;  %v1689_v62 = vpop.permute.xlu0 %1688  ;;  %v2201_v19 = vld [vmem:[%s7032_s8 + $0x48] sm:$0xff]  ;;  %v2231_v10 = vld [vmem:[%s7032_s8 + $0x138] sm:$0xff] }
 0x1cc   :  { %v1693_v0 = vsel %vm264_vm0, %v1687_v14, %v1689_v62  ;;  %v1785_v30 = vld [vmem:[#allocation3 + $0x58] sm:$0xff]  ;;  %v2195_v14 = vld [vmem:[%s7032_s8 + $0x18] sm:$0xff]  ;;  %v2208_v62 = vld [vmem:[%s7032_s8 + $0x80] sm:$0xff] }
 0x1cd   :  { %1701 = vst [vmem:[#allocation3 + $0x78] sm:$0xf0] %v1693_v0  ;;  %v5921_v57 = vpack.c.bf16 %v2195_v14, %v2192_v42  ;;  %v5925_v0 = vpack.c.bf16 %v2201_v19, %v2198_v33  ;;  %v2228_v14 = vld [vmem:[%s7032_s8 + $0x120] sm:$0xff]  ;;  %v2235_v29 = vld [vmem:[%s7032_s8 + $0x158] sm:$0xff]  ;;  %v2234_v19 = vld [vmem:[%s7032_s8 + $0x150] sm:$0xff] }
 0x1cf   :  { %v1752_v34 = vpop.permute.xlu1 %1751  ;;  %v1756_v61 = vpop.permute.xlu0 %1755 }
 0x1d0   :  { %v1761_v20 = vsel %vm190_vm1, %v1752_v34, %v1754_v36  ;;  %v1762_v25 = vsel %vm190_vm1, %v1754_v36, %v1756_v61  ;;  %v1788_v60 = vld [vmem:[#allocation3 + $0x70] sm:$0xff]  ;;  %v2205_v36 = vld [vmem:[%s7032_s8 + $0x68] sm:$0xff] }
 0x1d1   :  { %1769 = vst [vmem:[#allocation3 + $0x80] sm:$0xf] %v1761_v20  ;;  %1770 = vst [vmem:[#allocation3 + $0x88] sm:$0xf] %v1762_v25  ;;  %v5917_v15 = vpack.c.bf16 %v1788_v60, %v1784_v40  ;;  %v3141_v34 = vld [vmem:[%s6972_s20] sm:$0x3] }
 0x1d2   :  { %v2204_v20 = vld [vmem:[%s7032_s8 + $0x60] sm:$0xff]  ;;  %v2207_v25 = vld [vmem:[%s7032_s8 + $0x78] sm:$0xff]  ;;  %v2242_v40 = vld [vmem:[%s7032_s8 + $0x190] sm:$0xff]  ;;  %s9239_s20 = sld [smem:[#allocation25_spill]] }
 0x1d3   :  { %v1760_v12 = vpop.permute.xlu1 %1759  ;;  %v1758_v31 = vpop.permute.xlu0 %1757  ;;  %v5929_v60 = vpack.c.bf16 %v2207_v25, %v2204_v20  ;;  %v2240_v20 = vld [vmem:[%s7032_s8 + $0x180] sm:$0xff]  ;;  %v2243_v25 = vld [vmem:[%s7032_s8 + $0x198] sm:$0xff] }
 0x1d4   :  { %v1763_v18 = vsel %vm190_vm1, %v1756_v61, %v1758_v31  ;;  %v1764_v21 = vsel %vm190_vm1, %v1758_v31, %v1760_v12  ;;  %v1789_v3 = vld [vmem:[#allocation3 + $0x78] sm:$0xff]  ;;  %v5927_v61 = vpack.c.bf16 %v2208_v62, %v2205_v36  ;;  %v2211_v12 = vld [vmem:[%s7032_s8 + $0x98] sm:$0xff]  ;;  %v2214_v31 = vld [vmem:[%s7032_s8 + $0xb0] sm:$0xff] }
 0x1d5   :  { %1771 = vst [vmem:[#allocation3 + $0x90] sm:$0xf] %v1763_v18  ;;  %1772 = vst [vmem:[#allocation3 + $0x98] sm:$0xf] %v1764_v21  ;;  %v5915_v54 = vpack.c.bf16 %v1789_v3, %v1785_v30  ;;  %v5931_v18 = vpack.c.bf16 %v2214_v31, %v2211_v12  ;;  %v2210_v21 = vld [vmem:[%s7032_s8 + $0x90] sm:$0xff]  ;;  %v2213_v30 = vld [vmem:[%s7032_s8 + $0xa8] sm:$0xff] }
 0x1d6   :  { %v2217_v3 = vld [vmem:[%s7032_s8 + $0xc8] sm:$0xff]  ;;  %v2247_v12 = vld [vmem:[%s7032_s8 + $0x1b8] sm:$0xff]  ;;  %v2250_v31 = vld [vmem:[%s7032_s8 + $0x1d0] sm:$0xff] }
 0x1d7   :  { %5916 = vmatprep.subr.bf16.mxu1 %v5915_v54  ;;  %v2220_v54 = vld [vmem:[%s7032_s8 + $0xe0] sm:$0xff]  ;;  %v2237_v36 = vld [vmem:[%s7032_s8 + $0x168] sm:$0xff] }
 0x1d8   :  { %5918 = vmatpush1.bf16.msra.mxu1 %v5917_v15  ;;  %v1791_v59 = vld [vmem:[#allocation3 + $0x88] sm:$0xf]  ;;  %v1790_v43 = vld [vmem:[#allocation3 + $0x80] sm:$0xf]  ;;  %v2245_v15 = vld [vmem:[%s7032_s8 + $0x1a8] sm:$0xff] }
 0x1d9   :  { %5675 = vmatprep.subr.msk.mxu0 %vm828_vm8, %v1791_v59  ;;  %v5933_v59 = vpack.c.bf16 %v2213_v30, %v2210_v21  ;;  %v2241_v62 = vld [vmem:[%s7032_s8 + $0x188] sm:$0xff]  ;;  %v2246_v21 = vld [vmem:[%s7032_s8 + $0x1b0] sm:$0xff] }
 0x1da   :  { %5676 = vmatpush1.msk.msra.mxu0 %vm828_vm8, %v1790_v43  ;;  %v2216_v43 = vld [vmem:[%s7032_s8 + $0xc0] sm:$0xff]  ;;  %v2249_v30 = vld [vmem:[%s7032_s8 + $0x1c8] sm:$0xff] }
 0x1db   :  { %5677 = vmatmul.mubr.msk.f32.vlgmr.msra.gmra.mrb[0].mxu0 %vm824_vm9, %v1773_v45  ;;  %5681 = vmatprep.subr.msk.mxu0 %vm828_vm8, %v7190_v1 }
 0x1dc   :  { %v1793_v44 = vld [vmem:[#allocation3 + $0x98] sm:$0xf]  ;;  %v1792_v13 = vld [vmem:[#allocation3 + $0x90] sm:$0xf]  ;;  %5682 = vmatpush1.msk.msra.mxu0 %vm828_vm8, %v7163_v51  ;;  %2040 = vmatprep.mubr.f32.mxu0 %v7765_v37 }
 0x1dd   :  { %5678 = vmatprep.subr.msk.mxu1 %vm828_vm8, %v1793_v44  ;;  %5920 = vmatprep.subr.bf16.mxu0 %v5919_v35  ;;  %v5935_v44 = vpack.c.bf16 %v2220_v54, %v2217_v3  ;;  %v5943_v35 = vpack.c.bf16 %v2232_v23, %v2229_v32  ;;  %v5957_v3 = vpack.c.bf16 %v2249_v30, %v2246_v21  ;;  %v2209_v32 = vld [vmem:[%s7032_s8 + $0x88] sm:$0xff] }
 0x1de   :  { %5679 = vmatpush1.msk.msra.mxu1 %vm828_vm8, %v1792_v13  ;;  %v2219_v13 = vld [vmem:[%s7032_s8 + $0xd8] sm:$0xff] }
 0x1df   :  { %5680 = vmatmul.mubr.msk.f32.vlgmr.msra.gmra.mrb[0].mxu1 %vm824_vm9, %v1773_v45  ;;  %5683 = vmatmul.mubr.msk.f32.vlgmr.msra.gmra.mrb[4].mxu0 %vm1964_vm10, %v1957_v38  ;;  %v6047_v45 = vpack.c.bf16 %v2245_v15, %v2242_v40  ;;  %vm6886_vm9 = vmmov 0  }
 0x1e0   :  { %5684 = vmatprep.subr.msk.mxu1 %vm828_vm8, %v7257_v48  ;;  %2111 = vmatprep.mubr.f32.mxu1 %v7765_v37 }
 0x1e1   :  { %5685 = vmatpush1.msk.msra.mxu1 %vm828_vm8, %v7221_v24  ;;  %5922 = vmatpush1.bf16.msra.mxu0 %v5921_v57  ;;  %v2238_v57 = vld [vmem:[%s7032_s8 + $0x170] sm:$0xff] }
 0x1e2   :  { %5924 = vmatprep.subr.bf16.mxu0 %v5923_v58  ;;  %6048 = vmatprep.subr.bf16.mxu1 %v6047_v45  ;;  %v5945_v58 = vpack.c.bf16 %v2231_v10, %v2228_v14  ;;  %v5947_v33 = vpack.c.bf16 %v2238_v57, %v2235_v29  ;;  %v2260_v14 = vld [vmem:[%s7032_s8 + $0x220] sm:$0xff]  ;;  %v2263_v29 = vld [vmem:[%s7032_s8 + $0x238] sm:$0xff]  ;;  %v2258_v57 = vld [vmem:[%s7032_s8 + $0x210] sm:$0xff] }
 0x1e3   :  { %5686 = vmatmul.mubr.msk.f32.vlgmr.msra.gmra.mrb[4].mxu1 %vm1964_vm10, %v1957_v38  ;;  %v2194_v38 = vld [vmem:[%s7032_s8 + $0x10] sm:$0xff]  ;;  %vm3147_vm10 = vcmask 15360  }
 0x1e4   :  { %v1962_v52 = vpop.permute.xlu0 %1961 }
 0x1e5   :  { %5926 = vmatpush1.bf16.msra.mxu0 %v5925_v0  ;;  %v2244_v0 = vld [vmem:[%s7032_s8 + $0x1a0] sm:$0xff] }
 0x1e6   :  { %5928 = vmatprep.subr.bf16.mxu0 %v5927_v61  ;;  %v5951_v61 = vpack.c.bf16 %v2244_v0, %v2241_v62  ;;  %v2215_v62 = vld [vmem:[%s7032_s8 + $0xb8] sm:$0xff]  ;;  %v2119_v0 = vld [vmem:[%s6957_s30] sm:$0x3]  ;;  %s9236_s30 = sld [smem:[#allocation23_spill]] }
 0x1e9   :  { %5930 = vmatpush1.bf16.msra.mxu0 %v5929_v60  ;;  %v5953_v60 = vpack.c.bf16 %v2243_v25, %v2240_v20  ;;  %v2268_v20 = vld [vmem:[%s7032_s8 + $0x260] sm:$0xff]  ;;  %v2266_v25 = vld [vmem:[%s7032_s8 + $0x250] sm:$0xff] }
 0x1ea   :  { %5932 = vmatprep.subr.bf16.mxu0 %v5931_v18  ;;  %v5955_v18 = vpack.c.bf16 %v2250_v31, %v2247_v12  ;;  %v2269_v31 = vld [vmem:[%s7032_s8 + $0x268] sm:$0xff] }
 0x1eb   :  { %v6063_v21 = vpack.c.bf16 %v2269_v31, %v2266_v25  ;;  %v2338_v25 = vld [vmem:[%s7032_s8 + $0x490] sm:$0xff]  ;;  %v2341_v31 = vld [vmem:[%s7032_s8 + $0x4a8] sm:$0xff] }
 0x1ed   :  { %5934 = vmatpush1.bf16.msra.mxu0 %v5933_v59 }
 0x1ee   :  { %5936 = vmatprep.subr.bf16.mxu0 %v5935_v44 }
 0x2ae   :  { %v7834_v17 = vpop.f32.mrb[0].mxu0 }
 0x2af   :  { %v7836_v63 = vpop.f32.mrb[1].mxu0 }
 0x2b2   :  { %v7838_v9 = vpop.f32.mrb[0].mxu1  ;;  %v2042_v49 = vpop.f32.mrb[4].mxu0 }
 0x2b3   :  { %v7840_v55 = vpop.f32.mrb[1].mxu1  ;;  %v2044_v7 = vpop.f32.mrb[5].mxu0  ;;  %v7842_v27 = vadd.f32 %v2042_v49, %v1962_v52  ;;  %v2197_v49 = vld [vmem:[%s7032_s8 + $0x28] sm:$0xff] }
 0x2b4   :  { %v7844_v37 = vadd.f32 %v2044_v7, %v1962_v52  ;;  %v2226_v7 = vld [vmem:[%s7032_s8 + $0x110] sm:$0xff] }
 0x2b5   :  { %v2122_v8 = vsel %vm2121_vm11, %v7842_v27, 0.0 }
 0x2b6   :  { %v2113_v50 = vpop.f32.mrb[4].mxu1  ;;  %v2123_v22 = vsel %vm2121_vm11, %v7844_v37, 0.0 }
 0x2b7   :  { %v7850_v16 = vadd.f32 %v2113_v50, %v1962_v52  ;;  %v2124_v56 = vadd.f32 %v2123_v22, %v2122_v8  ;;  %v2115_v46 = vpop.f32.mrb[5].mxu1  ;;  %v6049_v8 = vpack.c.bf16 %v2197_v49, %v2194_v38  ;;  %v2248_v50 = vld [vmem:[%s7032_s8 + $0x1c0] sm:$0xff]  ;;  %v2251_v22 = vld [vmem:[%s7032_s8 + $0x1d8] sm:$0xff] }
 0x2b8   :  { %v7852_v28 = vadd.f32 %v2115_v46, %v1962_v52  ;;  %v2223_v52 = vld [vmem:[%s7032_s8 + $0xf8] sm:$0xff]  ;;  %v2200_v46 = vld [vmem:[%s7032_s8 + $0x40] sm:$0xff] }
 0x2b9   :  { %v2125_v41 = vsel %vm2121_vm11, %v7850_v16, 0.0  ;;  %6050 = vmatpush3.bf16.msra.mxu1 %v6049_v8 }
 0x2ba   :  { %v2126_v47 = vadd.f32 %v2125_v41, %v2124_v56  ;;  %v2127_v39 = vsel %vm2121_vm11, %v7852_v28, 0.0  ;;  %v6051_v56 = vpack.c.bf16 %v2251_v22, %v2248_v50  ;;  %v2203_v41 = vld [vmem:[%s7032_s8 + $0x58] sm:$0xff]  ;;  %v2253_v50 = vld [vmem:[%s7032_s8 + $0x1e8] sm:$0xff]  ;;  %v2256_v22 = vld [vmem:[%s7032_s8 + $0x200] sm:$0xff] }
 0x2bc   :  { %v2128_v53 = vadd.f32 %v2127_v39, %v2126_v47  ;;  %v5937_v47 = vpack.c.bf16 %v2219_v13, %v2216_v43  ;;  %v6053_v39 = vpack.c.bf16 %v2203_v41, %v2200_v46  ;;  %6052 = vmatprep.subr.bf16.mxu1 %v6051_v56  ;;  %v2254_v56 = vld [vmem:[%s7032_s8 + $0x1f0] sm:$0xff]  ;;  %v5959_v46 = vpack.c.bf16 %v2256_v22, %v2253_v50  ;;  %v2257_v41 = vld [vmem:[%s7032_s8 + $0x208] sm:$0xff] }
 0x2bd   :  { %v2277_v22 = vld [vmem:[%s7032_s8 + $0x2a8] sm:$0xff] }
 0x2be   :  { %2129 = vadd.xlane.f32.xlu1 %v2128_v53  ;;  %v5939_v53 = vpack.c.bf16 %v2226_v7, %v2223_v52  ;;  %5938 = vmatpush1.bf16.msra.mxu0 %v5937_v47  ;;  %v2252_v47 = vld [vmem:[%s7032_s8 + $0x1e0] sm:$0xff] }
 0x2bf   :  { %6054 = vmatpush3.bf16.msra.mxu1 %v6053_v39  ;;  %v2255_v39 = vld [vmem:[%s7032_s8 + $0x1f8] sm:$0xff] }
 0x2c0   :  { %5940 = vmatprep.subr.bf16.mxu0 %v5939_v53  ;;  %v6055_v53 = vpack.c.bf16 %v2257_v41, %v2254_v56  ;;  %v2280_v56 = vld [vmem:[%s7032_s8 + $0x2c0] sm:$0xff] }
 0x2c1   :  { %v5975_v41 = vpack.c.bf16 %v2280_v56, %v2277_v22 }
 0x2c2   :  { %6056 = vmatprep.subr.bf16.mxu1 %v6055_v53  ;;  %v2279_v53 = vld [vmem:[%s7032_s8 + $0x2b8] sm:$0xff] }
 0x2cf   :  { %2159 = vperm.xlu1 %6711, %v2118_v11   ;;  %v2222_v11 = vld [vmem:[%s7032_s8 + $0xf0] sm:$0xff] }
 0x2d3   :  { %2181 = vperm.xlu1 %6711, %v2120_v2   ;;  %v2225_v2 = vld [vmem:[%s7032_s8 + $0x108] sm:$0xff] }
 0x2d4   :  { %v5941_v42 = vpack.c.bf16 %v2225_v2, %v2222_v11  ;;  %v5961_v11 = vpack.c.bf16 %v2255_v39, %v2252_v47  ;;  %v2206_v2 = vld [vmem:[%s7032_s8 + $0x70] sm:$0xff]  ;;  %v2281_v47 = vld [vmem:[%s7032_s8 + $0x2c8] sm:$0xff]  ;;  %v2276_v39 = vld [vmem:[%s7032_s8 + $0x2a0] sm:$0xff] }
 0x2d5   :  { %v6057_v23 = vpack.c.bf16 %v2209_v32, %v2206_v2  ;;  %v5977_v2 = vpack.c.bf16 %v2279_v53, %v2276_v39  ;;  %v2230_v32 = vld [vmem:[%s7032_s8 + $0x130] sm:$0xff]  ;;  %v2347_v39 = vld [vmem:[%s7032_s8 + $0x4d8] sm:$0xff] }
 0x2d6   :  { %5942 = vmatpush1.bf16.msra.mxu0 %v5941_v42  ;;  %v2259_v42 = vld [vmem:[%s7032_s8 + $0x218] sm:$0xff] }
 0x2d7   :  { %3144 = vperm.xlu1 %6711, %v3141_v34   ;;  %5944 = vmatprep.subr.bf16.mxu0 %v5943_v35  ;;  %v5949_v34 = vpack.c.bf16 %v2237_v36, %v2234_v19  ;;  %v2262_v35 = vld [vmem:[%s7032_s8 + $0x230] sm:$0xff]  ;;  %v2212_v36 = vld [vmem:[%s7032_s8 + $0xa0] sm:$0xff] }
 0x2d8   :  { %6058 = vmatpush3.bf16.msra.mxu1 %v6057_v23  ;;  %v5963_v10 = vpack.c.bf16 %v2262_v35, %v2259_v42  ;;  %v2233_v23 = vld [vmem:[%s7032_s8 + $0x148] sm:$0xff]  ;;  %v2283_v35 = vld [vmem:[%s7032_s8 + $0x2d8] sm:$0xff] }
 0x2d9   :  { %v6073_v42 = vpack.c.bf16 %v2233_v23, %v2230_v32  ;;  %v2297_v32 = vld [vmem:[%s7032_s8 + $0x348] sm:$0xff] }
 0x2da   :  { %5946 = vmatpush1.bf16.msra.mxu0 %v5945_v58  ;;  %v2261_v58 = vld [vmem:[%s7032_s8 + $0x228] sm:$0xff] }
 0x2db   :  { %5948 = vmatprep.subr.bf16.mxu0 %v5947_v33  ;;  %v6059_v33 = vpack.c.bf16 %v2263_v29, %v2260_v14  ;;  %v5965_v19 = vpack.c.bf16 %v2261_v58, %v2258_v57  ;;  %v2286_v14 = vld [vmem:[%s7032_s8 + $0x2f0] sm:$0xff]  ;;  %v2287_v57 = vld [vmem:[%s7032_s8 + $0x2f8] sm:$0xff] }
 0x2dc   :  { %v5979_v29 = vpack.c.bf16 %v2286_v14, %v2283_v35  ;;  %v2282_v58 = vld [vmem:[%s7032_s8 + $0x2d0] sm:$0xff]  ;;  %v2296_v35 = vld [vmem:[%s7032_s8 + $0x340] sm:$0xff]  ;;  %v2299_v14 = vld [vmem:[%s7032_s8 + $0x358] sm:$0xff] }
 0x2dd   :  { %6060 = vmatprep.subr.bf16.mxu1 %v6059_v33  ;;  %v2285_v33 = vld [vmem:[%s7032_s8 + $0x2e8] sm:$0xff] }
 0x2de   :  { %5950 = vmatpush1.bf16.msra.mxu0 %v5949_v34  ;;  %v6061_v34 = vpack.c.bf16 %v2215_v62, %v2212_v36  ;;  %v5981_v36 = vpack.c.bf16 %v2285_v33, %v2282_v58  ;;  %v2236_v62 = vld [vmem:[%s7032_s8 + $0x160] sm:$0xff]  ;;  %v2350_v33 = vld [vmem:[%s7032_s8 + $0x4f0] sm:$0xff] }
 0x2df   :  { %5952 = vmatprep.subr.bf16.mxu0 %v5951_v61  ;;  %v2265_v61 = vld [vmem:[%s7032_s8 + $0x248] sm:$0xff]  ;;  %v2304_v58 = vld [vmem:[%s7032_s8 + $0x380] sm:$0xff] }
 0x2e0   :  { %6062 = vmatpush3.bf16.msra.mxu1 %v6061_v34  ;;  %v5967_v12 = vpack.c.bf16 %v2268_v20, %v2265_v61  ;;  %v2289_v61 = vld [vmem:[%s7032_s8 + $0x308] sm:$0xff]  ;;  %v2292_v20 = vld [vmem:[%s7032_s8 + $0x320] sm:$0xff] }
 0x2e1   :  { %6064 = vmatprep.subr.bf16.mxu1 %v6063_v21 }
 0x2e2   :  { %5954 = vmatpush1.bf16.msra.mxu0 %v5953_v60  ;;  %v2264_v60 = vld [vmem:[%s7032_s8 + $0x240] sm:$0xff] }
 0x2e3   :  { %5956 = vmatprep.subr.bf16.mxu0 %v5955_v18  ;;  %v2267_v18 = vld [vmem:[%s7032_s8 + $0x258] sm:$0xff] }
 0x2e4   :  { %v5969_v30 = vpack.c.bf16 %v2267_v18, %v2264_v60  ;;  %v6079_v60 = vpack.c.bf16 %v2341_v31, %v2338_v25  ;;  %v2305_v31 = vld [vmem:[%s7032_s8 + $0x388] sm:$0xff] }
 0x2e6   :  { %5958 = vmatpush1.bf16.msra.mxu0 %v5957_v3  ;;  %v2218_v3 = vld [vmem:[%s7032_s8 + $0xd0] sm:$0xff] }
 0x2e7   :  { %5960 = vmatprep.subr.bf16.mxu0 %v5959_v46  ;;  %v2278_v46 = vld [vmem:[%s7032_s8 + $0x2b0] sm:$0xff] }
 0x2ea   :  { %5962 = vmatpush1.bf16.msra.mxu0 %v5961_v11  ;;  %v6071_v11 = vpack.c.bf16 %v2281_v47, %v2278_v46  ;;  %v2344_v47 = vld [vmem:[%s7032_s8 + $0x4c0] sm:$0xff] }
 0x2eb   :  { %5964 = vmatprep.subr.bf16.mxu0 %v5963_v10  ;;  %v2284_v10 = vld [vmem:[%s7032_s8 + $0x2e0] sm:$0xff] }
 0x2ee   :  { %5966 = vmatpush1.bf16.msra.mxu0 %v5965_v19  ;;  %v6075_v19 = vpack.c.bf16 %v2287_v57, %v2284_v10  ;;  %v2301_v10 = vld [vmem:[%s7032_s8 + $0x368] sm:$0xff]  ;;  %v6083_v57 = vpack.c.bf16 %v2347_v39, %v2344_v47  ;;  %v2314_v47 = vld [vmem:[%s7032_s8 + $0x3d0] sm:$0xff] }
 0x2ef   :  { %5968 = vmatprep.subr.bf16.mxu0 %v5967_v12  ;;  %v5983_v12 = vpack.c.bf16 %v2292_v20, %v2289_v61  ;;  %v2303_v61 = vld [vmem:[%s7032_s8 + $0x378] sm:$0xff]  ;;  %v5991_v20 = vpack.c.bf16 %v2304_v58, %v2301_v10  ;;  %v2317_v39 = vld [vmem:[%s7032_s8 + $0x3e8] sm:$0xff]  ;;  %v2318_v10 = vld [vmem:[%s7032_s8 + $0x3f0] sm:$0xff] }
 0x2f2   :  { %5970 = vmatpush1.bf16.msra.mxu0 %v5969_v30 }
 0x34b   :  { %v2130_v54 = vpop.xlane.xlu1 %2129 }
 0x34c   :  { %v2132_v40 = vmul.f32 0.001953125, %v2130_v54  ;;  %v2221_v54 = vld [vmem:[%s7032_s8 + $0xe8] sm:$0xff] }
 0x34e   :  { %v7910_v15 = vsub.f32 %v7842_v27, %v2132_v40  ;;  %v7913_v59 = vsub.f32 %v7844_v37, %v2132_v40  ;;  %v7916_v43 = vsub.f32 %v7850_v16, %v2132_v40  ;;  %v7919_v45 = vsub.f32 %v7852_v28, %v2132_v40 }
 0x34f   :  { %v6065_v40 = vpack.c.bf16 %v2221_v54, %v2218_v3  ;;  %v7988_v54 = vpop.permute.xlu1 %2159 }
 0x350   :  { %v2137_v38 = vmul.f32 %v7910_v15, %v7910_v15  ;;  %v2138_v27 = vmul.f32 %v7913_v59, %v7913_v59  ;;  %v2139_v37 = vmul.f32 %v7916_v43, %v7916_v43  ;;  %v2140_v16 = vmul.f32 %v7919_v45, %v7919_v45 }
 0x351   :  { %6066 = vmatpush3.bf16.msra.mxu1 %v6065_v40 }
 0x352   :  { %v2141_v44 = vsel %vm2121_vm11, %v2137_v38, 0.0  ;;  %v2142_v28 = vsel %vm2121_vm11, %v2138_v27, 0.0  ;;  %v2144_v52 = vsel %vm2121_vm11, %v2139_v37, 0.0  ;;  %v2146_v7 = vsel %vm2121_vm11, %v2140_v16, 0.0  ;;  %v2271_v38 = vld [vmem:[%s7032_s8 + $0x278] sm:$0xff]  ;;  %v2274_v27 = vld [vmem:[%s7032_s8 + $0x290] sm:$0xff] }
 0x353   :  { %v2143_v13 = vadd.f32 %v2142_v28, %v2141_v44  ;;  %v2272_v37 = vld [vmem:[%s7032_s8 + $0x280] sm:$0xff]  ;;  %v5971_v16 = vpack.c.bf16 %v2274_v27, %v2271_v38  ;;  %v2275_v44 = vld [vmem:[%s7032_s8 + $0x298] sm:$0xff]  ;;  %v2270_v28 = vld [vmem:[%s7032_s8 + $0x270] sm:$0xff] }
 0x355   :  { %v2145_v49 = vadd.f32 %v2144_v52, %v2143_v13  ;;  %v2273_v13 = vld [vmem:[%s7032_s8 + $0x288] sm:$0xff]  ;;  %v6067_v52 = vpack.c.bf16 %v2275_v44, %v2272_v37  ;;  %5972 = vmatprep.subr.bf16.mxu0 %v5971_v16 }
 0x357   :  { %v2147_v8 = vadd.f32 %v2146_v7, %v2145_v49  ;;  %v5973_v49 = vpack.c.bf16 %v2273_v13, %v2270_v28  ;;  %v2224_v7 = vld [vmem:[%s7032_s8 + $0x100] sm:$0xff]  ;;  %6068 = vmatprep.subr.bf16.mxu1 %v6067_v52  ;;  %v2291_v52 = vld [vmem:[%s7032_s8 + $0x318] sm:$0xff] }
 0x358   :  { %v2288_v13 = vld [vmem:[%s7032_s8 + $0x300] sm:$0xff] }
 0x359   :  { %2148 = vadd.xlane.f32.xlu0 %v2147_v8  ;;  %v2227_v8 = vld [vmem:[%s7032_s8 + $0x118] sm:$0xff]  ;;  %5974 = vmatpush1.bf16.msra.mxu0 %v5973_v49  ;;  %v2290_v49 = vld [vmem:[%s7032_s8 + $0x310] sm:$0xff]  ;;  %v5985_v46 = vpack.c.bf16 %v2291_v52, %v2288_v13  ;;  %v2308_v13 = vld [vmem:[%s7032_s8 + $0x3a0] sm:$0xff] }
 0x35a   :  { %v6069_v50 = vpack.c.bf16 %v2227_v8, %v2224_v7  ;;  %5976 = vmatprep.subr.bf16.mxu0 %v5975_v41  ;;  %v2293_v7 = vld [vmem:[%s7032_s8 + $0x328] sm:$0xff]  ;;  %v8008_v8 = vpop.permute.xlu1 %2181  ;;  %v2298_v41 = vld [vmem:[%s7032_s8 + $0x350] sm:$0xff]  ;;  %v2311_v52 = vld [vmem:[%s7032_s8 + $0x3b8] sm:$0xff] }
 0x35c   :  { %6070 = vmatpush3.bf16.msra.mxu1 %v6069_v50  ;;  %v2295_v50 = vld [vmem:[%s7032_s8 + $0x338] sm:$0xff] }
 0x35d   :  { %6072 = vmatprep.subr.bf16.mxu1 %v6071_v11  ;;  %5978 = vmatpush1.bf16.msra.mxu0 %v5977_v2  ;;  %v6081_v11 = vpack.c.bf16 %v2293_v7, %v2290_v49  ;;  %v2294_v2 = vld [vmem:[%s7032_s8 + $0x330] sm:$0xff]  ;;  %v2365_v49 = vld [vmem:[%s7032_s8 + $0x568] sm:$0xff] }
 0x35e   :  { %5980 = vmatprep.subr.bf16.mxu0 %v5979_v29  ;;  %v5987_v29 = vpack.c.bf16 %v2298_v41, %v2295_v50  ;;  %v6093_v50 = vpack.c.bf16 %v2311_v52, %v2308_v13  ;;  %v2330_v13 = vld [vmem:[%s7032_s8 + $0x450] sm:$0xff]  ;;  %v2333_v52 = vld [vmem:[%s7032_s8 + $0x468] sm:$0xff] }
 0x360   :  { %6074 = vmatpush3.bf16.msra.mxu1 %v6073_v42 }
 0x361   :  { %6076 = vmatprep.subr.bf16.mxu1 %v6075_v19  ;;  %5982 = vmatpush1.bf16.msra.mxu0 %v5981_v36  ;;  %v2353_v19 = vld [vmem:[%s7032_s8 + $0x508] sm:$0xff] }
 0x362   :  { %5984 = vmatprep.subr.bf16.mxu0 %v5983_v12  ;;  %v6087_v25 = vpack.c.bf16 %v2353_v19, %v2350_v33  ;;  %v2302_v12 = vld [vmem:[%s7032_s8 + $0x370] sm:$0xff]  ;;  %v2320_v33 = vld [vmem:[%s7032_s8 + $0x400] sm:$0xff]  ;;  %v2323_v19 = vld [vmem:[%s7032_s8 + $0x418] sm:$0xff] }
 0x36f   :  { %2168 = vperm.xlu0 %6710, %v2119_v0   ;;  %v2239_v0 = vld [vmem:[%s7032_s8 + $0x178] sm:$0xff] }
 0x370   :  { %v6077_v34 = vpack.c.bf16 %v2239_v0, %v2236_v62  ;;  %v5989_v62 = vpack.c.bf16 %v2297_v32, %v2294_v2  ;;  %v6085_v0 = vpack.c.bf16 %v2299_v14, %v2296_v35  ;;  %v2368_v2 = vld [vmem:[%s7032_s8 + $0x580] sm:$0xff]  ;;  %v2371_v32 = vld [vmem:[%s7032_s8 + $0x598] sm:$0xff]  ;;  %v6097_v14 = vpack.c.bf16 %v2317_v39, %v2314_v47 }
 0x371   :  { %v6099_v58 = vpack.c.bf16 %v2371_v32, %v2368_v2  ;;  %v2336_v47 = vld [vmem:[%s7032_s8 + $0x480] sm:$0xff]  ;;  %v2669_v2 = vld [vmem:[%s7037_s29 + $0x18] sm:$0xff] }
 0x372   :  { %6078 = vmatpush3.bf16.msra.mxu1 %v6077_v34  ;;  %v2300_v34 = vld [vmem:[%s7032_s8 + $0x360] sm:$0xff] }
 0x373   :  { %6080 = vmatprep.subr.bf16.mxu1 %v6079_v60  ;;  %v2307_v60 = vld [vmem:[%s7032_s8 + $0x398] sm:$0xff] }
 0x3e6   :  { %v2149_v18 = vpop.xlane.xlu0 %2148 }
 0x3e7   :  { %v2150_v21 = vmul.f32 0.001953125, %v2149_v18  ;;  %v2310_v18 = vld [vmem:[%s7032_s8 + $0x3b0] sm:$0xff] }
 0x3e9   :  { %v2151_v30 = vadd.f32 1e-05, %v2150_v21  ;;  %v2356_v21 = vld [vmem:[%s7032_s8 + $0x520] sm:$0xff] }
 0x3eb   :  { %6782 = vrsqrt.f32 %v2151_v30  ;;  %v2359_v30 = vld [vmem:[%s7032_s8 + $0x538] sm:$0xff] }
 0x3ee   :  { %v7999_v28 = vpop.permute.xlu0 %2168 }
 0x3f5   :  { %v7986_v3 = vpop.eup %6782 }
 0x3f6   :  { %v2153_v40 = vmul.f32 %v7986_v3, %v7910_v15  ;;  %v2154_v38 = vmul.f32 %v7986_v3, %v7913_v59  ;;  %v2156_v27 = vmul.f32 %v7986_v3, %v7919_v45 }
 0x3f8   :  { %v2162_v37 = vmul.f32 %v7988_v54, %v2153_v40  ;;  %v2163_v16 = vmul.f32 %v7988_v54, %v2154_v38  ;;  %v2165_v44 = vmul.f32 %v7988_v54, %v2156_v27  ;;  %v5993_v40 = vpack.c.bf16 %v2303_v61, %v2300_v34  ;;  %v2306_v27 = vld [vmem:[%s7032_s8 + $0x390] sm:$0xff]  ;;  %v2328_v34 = vld [vmem:[%s7032_s8 + $0x440] sm:$0xff] }
 0x3f9   :  { %v6089_v38 = vpack.c.bf16 %v2305_v31, %v2302_v12  ;;  %v2374_v61 = vld [vmem:[%s7032_s8 + $0x5b0] sm:$0xff]  ;;  %v6101_v12 = vpack.c.bf16 %v2323_v19, %v2320_v33  ;;  %v2324_v31 = vld [vmem:[%s7032_s8 + $0x420] sm:$0xff]  ;;  %v2345_v19 = vld [vmem:[%s7032_s8 + $0x4c8] sm:$0xff] }
 0x3fa   :  { %v2171_v15 = vadd.f32 %v7999_v28, %v2162_v37  ;;  %v2172_v59 = vadd.f32 %v7999_v28, %v2163_v16  ;;  %v2174_v45 = vadd.f32 %v7999_v28, %v2165_v44  ;;  %v2309_v37 = vld [vmem:[%s7032_s8 + $0x3a8] sm:$0xff]  ;;  %v5995_v16 = vpack.c.bf16 %v2310_v18, %v2307_v60  ;;  %v2327_v60 = vld [vmem:[%s7032_s8 + $0x438] sm:$0xff]  ;;  %v2342_v33 = vld [vmem:[%s7032_s8 + $0x4b0] sm:$0xff] }
 0x3fb   :  { %v6091_v44 = vpack.c.bf16 %v2359_v30, %v2356_v21  ;;  %v5997_v7 = vpack.c.bf16 %v2309_v37, %v2306_v27  ;;  %v2331_v30 = vld [vmem:[%s7032_s8 + $0x458] sm:$0xff]  ;;  %v2380_v27 = vld [vmem:[%s7032_s8 + $0x5e0] sm:$0xff] }
 0x3fc   :  { %v2184_v22 = vmul.f32 %v8008_v8, %v2171_v15  ;;  %v2185_v56 = vmul.f32 %v8008_v8, %v2172_v59  ;;  %v2187_v53 = vmul.f32 %v8008_v8, %v2174_v45  ;;  %vm2176_vm12 = vcmp.ge.f32.partialorder %v2172_v59, 0.0  ;;  %v2383_v37 = vld [vmem:[%s7032_s8 + $0x5f8] sm:$0xff] }
 0x3fd   :  { %vm2175_vm13 = vcmp.ge.f32.partialorder %v2171_v15, 0.0  ;;  %vm2178_vm14 = vcmp.ge.f32.partialorder %v2174_v45, 0.0 }
 0x3fe   :  { %v8019_v23 = vsel %vm2176_vm12, %v2172_v59, %v2185_v56  ;;  %v8021_v42 = vsel %vm2175_vm13, %v2171_v15, %v2184_v22  ;;  %v8033_v36 = vsel %vm2178_vm14, %v2174_v45, %v2187_v53  ;;  %v2313_v15 = vld [vmem:[%s7032_s8 + $0x3c8] sm:$0xff]  ;;  %v2316_v59 = vld [vmem:[%s7032_s8 + $0x3e0] sm:$0xff]  ;;  %v2362_v45 = vld [vmem:[%s7032_s8 + $0x550] sm:$0xff]  ;;  %vm3454_vm12 = vcmask 254976  }
 0x3ff   :  { %2448 = vmatprep.mubr.f32.mxu0 %v8019_v23  ;;  %2590 = vmatprep.mubr.f32.mxu1 %v8019_v23  ;;  %v2312_v22 = vld [vmem:[%s7032_s8 + $0x3c0] sm:$0xff]  ;;  %v2315_v56 = vld [vmem:[%s7032_s8 + $0x3d8] sm:$0xff]  ;;  %v6095_v41 = vpack.c.bf16 %v2365_v49, %v2362_v45  ;;  %v2337_v49 = vld [vmem:[%s7032_s8 + $0x488] sm:$0xff] }
 0x400   :  { %2449 = vmatmul.mubr.f32.vlgmr.msra.gmra.mrb[6].mxu0 %v8021_v42  ;;  %2591 = vmatmul.mubr.f32.vlgmr.msra.gmra.mrb[6].mxu1 %v8021_v42  ;;  %v2319_v53 = vld [vmem:[%s7032_s8 + $0x3f8] sm:$0xff]  ;;  %v6001_v35 = vpack.c.bf16 %v2315_v56, %v2312_v22  ;;  %v2332_v45 = vld [vmem:[%s7032_s8 + $0x460] sm:$0xff]  ;;  %v2667_v22 = vld [vmem:[%s7037_s29 + $0x8] sm:$0xff] }
 0x401   :  { %5986 = vmatpush1.bf16.msra.mxu0 %v5985_v46  ;;  %6082 = vmatpush3.bf16.msra.mxu1 %v6081_v11  ;;  %v5999_v46 = vpack.c.bf16 %v2316_v59, %v2313_v15  ;;  %v2322_v11 = vld [vmem:[%s7032_s8 + $0x410] sm:$0xff]  ;;  %v6107_v59 = vpack.c.bf16 %v2383_v37, %v2380_v27  ;;  %v2670_v56 = vld [vmem:[%s7037_s29 + $0x20] sm:$0xff]  ;;  %v2355_v27 = vld [vmem:[%s7032_s8 + $0x518] sm:$0xff] }
 0x402   :  { %2519 = vmatprep.mubr.f32.mxu0 %v8033_v36  ;;  %2660 = vmatprep.mubr.f32.mxu1 %v8033_v36  ;;  %v2358_v37 = vld [vmem:[%s7032_s8 + $0x530] sm:$0xff] }
 0x403   :  { %5988 = vmatprep.subr.bf16.mxu0 %v5987_v29  ;;  %6084 = vmatprep.subr.bf16.mxu1 %v6083_v57  ;;  %v2321_v29 = vld [vmem:[%s7032_s8 + $0x408] sm:$0xff]  ;;  %v6003_v57 = vpack.c.bf16 %v2322_v11, %v2319_v53  ;;  %v6111_v53 = vpack.c.bf16 %v2670_v56, %v2667_v22  ;;  %v2339_v11 = vld [vmem:[%s7032_s8 + $0x498] sm:$0xff]  ;;  %v2364_v22 = vld [vmem:[%s7032_s8 + $0x560] sm:$0xff] }
 0x404   :  { %v2691_v56 = vld [vmem:[%s7037_s29 + $0xc8] sm:$0xff] }
 0x405   :  { %5990 = vmatpush1.bf16.msra.mxu0 %v5989_v62  ;;  %6086 = vmatpush3.bf16.msra.mxu1 %v6085_v0  ;;  %v2325_v62 = vld [vmem:[%s7032_s8 + $0x428] sm:$0xff]  ;;  %v2155_v0 = vmul.f32 %v7986_v3, %v7916_v43  ;;  %v2326_v43 = vld [vmem:[%s7032_s8 + $0x430] sm:$0xff] }
 0x406   :  { %5992 = vmatprep.subr.bf16.mxu0 %v5991_v20  ;;  %6088 = vmatprep.subr.bf16.mxu1 %v6087_v25  ;;  %v2377_v20 = vld [vmem:[%s7032_s8 + $0x5c8] sm:$0xff]  ;;  %v6005_v25 = vpack.c.bf16 %v2321_v29, %v2318_v10  ;;  %v6007_v18 = vpack.c.bf16 %v2328_v34, %v2325_v62  ;;  %v2673_v10 = vld [vmem:[%s7037_s29 + $0x38] sm:$0xff]  ;;  %v2676_v29 = vld [vmem:[%s7037_s29 + $0x50] sm:$0xff] }
 0x407   :  { %v6103_v21 = vpack.c.bf16 %v2377_v20, %v2374_v61  ;;  %v2329_v3 = vld [vmem:[%s7032_s8 + $0x448] sm:$0xff]  ;;  %v2672_v62 = vld [vmem:[%s7037_s29 + $0x30] sm:$0xff]  ;;  %v6115_v20 = vpack.c.bf16 %v2676_v29, %v2673_v10  ;;  %v2697_v10 = vld [vmem:[%s7037_s29 + $0xf8] sm:$0xff] }
 0x408   :  { %v2349_v34 = vld [vmem:[%s7032_s8 + $0x4e8] sm:$0xff]  ;;  %v2700_v29 = vld [vmem:[%s7037_s29 + $0x110] sm:$0xff] }
 0x409   :  { %5994 = vmatpush1.bf16.msra.mxu0 %v5993_v40  ;;  %6090 = vmatpush3.bf16.msra.mxu1 %v6089_v38  ;;  %v2164_v40 = vmul.f32 %v7988_v54, %v2155_v0  ;;  %v2334_v38 = vld [vmem:[%s7032_s8 + $0x470] sm:$0xff]  ;;  %v2335_v54 = vld [vmem:[%s7032_s8 + $0x478] sm:$0xff]  ;;  %v2675_v0 = vld [vmem:[%s7037_s29 + $0x48] sm:$0xff] }
 0x40a   :  { %5996 = vmatprep.subr.bf16.mxu0 %v5995_v16  ;;  %6092 = vmatprep.subr.bf16.mxu1 %v6091_v44  ;;  %v6009_v16 = vpack.c.bf16 %v2327_v60, %v2324_v31  ;;  %v6105_v44 = vpack.c.bf16 %v2329_v3, %v2326_v43  ;;  %v6011_v15 = vpack.c.bf16 %v2334_v38, %v2331_v30  ;;  %v2682_v31 = vld [vmem:[%s7037_s29 + $0x80] sm:$0xff]  ;;  %v2351_v43 = vld [vmem:[%s7032_s8 + $0x4f8] sm:$0xff] }
 0x40b   :  { %v6021_v60 = vpack.c.bf16 %v2345_v19, %v2342_v33  ;;  %v2681_v38 = vld [vmem:[%s7037_s29 + $0x78] sm:$0xff]  ;;  %v2366_v33 = vld [vmem:[%s7032_s8 + $0x570] sm:$0xff]  ;;  %v2369_v19 = vld [vmem:[%s7032_s8 + $0x588] sm:$0xff] }
 0x40d   :  { %5998 = vmatpush1.bf16.msra.mxu0 %v5997_v7  ;;  %6094 = vmatpush3.bf16.msra.mxu1 %v6093_v50  ;;  %v2173_v7 = vadd.f32 %v7999_v28, %v2164_v40  ;;  %v2340_v50 = vld [vmem:[%s7032_s8 + $0x4a0] sm:$0xff] }
 0x40e   :  { %6000 = vmatprep.subr.bf16.mxu0 %v5999_v46  ;;  %6096 = vmatprep.subr.bf16.mxu1 %v6095_v41  ;;  %v6013_v46 = vpack.c.bf16 %v2333_v52, %v2330_v13  ;;  %v6109_v41 = vpack.c.bf16 %v2335_v54, %v2332_v45  ;;  %v6015_v39 = vpack.c.bf16 %v2340_v50, %v2337_v49  ;;  %v2666_v28 = vld [vmem:[%s7037_s29] sm:$0xff]  ;;  %v2684_v49 = vld [vmem:[%s7037_s29 + $0x90] sm:$0xff]  ;;  %v2361_v50 = vld [vmem:[%s7032_s8 + $0x548] sm:$0xff] }
 0x40f   :  { %v2186_v32 = vmul.f32 %v8008_v8, %v2173_v7  ;;  %vm2177_vm15 = vcmp.ge.f32.partialorder %v2173_v7, 0.0  ;;  %v2678_v40 = vld [vmem:[%s7037_s29 + $0x60] sm:$0xff]  ;;  %v6027_v45 = vpack.c.bf16 %v2358_v37, %v2355_v27  ;;  %v2379_v27 = vld [vmem:[%s7032_s8 + $0x5d8] sm:$0xff]  ;;  %v2382_v37 = vld [vmem:[%s7032_s8 + $0x5f0] sm:$0xff] }
 0x410   :  { %v6121_v52 = vpack.c.bf16 %v2681_v38, %v2678_v40  ;;  %v2702_v40 = vld [vmem:[%s7037_s29 + $0x120] sm:$0xff]  ;;  %v2705_v38 = vld [vmem:[%s7037_s29 + $0x138] sm:$0xff] }
 0x411   :  { %6002 = vmatpush1.bf16.msra.mxu0 %v6001_v35  ;;  %6098 = vmatpush3.bf16.msra.mxu1 %v6097_v14  ;;  %v2343_v35 = vld [vmem:[%s7032_s8 + $0x4b8] sm:$0xff]  ;;  %v2346_v14 = vld [vmem:[%s7032_s8 + $0x4d0] sm:$0xff]  ;;  %v8103_v61 = vsel %vm2177_vm15, %v2173_v7, %v2186_v32  ;;  %v2687_v7 = vld [vmem:[%s7037_s29 + $0xa8] sm:$0xff] }
 0x412   :  { %6004 = vmatprep.subr.bf16.mxu0 %v6003_v57  ;;  %6100 = vmatprep.subr.bf16.mxu1 %v6099_v58  ;;  %v6017_v57 = vpack.c.bf16 %v2339_v11, %v2336_v47  ;;  %v6113_v58 = vpack.c.bf16 %v2669_v2, %v2666_v28  ;;  %v6019_v8 = vpack.c.bf16 %v2346_v14, %v2343_v35  ;;  %v2690_v2 = vld [vmem:[%s7037_s29 + $0xc0] sm:$0xff]  ;;  %v2693_v32 = vld [vmem:[%s7037_s29 + $0xd8] sm:$0xff]  ;;  %v2370_v14 = vld [vmem:[%s7032_s8 + $0x590] sm:$0xff] }
 0x413   :  { %v6125_v47 = vpack.c.bf16 %v2687_v7, %v2684_v49  ;;  %v6031_v11 = vpack.c.bf16 %v2364_v22, %v2361_v50  ;;  %v2367_v35 = vld [vmem:[%s7032_s8 + $0x578] sm:$0xff]  ;;  %v2708_v49 = vld [vmem:[%s7037_s29 + $0x150] sm:$0xff]  ;;  %v2711_v7 = vld [vmem:[%s7037_s29 + $0x168] sm:$0xff] }
 0x414   :  { %v2715_v50 = vld [vmem:[%s7037_s29 + $0x188] sm:$0xff]  ;;  %v2718_v22 = vld [vmem:[%s7037_s29 + $0x1a0] sm:$0xff] }
 0x415   :  { %6006 = vmatpush1.bf16.msra.mxu0 %v6005_v25  ;;  %6102 = vmatpush3.bf16.msra.mxu1 %v6101_v12  ;;  %v2352_v25 = vld [vmem:[%s7032_s8 + $0x500] sm:$0xff]  ;;  %v2679_v12 = vld [vmem:[%s7037_s29 + $0x68] sm:$0xff] }
 0x416   :  { %6008 = vmatprep.subr.bf16.mxu0 %v6007_v18  ;;  %6104 = vmatprep.subr.bf16.mxu1 %v6103_v21  ;;  %v6117_v18 = vpack.c.bf16 %v2675_v0, %v2672_v62  ;;  %v2348_v21 = vld [vmem:[%s7032_s8 + $0x4e0] sm:$0xff]  ;;  %v6023_v3 = vpack.c.bf16 %v2352_v25, %v2349_v34  ;;  %v6119_v30 = vpack.c.bf16 %v2682_v31, %v2679_v12  ;;  %v2696_v0 = vld [vmem:[%s7037_s29 + $0xf0] sm:$0xff]  ;;  %v2699_v34 = vld [vmem:[%s7037_s29 + $0x108] sm:$0xff] }
 0x417   :  { %v6025_v13 = vpack.c.bf16 %v2351_v43, %v2348_v21  ;;  %v6131_v62 = vpack.c.bf16 %v2700_v29, %v2697_v10  ;;  %v2376_v25 = vld [vmem:[%s7032_s8 + $0x5c0] sm:$0xff]  ;;  %v2703_v12 = vld [vmem:[%s7037_s29 + $0x128] sm:$0xff]  ;;  %v2375_v43 = vld [vmem:[%s7032_s8 + $0x5b8] sm:$0xff] }
 0x418   :  { %v2706_v31 = vld [vmem:[%s7037_s29 + $0x140] sm:$0xff]  ;;  %v2725_v29 = vld [vmem:[%s7037_s29 + $0x1d8] sm:$0xff] }
 0x419   :  { %6010 = vmatpush1.bf16.msra.mxu0 %v6009_v16  ;;  %6106 = vmatpush3.bf16.msra.mxu1 %v6105_v44  ;;  %v2685_v16 = vld [vmem:[%s7037_s29 + $0x98] sm:$0xff]  ;;  %v2688_v44 = vld [vmem:[%s7037_s29 + $0xb0] sm:$0xff]  ;;  %v2372_v21 = vld [vmem:[%s7032_s8 + $0x5a0] sm:$0xff] }
 0x41a   :  { %6012 = vmatprep.subr.bf16.mxu0 %v6011_v15  ;;  %6108 = vmatprep.subr.bf16.mxu1 %v6107_v59  ;;  %v2354_v15 = vld [vmem:[%s7032_s8 + $0x510] sm:$0xff]  ;;  %v2357_v59 = vld [vmem:[%s7032_s8 + $0x528] sm:$0xff]  ;;  %v6123_v54 = vpack.c.bf16 %v2688_v44, %v2685_v16  ;;  %v2709_v16 = vld [vmem:[%s7037_s29 + $0x158] sm:$0xff] }
 0x41b   :  { %v2712_v44 = vld [vmem:[%s7037_s29 + $0x170] sm:$0xff]  ;;  %v2722_v10 = vld [vmem:[%s7037_s29 + $0x1c0] sm:$0xff] }
 0x41d   :  { %6014 = vmatpush1.bf16.msra.mxu0 %v6013_v46  ;;  %6110 = vmatpush3.bf16.msra.mxu1 %v6109_v41  ;;  %v2694_v46 = vld [vmem:[%s7037_s29 + $0xe0] sm:$0xff]  ;;  %v6029_v41 = vpack.c.bf16 %v2357_v59, %v2354_v15  ;;  %v2378_v15 = vld [vmem:[%s7032_s8 + $0x5d0] sm:$0xff]  ;;  %v2381_v59 = vld [vmem:[%s7032_s8 + $0x5e8] sm:$0xff] }
 0x41e   :  { %6016 = vmatprep.subr.bf16.mxu0 %v6015_v39  ;;  %6112 = vmatprep.subr.bf16.mxu1 %v6111_v53  ;;  %v2360_v39 = vld [vmem:[%s7032_s8 + $0x540] sm:$0xff]  ;;  %v2363_v53 = vld [vmem:[%s7032_s8 + $0x558] sm:$0xff]  ;;  %v6127_v28 = vpack.c.bf16 %v2694_v46, %v2691_v56  ;;  %v2716_v56 = vld [vmem:[%s7037_s29 + $0x190] sm:$0xff] }
 0x41f   :  { %v2719_v46 = vld [vmem:[%s7037_s29 + $0x1a8] sm:$0xff] }
 0x420   :  { %2661 = vmatmul.mubr.f32.vlgmr.msra.gmra.mrb[8].mxu1 %v8103_v61 }
 0x421   :  { %6018 = vmatpush1.bf16.msra.mxu0 %v6017_v57  ;;  %6114 = vmatpush1.bf16.msra.mxu1 %v6113_v58  ;;  %v6033_v57 = vpack.c.bf16 %v2363_v53, %v2360_v39  ;;  %v6129_v58 = vpack.c.bf16 %v2693_v32, %v2690_v2  ;;  %v2714_v39 = vld [vmem:[%s7037_s29 + $0x180] sm:$0xff]  ;;  %v6143_v53 = vpack.c.bf16 %v2718_v22, %v2715_v50  ;;  %v2668_v2 = vld [vmem:[%s7037_s29 + $0x10] sm:$0xff]  ;;  %v2671_v32 = vld [vmem:[%s7037_s29 + $0x28] sm:$0xff] }
 0x422   :  { %2922 = vmatprep.mubr.f32.mxu1 %v8019_v23  ;;  %6020 = vmatprep.subr.bf16.mxu0 %v6019_v8  ;;  %v6035_v8 = vpack.c.bf16 %v2370_v14, %v2367_v35  ;;  %v2721_v35 = vld [vmem:[%s7037_s29 + $0x1b8] sm:$0xff]  ;;  %v2724_v14 = vld [vmem:[%s7037_s29 + $0x1d0] sm:$0xff]  ;;  %v2739_v50 = vld [vmem:[%s7037_s29 + $0x248] sm:$0xff] }
 0x423   :  { %6116 = vmatprep.subr.bf16.mxu1 %v6115_v20  ;;  %v2373_v20 = vld [vmem:[%s7032_s8 + $0x5a8] sm:$0xff]  ;;  %v2742_v22 = vld [vmem:[%s7037_s29 + $0x260] sm:$0xff]  ;;  %s9231_s8 = sld [smem:[#allocation11_spill]] }
 0x425   :  { %6022 = vmatpush1.bf16.msra.mxu0 %v6021_v60  ;;  %6118 = vmatpush1.bf16.msra.mxu1 %v6117_v18  ;;  %v6037_v60 = vpack.c.bf16 %v2369_v19, %v2366_v33  ;;  %v6133_v18 = vpack.c.bf16 %v2699_v34, %v2696_v0  ;;  %v2720_v33 = vld [vmem:[%s7037_s29 + $0x1b0] sm:$0xff]  ;;  %v2723_v19 = vld [vmem:[%s7037_s29 + $0x1c8] sm:$0xff]  ;;  %v2677_v0 = vld [vmem:[%s7037_s29 + $0x58] sm:$0xff] }
 0x426   :  { %6024 = vmatprep.subr.bf16.mxu0 %v6023_v3  ;;  %6120 = vmatprep.subr.bf16.mxu1 %v6119_v30  ;;  %v6039_v3 = vpack.c.bf16 %v2376_v25, %v2373_v20  ;;  %v6135_v30 = vpack.c.bf16 %v2706_v31, %v2703_v12  ;;  %v2727_v34 = vld [vmem:[%s7037_s29 + $0x1e8] sm:$0xff]  ;;  %v6243_v20 = vpack.c.bf16 %v2725_v29, %v2722_v10  ;;  %v2730_v25 = vld [vmem:[%s7037_s29 + $0x200] sm:$0xff]  ;;  %v2728_v12 = vld [vmem:[%s7037_s29 + $0x1f0] sm:$0xff] }
 0x427   :  { %v2731_v31 = vld [vmem:[%s7037_s29 + $0x208] sm:$0xff]  ;;  %v2746_v10 = vld [vmem:[%s7037_s29 + $0x280] sm:$0xff]  ;;  %v2749_v29 = vld [vmem:[%s7037_s29 + $0x298] sm:$0xff] }
 0x429   :  { %6026 = vmatpush1.bf16.msra.mxu0 %v6025_v13  ;;  %6122 = vmatpush1.bf16.msra.mxu1 %v6121_v52  ;;  %v6041_v13 = vpack.c.bf16 %v2375_v43, %v2372_v21  ;;  %v6137_v52 = vpack.c.bf16 %v2705_v38, %v2702_v40  ;;  %v2726_v21 = vld [vmem:[%s7037_s29 + $0x1e0] sm:$0xff]  ;;  %v2729_v43 = vld [vmem:[%s7037_s29 + $0x1f8] sm:$0xff]  ;;  %v2680_v40 = vld [vmem:[%s7037_s29 + $0x70] sm:$0xff] }
 0x42a   :  { %6028 = vmatprep.subr.bf16.mxu0 %v6027_v45  ;;  %6124 = vmatprep.subr.bf16.mxu1 %v6123_v54  ;;  %v6043_v45 = vpack.c.bf16 %v2382_v37, %v2379_v27  ;;  %v6139_v54 = vpack.c.bf16 %v2712_v44, %v2709_v16  ;;  %v2683_v38 = vld [vmem:[%s7037_s29 + $0x88] sm:$0xff]  ;;  %v2733_v27 = vld [vmem:[%s7037_s29 + $0x218] sm:$0xff]  ;;  %v2736_v37 = vld [vmem:[%s7037_s29 + $0x230] sm:$0xff] }
 0x42b   :  { %v2734_v16 = vld [vmem:[%s7037_s29 + $0x220] sm:$0xff]  ;;  %v2737_v44 = vld [vmem:[%s7037_s29 + $0x238] sm:$0xff] }
 0x42d   :  { %6030 = vmatpush1.bf16.msra.mxu0 %v6029_v41  ;;  %6126 = vmatpush1.bf16.msra.mxu1 %v6125_v47  ;;  %v6045_v41 = vpack.c.bf16 %v2381_v59, %v2378_v15  ;;  %v6141_v47 = vpack.c.bf16 %v2711_v7, %v2708_v49  ;;  %v2732_v15 = vld [vmem:[%s7037_s29 + $0x210] sm:$0xff]  ;;  %v2735_v59 = vld [vmem:[%s7037_s29 + $0x228] sm:$0xff]  ;;  %v2686_v49 = vld [vmem:[%s7037_s29 + $0xa0] sm:$0xff] }
 0x42e   :  { %6032 = vmatprep.subr.bf16.mxu0 %v6031_v11  ;;  %6128 = vmatprep.subr.bf16.mxu1 %v6127_v28  ;;  %v6239_v11 = vpack.c.bf16 %v2719_v46, %v2716_v56  ;;  %v2717_v28 = vld [vmem:[%s7037_s29 + $0x198] sm:$0xff]  ;;  %v2740_v56 = vld [vmem:[%s7037_s29 + $0x250] sm:$0xff]  ;;  %v2743_v46 = vld [vmem:[%s7037_s29 + $0x268] sm:$0xff] }
 0x42f   :  { %v2689_v7 = vld [vmem:[%s7037_s29 + $0xb8] sm:$0xff] }
 0x431   :  { %6034 = vmatpush1.bf16.msra.mxu0 %v6033_v57  ;;  %6130 = vmatpush1.bf16.msra.mxu1 %v6129_v58  ;;  %v6145_v57 = vpack.c.bf16 %v2717_v28, %v2714_v39  ;;  %v6241_v58 = vpack.c.bf16 %v2671_v32, %v2668_v2  ;;  %v2738_v39 = vld [vmem:[%s7037_s29 + $0x240] sm:$0xff]  ;;  %v6255_v28 = vpack.c.bf16 %v2743_v46, %v2740_v56  ;;  %v2692_v2 = vld [vmem:[%s7037_s29 + $0xd0] sm:$0xff]  ;;  %v2695_v32 = vld [vmem:[%s7037_s29 + $0xe8] sm:$0xff] }
 0x432   :  { %6036 = vmatprep.subr.bf16.mxu0 %v6035_v8  ;;  %6132 = vmatprep.subr.bf16.mxu1 %v6131_v62  ;;  %v6147_v8 = vpack.c.bf16 %v2724_v14, %v2721_v35  ;;  %v2674_v62 = vld [vmem:[%s7037_s29 + $0x40] sm:$0xff]  ;;  %v2745_v35 = vld [vmem:[%s7037_s29 + $0x278] sm:$0xff]  ;;  %v2748_v14 = vld [vmem:[%s7037_s29 + $0x290] sm:$0xff] }
 0x433   :  { %v2812_v56 = vld [vmem:[%s7037_s29 + $0x490] sm:$0xff]  ;;  %v2815_v46 = vld [vmem:[%s7037_s29 + $0x4a8] sm:$0xff] }
 0x435   :  { %6038 = vmatpush1.bf16.msra.mxu0 %v6037_v60  ;;  %6134 = vmatpush1.bf16.msra.mxu1 %v6133_v18  ;;  %v6149_v60 = vpack.c.bf16 %v2723_v19, %v2720_v33  ;;  %v6245_v18 = vpack.c.bf16 %v2677_v0, %v2674_v62  ;;  %v2744_v33 = vld [vmem:[%s7037_s29 + $0x270] sm:$0xff]  ;;  %v2747_v19 = vld [vmem:[%s7037_s29 + $0x288] sm:$0xff]  ;;  %v6259_v62 = vpack.c.bf16 %v2749_v29, %v2746_v10  ;;  %v2698_v0 = vld [vmem:[%s7037_s29 + $0x100] sm:$0xff] }
 0x436   :  { %6040 = vmatprep.subr.bf16.mxu0 %v6039_v3  ;;  %6136 = vmatprep.subr.bf16.mxu1 %v6135_v30  ;;  %v6151_v3 = vpack.c.bf16 %v2730_v25, %v2727_v34  ;;  %v6247_v30 = vpack.c.bf16 %v2731_v31, %v2728_v12  ;;  %v2701_v34 = vld [vmem:[%s7037_s29 + $0x118] sm:$0xff]  ;;  %v2754_v25 = vld [vmem:[%s7037_s29 + $0x2c0] sm:$0xff]  ;;  %v2752_v12 = vld [vmem:[%s7037_s29 + $0x2b0] sm:$0xff] }
 0x437   :  { %v2755_v31 = vld [vmem:[%s7037_s29 + $0x2c8] sm:$0xff]  ;;  %v2818_v10 = vld [vmem:[%s7037_s29 + $0x4c0] sm:$0xff]  ;;  %v2821_v29 = vld [vmem:[%s7037_s29 + $0x4d8] sm:$0xff] }
 0x439   :  { %6042 = vmatpush1.bf16.msra.mxu0 %v6041_v13  ;;  %6138 = vmatpush1.bf16.msra.mxu1 %v6137_v52  ;;  %v6153_v13 = vpack.c.bf16 %v2729_v43, %v2726_v21  ;;  %v6249_v52 = vpack.c.bf16 %v2683_v38, %v2680_v40  ;;  %v2750_v21 = vld [vmem:[%s7037_s29 + $0x2a0] sm:$0xff]  ;;  %v2753_v43 = vld [vmem:[%s7037_s29 + $0x2b8] sm:$0xff]  ;;  %v2704_v40 = vld [vmem:[%s7037_s29 + $0x130] sm:$0xff] }
 0x43a   :  { %6044 = vmatprep.subr.bf16.mxu0 %v6043_v45  ;;  %6140 = vmatprep.subr.bf16.mxu1 %v6139_v54  ;;  %v6155_v45 = vpack.c.bf16 %v2736_v37, %v2733_v27  ;;  %v6251_v54 = vpack.c.bf16 %v2737_v44, %v2734_v16  ;;  %v2707_v38 = vld [vmem:[%s7037_s29 + $0x148] sm:$0xff]  ;;  %v2757_v27 = vld [vmem:[%s7037_s29 + $0x2d8] sm:$0xff]  ;;  %v2760_v37 = vld [vmem:[%s7037_s29 + $0x2f0] sm:$0xff] }
 0x43b   :  { %v2758_v16 = vld [vmem:[%s7037_s29 + $0x2e0] sm:$0xff]  ;;  %v2761_v44 = vld [vmem:[%s7037_s29 + $0x2f8] sm:$0xff] }
 0x43d   :  { %6046 = vmatpush1.bf16.msra.mxu0 %v6045_v41  ;;  %6142 = vmatpush1.bf16.msra.mxu1 %v6141_v47  ;;  %v6157_v41 = vpack.c.bf16 %v2735_v59, %v2732_v15  ;;  %v6253_v47 = vpack.c.bf16 %v2689_v7, %v2686_v49  ;;  %v2756_v15 = vld [vmem:[%s7037_s29 + $0x2d0] sm:$0xff]  ;;  %v2759_v59 = vld [vmem:[%s7037_s29 + $0x2e8] sm:$0xff]  ;;  %v2710_v49 = vld [vmem:[%s7037_s29 + $0x160] sm:$0xff] }
 0x43e   :  { %6144 = vmatprep.subr.bf16.mxu1 %v6143_v53  ;;  %6240 = vmatprep.subr.bf16.mxu0 %v6239_v11  ;;  %v2741_v53 = vld [vmem:[%s7037_s29 + $0x258] sm:$0xff]  ;;  %v6159_v11 = vpack.c.bf16 %v2742_v22, %v2739_v50  ;;  %v2763_v50 = vld [vmem:[%s7037_s29 + $0x308] sm:$0xff]  ;;  %v2766_v22 = vld [vmem:[%s7037_s29 + $0x320] sm:$0xff] }
 0x43f   :  { %v2713_v7 = vld [vmem:[%s7037_s29 + $0x178] sm:$0xff] }
 0x440   :  { %2520 = vmatmul.mubr.f32.vlgmr.msra.gmra.mrb[6].mxu0 %v8103_v61 }
 0x441   :  { %6146 = vmatpush1.bf16.msra.mxu1 %v6145_v57  ;;  %6242 = vmatpush3.bf16.msra.mxu0 %v6241_v58  ;;  %v6161_v57 = vpack.c.bf16 %v2741_v53, %v2738_v39  ;;  %v6257_v58 = vpack.c.bf16 %v2695_v32, %v2692_v2  ;;  %v6175_v39 = vpack.c.bf16 %v2766_v22, %v2763_v50  ;;  %v2764_v2 = vld [vmem:[%s7037_s29 + $0x310] sm:$0xff]  ;;  %v2767_v32 = vld [vmem:[%s7037_s29 + $0x328] sm:$0xff]  ;;  %v2790_v22 = vld [vmem:[%s7037_s29 + $0x3e0] sm:$0xff] }
 0x442   :  { %3064 = vmatprep.mubr.f32.mxu0 %v8019_v23  ;;  %6148 = vmatprep.subr.bf16.mxu1 %v6147_v8  ;;  %v6163_v8 = vpack.c.bf16 %v2748_v14, %v2745_v35  ;;  %v6271_v53 = vpack.c.bf16 %v2815_v46, %v2812_v56  ;;  %v2769_v35 = vld [vmem:[%s7037_s29 + $0x338] sm:$0xff]  ;;  %v2772_v14 = vld [vmem:[%s7037_s29 + $0x350] sm:$0xff]  ;;  %v2787_v50 = vld [vmem:[%s7037_s29 + $0x3c8] sm:$0xff] }
 0x443   :  { %6244 = vmatprep.subr.bf16.mxu0 %v6243_v20  ;;  %v2751_v20 = vld [vmem:[%s7037_s29 + $0x2a8] sm:$0xff]  ;;  %v2836_v56 = vld [vmem:[%s7037_s29 + $0x550] sm:$0xff] }
 0x444   :  { %v2839_v46 = vld [vmem:[%s7037_s29 + $0x568] sm:$0xff] }
 0x445   :  { %6150 = vmatpush1.bf16.msra.mxu1 %v6149_v60  ;;  %6246 = vmatpush3.bf16.msra.mxu0 %v6245_v18  ;;  %v6165_v60 = vpack.c.bf16 %v2747_v19, %v2744_v33  ;;  %v6261_v18 = vpack.c.bf16 %v2701_v34, %v2698_v0  ;;  %v2768_v33 = vld [vmem:[%s7037_s29 + $0x330] sm:$0xff]  ;;  %v2771_v19 = vld [vmem:[%s7037_s29 + $0x348] sm:$0xff]  ;;  %v6275_v0 = vpack.c.bf16 %v2821_v29, %v2818_v10  ;;  %v2773_v34 = vld [vmem:[%s7037_s29 + $0x358] sm:$0xff] }
 0x446   :  { %6152 = vmatprep.subr.bf16.mxu1 %v6151_v3  ;;  %6248 = vmatprep.subr.bf16.mxu0 %v6247_v30  ;;  %v6167_v3 = vpack.c.bf16 %v2754_v25, %v2751_v20  ;;  %v6263_v30 = vpack.c.bf16 %v2755_v31, %v2752_v12  ;;  %v2775_v20 = vld [vmem:[%s7037_s29 + $0x368] sm:$0xff]  ;;  %v2778_v25 = vld [vmem:[%s7037_s29 + $0x380] sm:$0xff]  ;;  %v2824_v12 = vld [vmem:[%s7037_s29 + $0x4f0] sm:$0xff] }
 0x447   :  { %v2827_v31 = vld [vmem:[%s7037_s29 + $0x508] sm:$0xff]  ;;  %v2842_v10 = vld [vmem:[%s7037_s29 + $0x580] sm:$0xff]  ;;  %v2845_v29 = vld [vmem:[%s7037_s29 + $0x598] sm:$0xff] }
 0x449   :  { %6154 = vmatpush1.bf16.msra.mxu1 %v6153_v13  ;;  %6250 = vmatpush3.bf16.msra.mxu0 %v6249_v52  ;;  %v6169_v13 = vpack.c.bf16 %v2753_v43, %v2750_v21  ;;  %v6265_v52 = vpack.c.bf16 %v2707_v38, %v2704_v40  ;;  %v6183_v21 = vpack.c.bf16 %v2778_v25, %v2775_v20  ;;  %v2774_v43 = vld [vmem:[%s7037_s29 + $0x360] sm:$0xff]  ;;  %v2779_v38 = vld [vmem:[%s7037_s29 + $0x388] sm:$0xff] }
 0x44a   :  { %6156 = vmatprep.subr.bf16.mxu1 %v6155_v45  ;;  %6252 = vmatprep.subr.bf16.mxu0 %v6251_v54  ;;  %v6171_v45 = vpack.c.bf16 %v2760_v37, %v2757_v27  ;;  %v6267_v54 = vpack.c.bf16 %v2761_v44, %v2758_v16  ;;  %v6279_v40 = vpack.c.bf16 %v2827_v31, %v2824_v12  ;;  %v2781_v27 = vld [vmem:[%s7037_s29 + $0x398] sm:$0xff]  ;;  %v2784_v37 = vld [vmem:[%s7037_s29 + $0x3b0] sm:$0xff]  ;;  %v2830_v16 = vld [vmem:[%s7037_s29 + $0x520] sm:$0xff] }
 0x44b   :  { %v2833_v44 = vld [vmem:[%s7037_s29 + $0x538] sm:$0xff]  ;;  %v2799_v20 = vld [vmem:[%s7037_s29 + $0x428] sm:$0xff]  ;;  %v2802_v25 = vld [vmem:[%s7037_s29 + $0x440] sm:$0xff] }
 0x44c   :  { %v2848_v12 = vld [vmem:[%s7037_s29 + $0x5b0] sm:$0xff]  ;;  %v2851_v31 = vld [vmem:[%s7037_s29 + $0x5c8] sm:$0xff] }
 0x44d   :  { %6158 = vmatpush1.bf16.msra.mxu1 %v6157_v41  ;;  %6254 = vmatpush3.bf16.msra.mxu0 %v6253_v47  ;;  %v6173_v41 = vpack.c.bf16 %v2759_v59, %v2756_v15  ;;  %v6269_v47 = vpack.c.bf16 %v2713_v7, %v2710_v49  ;;  %v6187_v15 = vpack.c.bf16 %v2784_v37, %v2781_v27  ;;  %v2780_v59 = vld [vmem:[%s7037_s29 + $0x390] sm:$0xff]  ;;  %v2785_v7 = vld [vmem:[%s7037_s29 + $0x3b8] sm:$0xff] }
 0x44e   :  { %6160 = vmatprep.subr.bf16.mxu1 %v6159_v11  ;;  %6256 = vmatprep.subr.bf16.mxu0 %v6255_v28  ;;  %v2762_v11 = vld [vmem:[%s7037_s29 + $0x300] sm:$0xff]  ;;  %v2765_v28 = vld [vmem:[%s7037_s29 + $0x318] sm:$0xff]  ;;  %v6283_v49 = vpack.c.bf16 %v2833_v44, %v2830_v16  ;;  %v2808_v37 = vld [vmem:[%s7037_s29 + $0x470] sm:$0xff] }
 0x44f   :  { %v2805_v27 = vld [vmem:[%s7037_s29 + $0x458] sm:$0xff]  ;;  %v2854_v16 = vld [vmem:[%s7037_s29 + $0x5e0] sm:$0xff] }
 0x450   :  { %v2857_v44 = vld [vmem:[%s7037_s29 + $0x5f8] sm:$0xff] }
 0x451   :  { %6162 = vmatpush1.bf16.msra.mxu1 %v6161_v57  ;;  %6258 = vmatpush3.bf16.msra.mxu0 %v6257_v58  ;;  %v6177_v57 = vpack.c.bf16 %v2765_v28, %v2762_v11  ;;  %v6273_v58 = vpack.c.bf16 %v2767_v32, %v2764_v2  ;;  %v2789_v11 = vld [vmem:[%s7037_s29 + $0x3d8] sm:$0xff]  ;;  %v2788_v28 = vld [vmem:[%s7037_s29 + $0x3d0] sm:$0xff]  ;;  %v6287_v2 = vpack.c.bf16 %v2839_v46, %v2836_v56  ;;  %v2791_v32 = vld [vmem:[%s7037_s29 + $0x3e8] sm:$0xff] }
 0x452   :  { %6164 = vmatprep.subr.bf16.mxu1 %v6163_v8  ;;  %6260 = vmatprep.subr.bf16.mxu0 %v6259_v62  ;;  %v2770_v8 = vld [vmem:[%s7037_s29 + $0x340] sm:$0xff]  ;;  %v6179_v62 = vpack.c.bf16 %v2772_v14, %v2769_v35  ;;  %v2793_v35 = vld [vmem:[%s7037_s29 + $0x3f8] sm:$0xff]  ;;  %v2796_v14 = vld [vmem:[%s7037_s29 + $0x410] sm:$0xff] }
 0x455   :  { %6166 = vmatpush1.bf16.msra.mxu1 %v6165_v60  ;;  %6262 = vmatpush3.bf16.msra.mxu0 %v6261_v18  ;;  %v6181_v60 = vpack.c.bf16 %v2771_v19, %v2768_v33  ;;  %v6277_v18 = vpack.c.bf16 %v2773_v34, %v2770_v8  ;;  %v6195_v33 = vpack.c.bf16 %v2796_v14, %v2793_v35  ;;  %v2792_v19 = vld [vmem:[%s7037_s29 + $0x3f0] sm:$0xff]  ;;  %v2795_v8 = vld [vmem:[%s7037_s29 + $0x408] sm:$0xff]  ;;  %v2797_v34 = vld [vmem:[%s7037_s29 + $0x418] sm:$0xff] }
 0x456   :  { %6168 = vmatprep.subr.bf16.mxu1 %v6167_v3  ;;  %6264 = vmatprep.subr.bf16.mxu0 %v6263_v30  ;;  %v2777_v3 = vld [vmem:[%s7037_s29 + $0x378] sm:$0xff]  ;;  %v2776_v30 = vld [vmem:[%s7037_s29 + $0x370] sm:$0xff]  ;;  %v2819_v35 = vld [vmem:[%s7037_s29 + $0x4c8] sm:$0xff] }
 0x457   :  { %v2823_v14 = vld [vmem:[%s7037_s29 + $0x4e8] sm:$0xff] }
 0x459   :  { %6170 = vmatpush1.bf16.msra.mxu1 %v6169_v13  ;;  %6266 = vmatpush3.bf16.msra.mxu0 %v6265_v52  ;;  %v6185_v13 = vpack.c.bf16 %v2777_v3, %v2774_v43  ;;  %v6281_v52 = vpack.c.bf16 %v2779_v38, %v2776_v30  ;;  %v2798_v43 = vld [vmem:[%s7037_s29 + $0x420] sm:$0xff]  ;;  %v2801_v3 = vld [vmem:[%s7037_s29 + $0x438] sm:$0xff]  ;;  %v2800_v30 = vld [vmem:[%s7037_s29 + $0x430] sm:$0xff] }
 0x45a   :  { %6172 = vmatprep.subr.bf16.mxu1 %v6171_v45  ;;  %6268 = vmatprep.subr.bf16.mxu0 %v6267_v54  ;;  %v2783_v45 = vld [vmem:[%s7037_s29 + $0x3a8] sm:$0xff]  ;;  %v2782_v54 = vld [vmem:[%s7037_s29 + $0x3a0] sm:$0xff] }
 0x45b   :  { %v2803_v38 = vld [vmem:[%s7037_s29 + $0x448] sm:$0xff] }
 0x45d   :  { %6174 = vmatpush1.bf16.msra.mxu1 %v6173_v41  ;;  %6270 = vmatpush3.bf16.msra.mxu0 %v6269_v47  ;;  %v6189_v41 = vpack.c.bf16 %v2783_v45, %v2780_v59  ;;  %v6285_v47 = vpack.c.bf16 %v2785_v7, %v2782_v54  ;;  %v2804_v59 = vld [vmem:[%s7037_s29 + $0x450] sm:$0xff]  ;;  %v2807_v45 = vld [vmem:[%s7037_s29 + $0x468] sm:$0xff]  ;;  %v2806_v54 = vld [vmem:[%s7037_s29 + $0x460] sm:$0xff] }
 0x45e   :  { %6176 = vmatprep.subr.bf16.mxu1 %v6175_v39  ;;  %6272 = vmatprep.subr.bf16.mxu0 %v6271_v53  ;;  %v6191_v39 = vpack.c.bf16 %v2790_v22, %v2787_v50  ;;  %v2786_v53 = vld [vmem:[%s7037_s29 + $0x3c0] sm:$0xff]  ;;  %v2809_v7 = vld [vmem:[%s7037_s29 + $0x478] sm:$0xff]  ;;  %v2811_v50 = vld [vmem:[%s7037_s29 + $0x488] sm:$0xff]  ;;  %v6205_v56 = vpack.c.bf16 %v2807_v45, %v2804_v59 }
 0x45f   :  { %v2814_v22 = vld [vmem:[%s7037_s29 + $0x4a0] sm:$0xff]  ;;  %v6301_v46 = vpack.c.bf16 %v2809_v7, %v2806_v54  ;;  %v2849_v59 = vld [vmem:[%s7037_s29 + $0x5b8] sm:$0xff]  ;;  %v2856_v54 = vld [vmem:[%s7037_s29 + $0x5f0] sm:$0xff] }
 0x460   :  { %2923 = vmatmul.mubr.f32.vlgmr.msra.gmra.mrb[10].mxu1 %v8021_v42  ;;  %3065 = vmatmul.mubr.f32.vlgmr.msra.gmra.mrb[8].mxu0 %v8021_v42  ;;  %v2853_v45 = vld [vmem:[%s7037_s29 + $0x5d8] sm:$0xff] }
 0x461   :  { %6178 = vmatpush1.bf16.msra.mxu1 %v6177_v57  ;;  %2993 = vmatprep.mubr.f32.mxu1 %v8033_v36  ;;  %v6193_v57 = vpack.c.bf16 %v2789_v11, %v2786_v53  ;;  %v2817_v53 = vld [vmem:[%s7037_s29 + $0x4b8] sm:$0xff]  ;;  %v2820_v11 = vld [vmem:[%s7037_s29 + $0x4d0] sm:$0xff]  ;;  %v6235_v7 = vpack.c.bf16 %v2856_v54, %v2853_v45  ;;  %v3708_v45 = vld [vmem:[%s7047_s21 + $0x28] sm:$0xff] }
 0x462   :  { %6274 = vmatpush3.bf16.msra.mxu0 %v6273_v58  ;;  %3134 = vmatprep.mubr.f32.mxu0 %v8033_v36  ;;  %v6289_v58 = vpack.c.bf16 %v2791_v32, %v2788_v28  ;;  %v2816_v32 = vld [vmem:[%s7037_s29 + $0x4b0] sm:$0xff]  ;;  %v3706_v54 = vld [vmem:[%s7047_s21 + $0x18] sm:$0xff] }
 0x463   :  { %6180 = vmatprep.subr.bf16.mxu1 %v6179_v62  ;;  %6276 = vmatprep.subr.bf16.mxu0 %v6275_v0  ;;  %v2794_v62 = vld [vmem:[%s7037_s29 + $0x400] sm:$0xff]  ;;  %v6291_v0 = vpack.c.bf16 %v2845_v29, %v2842_v10  ;;  %v6213_v29 = vpack.c.bf16 %v2819_v35, %v2816_v32 }
 0x464   :  { %v2826_v10 = vld [vmem:[%s7037_s29 + $0x500] sm:$0xff] }
 0x465   :  { %6182 = vmatpush1.bf16.msra.mxu1 %v6181_v60  ;;  %v6197_v60 = vpack.c.bf16 %v2795_v8, %v2792_v19  ;;  %v8301_v19 = vld [vmem:[#allocation2] sm:$0xff]  ;;  %v2829_v8 = vld [vmem:[%s7037_s29 + $0x518] sm:$0xff] }
 0x466   :  { %6278 = vmatpush3.bf16.msra.mxu0 %v6277_v18  ;;  %6184 = vmatprep.subr.bf16.mxu1 %v6183_v21  ;;  %v6293_v18 = vpack.c.bf16 %v2797_v34, %v2794_v62  ;;  %v6199_v21 = vpack.c.bf16 %v2802_v25, %v2799_v20  ;;  %v2832_v62 = vld [vmem:[%s7037_s29 + $0x530] sm:$0xff]  ;;  %v2831_v25 = vld [vmem:[%s7037_s29 + $0x528] sm:$0xff] }
 0x467   :  { %6280 = vmatprep.subr.bf16.mxu0 %v6279_v40  ;;  %v6295_v40 = vpack.c.bf16 %v2851_v31, %v2848_v12  ;;  %v6219_v34 = vpack.c.bf16 %v2832_v62, %v2829_v8  ;;  %v2828_v20 = vld [vmem:[%s7037_s29 + $0x510] sm:$0xff]  ;;  %v2835_v12 = vld [vmem:[%s7037_s29 + $0x548] sm:$0xff]  ;;  %v2838_v31 = vld [vmem:[%s7037_s29 + $0x560] sm:$0xff] }
 0x469   :  { %6186 = vmatpush1.bf16.msra.mxu1 %v6185_v13  ;;  %v6201_v13 = vpack.c.bf16 %v2801_v3, %v2798_v43  ;;  %v2837_v43 = vld [vmem:[%s7037_s29 + $0x558] sm:$0xff] }
 0x46a   :  { %6282 = vmatpush3.bf16.msra.mxu0 %v6281_v52  ;;  %6188 = vmatprep.subr.bf16.mxu1 %v6187_v15  ;;  %v6297_v52 = vpack.c.bf16 %v2803_v38, %v2800_v30  ;;  %v6203_v15 = vpack.c.bf16 %v2808_v37, %v2805_v27  ;;  %v2841_v3 = vld [vmem:[%s7037_s29 + $0x578] sm:$0xff]  ;;  %v2844_v30 = vld [vmem:[%s7037_s29 + $0x590] sm:$0xff]  ;;  %v2843_v37 = vld [vmem:[%s7037_s29 + $0x588] sm:$0xff] }
 0x46b   :  { %6284 = vmatprep.subr.bf16.mxu0 %v6283_v49  ;;  %v6299_v49 = vpack.c.bf16 %v2857_v44, %v2854_v16  ;;  %v6227_v38 = vpack.c.bf16 %v2844_v30, %v2841_v3  ;;  %v2840_v27 = vld [vmem:[%s7037_s29 + $0x570] sm:$0xff]  ;;  %v2847_v16 = vld [vmem:[%s7037_s29 + $0x5a8] sm:$0xff]  ;;  %v2850_v44 = vld [vmem:[%s7037_s29 + $0x5c0] sm:$0xff] }
 0x46d   :  { %6190 = vmatpush1.bf16.msra.mxu1 %v6189_v41  ;;  %v6207_v41 = vpack.c.bf16 %v2814_v22, %v2811_v50  ;;  %v2852_v50 = vld [vmem:[%s7037_s29 + $0x5d0] sm:$0xff]  ;;  %v2855_v22 = vld [vmem:[%s7037_s29 + $0x5e8] sm:$0xff] }
 0x46e   :  { %6286 = vmatpush3.bf16.msra.mxu0 %v6285_v47  ;;  %6192 = vmatprep.subr.bf16.mxu1 %v6191_v39  ;;  %v2810_v47 = vld [vmem:[%s7037_s29 + $0x480] sm:$0xff]  ;;  %v2813_v39 = vld [vmem:[%s7037_s29 + $0x498] sm:$0xff] }
 0x46f   :  { %6288 = vmatprep.subr.bf16.mxu0 %v6287_v2  ;;  %v6209_v28 = vpack.c.bf16 %v2813_v39, %v2810_v47  ;;  %v6211_v2 = vpack.c.bf16 %v2820_v11, %v2817_v53 }
 0x471   :  { %6194 = vmatpush1.bf16.msra.mxu1 %v6193_v57  ;;  %v6215_v57 = vpack.c.bf16 %v2826_v10, %v2823_v14 }
 0x472   :  { %6290 = vmatpush3.bf16.msra.mxu0 %v6289_v58  ;;  %6196 = vmatprep.subr.bf16.mxu1 %v6195_v33  ;;  %v2822_v58 = vld [vmem:[%s7037_s29 + $0x4e0] sm:$0xff]  ;;  %v2825_v33 = vld [vmem:[%s7037_s29 + $0x4f8] sm:$0xff] }
 0x473   :  { %6292 = vmatprep.subr.bf16.mxu0 %v6291_v0  ;;  %v6217_v0 = vpack.c.bf16 %v2825_v33, %v2822_v58 }
 0x475   :  { %6198 = vmatpush1.bf16.msra.mxu1 %v6197_v60  ;;  %v6221_v60 = vpack.c.bf16 %v2831_v25, %v2828_v20  ;;  %v8341_v20 = vpop.permute.xlu1 %3144 }
 0x476   :  { %6294 = vmatpush3.bf16.msra.mxu0 %v6293_v18  ;;  %6200 = vmatprep.subr.bf16.mxu1 %v6199_v21  ;;  %v6223_v18 = vpack.c.bf16 %v2838_v31, %v2835_v12  ;;  %v2834_v21 = vld [vmem:[%s7037_s29 + $0x540] sm:$0xff] }
 0x477   :  { %6296 = vmatprep.subr.bf16.mxu0 %v6295_v40  ;;  %v6225_v40 = vpack.c.bf16 %v2837_v43, %v2834_v21 }
 0x479   :  { %6202 = vmatpush1.bf16.msra.mxu1 %v6201_v13  ;;  %v6229_v13 = vpack.c.bf16 %v2843_v37, %v2840_v27 }
 0x47a   :  { %6298 = vmatpush3.bf16.msra.mxu0 %v6297_v52  ;;  %6204 = vmatprep.subr.bf16.mxu1 %v6203_v15  ;;  %v6231_v52 = vpack.c.bf16 %v2850_v44, %v2847_v16  ;;  %v2846_v15 = vld [vmem:[%s7037_s29 + $0x5a0] sm:$0xff]  ;;  %s9230_s29 = sld [smem:[#allocation20_spill]] }
 0x47b   :  { %6300 = vmatprep.subr.bf16.mxu0 %v6299_v49  ;;  %v6233_v49 = vpack.c.bf16 %v2849_v59, %v2846_v15  ;;  %v3704_v59 = vld [vmem:[%s7047_s21 + $0x8] sm:$0xff] }
 0x47d   :  { %6206 = vmatpush1.bf16.msra.mxu1 %v6205_v56  ;;  %v6237_v56 = vpack.c.bf16 %v2855_v22, %v2852_v50  ;;  %v3703_v50 = vld [vmem:[%s7047_s21] sm:$0xff] }
 0x47e   :  { %6302 = vmatpush3.bf16.msra.mxu0 %v6301_v46  ;;  %6208 = vmatprep.subr.bf16.mxu1 %v6207_v41  ;;  %v3707_v22 = vld [vmem:[%s7047_s21 + $0x20] sm:$0xff] }
 0x481   :  { %3135 = vmatmul.mubr.f32.vlgmr.msra.gmra.mrb[10].mxu0 %v8103_v61  ;;  %6210 = vmatpush1.bf16.msra.mxu1 %v6209_v28 }
 0x482   :  { %6212 = vmatprep.subr.bf16.mxu1 %v6211_v2  ;;  %3224 = vmatprep.mubr.f32.mxu0 %v8301_v19  ;;  %v3140_v2 = vld [vmem:[%s6967_s12] sm:$0x3]  ;;  %s9238_s12 = sld [smem:[#allocation21_spill]] }
 0x485   :  { %6214 = vmatpush1.bf16.msra.mxu1 %v6213_v29 }
 0x486   :  { %6216 = vmatprep.subr.bf16.mxu1 %v6215_v57 }
 0x489   :  { %6218 = vmatpush1.bf16.msra.mxu1 %v6217_v0 }
 0x48a   :  { %6220 = vmatprep.subr.bf16.mxu1 %v6219_v34 }
 0x48d   :  { %6222 = vmatpush1.bf16.msra.mxu1 %v6221_v60 }
 0x48e   :  { %6224 = vmatprep.subr.bf16.mxu1 %v6223_v18 }
 0x491   :  { %6226 = vmatpush1.bf16.msra.mxu1 %v6225_v40 }
 0x492   :  { %6228 = vmatprep.subr.bf16.mxu1 %v6227_v38 }
 0x495   :  { %6230 = vmatpush1.bf16.msra.mxu1 %v6229_v13 }
 0x496   :  { %6232 = vmatprep.subr.bf16.mxu1 %v6231_v52 }
 0x499   :  { %6234 = vmatpush1.bf16.msra.mxu1 %v6233_v49  ;;  %v6303_v49 = vpack.c.bf16 %v3708_v45, %v3704_v59  ;;  %v3729_v59 = vld [vmem:[%s7047_s21 + $0xd0] sm:$0xff] }
 0x49a   :  { %6236 = vmatprep.subr.bf16.mxu1 %v6235_v7  ;;  %v3710_v7 = vld [vmem:[%s7047_s21 + $0x38] sm:$0xff]  ;;  %v3733_v45 = vld [vmem:[%s7047_s21 + $0xf0] sm:$0xff] }
 0x49d   :  { %6238 = vmatpush1.bf16.msra.mxu1 %v6237_v56  ;;  %v6375_v56 = vpack.c.bf16 %v3710_v7, %v3706_v54  ;;  %v3736_v54 = vld [vmem:[%s7047_s21 + $0x108] sm:$0xff]  ;;  %v3738_v7 = vld [vmem:[%s7047_s21 + $0x118] sm:$0xff] }
 0x49e   :  { %5861 = vmatprep.subr.mxu1 %v8301_v19 }
 0x4a0   :  { %2994 = vmatmul.mubr.f32.vlgmr.msra.gmra.mrb[10].mxu1 %v8103_v61 }
 0x4a1   :  { %5863 = vmatprep.mubr.msk.f32.mxu1 %vm6886_vm9, %v8301_v19 }
 0x4d3   :  { %v5749_v46 = vpop.f32.mrb[6].mxu1 }
 0x4d4   :  { %v5750_v41 = vpop.f32.mrb[7].mxu1 }
 0x4d5   :  { %v5751_v47 = vadd.f32 %v5750_v41, %v5749_v46  ;;  %v6305_v46 = vpack.c.bf16 %v3707_v22, %v3703_v50  ;;  %v3705_v41 = vld [vmem:[%s7047_s21 + $0x10] sm:$0xff]  ;;  %v3742_v50 = vld [vmem:[%s7047_s21 + $0x138] sm:$0xff] }
 0x4f3   :  { %v5784_v39 = vpop.f32.mrb[8].mxu1 }
 0x4f4   :  { %v5785_v53 = vpop.f32.mrb[9].mxu1 }
 0x4f5   :  { %v5786_v11 = vadd.f32 %v5785_v53, %v5784_v39  ;;  %v3712_v39 = vld [vmem:[%s7047_s21 + $0x48] sm:$0xff] }
 0x4f7   :  { %v2663_v28 = vadd.f32 %v5786_v11, %v5751_v47  ;;  %v3709_v47 = vld [vmem:[%s7047_s21 + $0x30] sm:$0xff]  ;;  %v3716_v11 = vld [vmem:[%s7047_s21 + $0x68] sm:$0xff] }
 0x4f8   :  { %v6377_v53 = vpack.c.bf16 %v3709_v47, %v3705_v41  ;;  %v3735_v41 = vld [vmem:[%s7047_s21 + $0x100] sm:$0xff] }
 0x4f9   :  { %5862 = vmatpush3.msk.msra.mxu1 %vm2121_vm11, %v2663_v28  ;;  %v3714_v28 = vld [vmem:[%s7047_s21 + $0x58] sm:$0xff]  ;;  %v3739_v47 = vld [vmem:[%s7047_s21 + $0x120] sm:$0xff] }
 0x4fa   :  { %5864 = vmatmul.mubr.msk.f32.vlgmr.msra.gmra.mrb[12].mxu1 %vm3147_vm10, %v3140_v2  ;;  %5866 = vmatprep.subr.mxu1 %v8301_v19 }
 0x4fb   :  { %5868 = vmatprep.mubr.msk.f32.mxu1 %vm6886_vm9, %v8301_v19 }
 0x513   :  { %v2521_v32 = vpop.f32.mrb[6].mxu0 }
 0x514   :  { %v2523_v35 = vpop.f32.mrb[7].mxu0 }
 0x515   :  { %5687 = vmatprep.subr.msk.mxu0 %vm2121_vm11, %v2523_v35 }
 0x516   :  { %5688 = vmatpush1.msk.msra.mxu0 %vm2121_vm11, %v2521_v32  ;;  %v6307_v32 = vpack.c.bf16 %v3716_v11, %v3712_v39  ;;  %v3737_v39 = vld [vmem:[%s7047_s21 + $0x110] sm:$0xff] }
 0x517   :  { %5689 = vmatmul.mubr.msk.f32.vlgmr.msra.gmra.mrb[12].mxu0 %vm3147_vm10, %v3140_v2  ;;  %v3741_v11 = vld [vmem:[%s7047_s21 + $0x130] sm:$0xff] }
 0x518   :  { %3374 = vmatprep.mubr.f32.mxu0 %v8301_v19 }
 0x533   :  { %v5819_v14 = vpop.f32.mrb[8].mxu0 }
 0x534   :  { %v5820_v10 = vpop.f32.mrb[9].mxu0 }
 0x535   :  { %v5821_v29 = vadd.f32 %v5820_v10, %v5819_v14  ;;  %v3711_v14 = vld [vmem:[%s7047_s21 + $0x40] sm:$0xff] }
 0x536   :  { %v3715_v10 = vld [vmem:[%s7047_s21 + $0x60] sm:$0xff] }
 0x554   :  { %v5854_v57 = vpop.f32.mrb[10].mxu0 }
 0x555   :  { %v5855_v58 = vpop.f32.mrb[11].mxu0 }
 0x556   :  { %v5856_v33 = vadd.f32 %v5855_v58, %v5854_v57  ;;  %v6309_v57 = vpack.c.bf16 %v3715_v10, %v3711_v14  ;;  %v3717_v58 = vld [vmem:[%s7047_s21 + $0x70] sm:$0xff]  ;;  %v6321_v14 = vpack.c.bf16 %v3739_v47, %v3735_v41  ;;  %v6393_v10 = vpack.c.bf16 %v3741_v11, %v3737_v39 }
 0x558   :  { %v3137_v8 = vadd.f32 %v5856_v33, %v5821_v29  ;;  %v3713_v29 = vld [vmem:[%s7047_s21 + $0x50] sm:$0xff]  ;;  %v3720_v33 = vld [vmem:[%s7047_s21 + $0x88] sm:$0xff] }
 0x55a   :  { %5867 = vmatpush3.msk.msra.mxu1 %vm2121_vm11, %v3137_v8  ;;  %v3724_v8 = vld [vmem:[%s7047_s21 + $0xa8] sm:$0xff] }
 0x55b   :  { %5869 = vmatmul.mubr.msk.f32.vlgmr.msra.gmra.mrb[14].mxu1 %vm3147_vm10, %v3140_v2  ;;  %6376 = vmatprep.subr.bf16.mxu1 %v6375_v56  ;;  %v6389_v56 = vpack.c.bf16 %v3733_v45, %v3729_v59  ;;  %v3759_v45 = vld [vmem:[%s7047_s21 + $0x1c0] sm:$0xff] }
 0x55c   :  { %6378 = vmatpush1.bf16.msra.mxu1 %v6377_v53  ;;  %v6391_v53 = vpack.c.bf16 %v3742_v50, %v3738_v7  ;;  %v3761_v7 = vld [vmem:[%s7047_s21 + $0x1d0] sm:$0xff] }
 0x55d   :  { %v3765_v50 = vld [vmem:[%s7047_s21 + $0x1f0] sm:$0xff] }
 0x573   :  { %v2995_v62 = vpop.f32.mrb[10].mxu1 }
 0x574   :  { %v2997_v0 = vpop.f32.mrb[11].mxu1 }
 0x575   :  { %5692 = vmatprep.subr.msk.mxu0 %vm2121_vm11, %v2997_v0  ;;  %v6311_v0 = vpack.c.bf16 %v3724_v8, %v3720_v33  ;;  %v3745_v33 = vld [vmem:[%s7047_s21 + $0x150] sm:$0xff] }
 0x576   :  { %5693 = vmatpush1.msk.msra.mxu0 %vm2121_vm11, %v2995_v62  ;;  %v6381_v62 = vpack.c.bf16 %v3717_v58, %v3713_v29  ;;  %v3747_v58 = vld [vmem:[%s7047_s21 + $0x160] sm:$0xff] }
 0x577   :  { %5694 = vmatmul.mubr.msk.f32.vlgmr.msra.gmra.mrb[14].mxu0 %vm3147_vm10, %v3140_v2  ;;  %6304 = vmatprep.subr.bf16.mxu0 %v6303_v49  ;;  %v3718_v2 = vld [vmem:[%s7047_s21 + $0x78] sm:$0xff]  ;;  %v3740_v49 = vld [vmem:[%s7047_s21 + $0x128] sm:$0xff] }
 0x578   :  { %6306 = vmatpush1.bf16.msra.mxu0 %v6305_v46  ;;  %v6379_v35 = vpack.c.bf16 %v3718_v2, %v3714_v28  ;;  %v6319_v46 = vpack.c.bf16 %v3740_v49, %v3736_v54  ;;  %v3744_v28 = vld [vmem:[%s7047_s21 + $0x148] sm:$0xff]  ;;  %v3763_v54 = vld [vmem:[%s7047_s21 + $0x1e0] sm:$0xff] }
 0x579   :  { %6308 = vmatprep.subr.bf16.mxu0 %v6307_v32  ;;  %v3748_v2 = vld [vmem:[%s7047_s21 + $0x168] sm:$0xff]  ;;  %v3746_v32 = vld [vmem:[%s7047_s21 + $0x158] sm:$0xff] }
 0x57a   :  { %6380 = vmatprep.subr.bf16.mxu1 %v6379_v35  ;;  %v3750_v35 = vld [vmem:[%s7047_s21 + $0x178] sm:$0xff]  ;;  %v6323_v29 = vpack.c.bf16 %v3748_v2, %v3744_v28 }
 0x57b   :  { %6382 = vmatpush1.bf16.msra.mxu1 %v6381_v62  ;;  %v6395_v8 = vpack.c.bf16 %v3750_v35, %v3746_v32  ;;  %v3749_v62 = vld [vmem:[%s7047_s21 + $0x170] sm:$0xff] }
 0x57c   :  { %6310 = vmatpush1.bf16.msra.mxu0 %v6309_v57  ;;  %v3743_v57 = vld [vmem:[%s7047_s21 + $0x140] sm:$0xff] }
 0x57d   :  { %6312 = vmatprep.subr.bf16.mxu0 %v6311_v0  ;;  %v3752_v0 = vld [vmem:[%s7047_s21 + $0x188] sm:$0xff] }
 0x5cd   :  { %v3297_v19 = vpop.f32.mrb[12].mxu1 }
 0x5ce   :  { %v5865_v34 = vpop.f32.mrb[13].mxu1  ;;  %v8347_v60 = vadd.f32 %v3297_v19, %v8341_v20  ;;  %v3722_v19 = vld [vmem:[%s7047_s21 + $0x98] sm:$0xff] }
 0x5cf   :  { %v3726_v34 = vld [vmem:[%s7047_s21 + $0xb8] sm:$0xff] }
 0x5d0   :  { %v3473_v27 = vmul.f32 %v8347_v60, %v8347_v60  ;;  %v3455_v37 = vsel %vm3454_vm12, %v8347_v60, 0.0 }
 0x5d2   :  { %v3477_v52 = vsel %vm3454_vm12, %v3473_v27, 0.0  ;;  %v3730_v27 = vld [vmem:[%s7047_s21 + $0xd8] sm:$0xff] }
 0x5ea   :  { %v3226_v25 = vpop.f32.mrb[12].mxu0 }
 0x5eb   :  { %v8344_v12 = vadd.f32 %v3226_v25, %v8341_v20  ;;  %v3228_v31 = vpop.f32.mrb[13].mxu0  ;;  %v3719_v25 = vld [vmem:[%s7047_s21 + $0x80] sm:$0xff] }
 0x5ec   :  { %v8350_v18 = vadd.f32 %v3228_v31, %v8341_v20  ;;  %v6383_v31 = vpack.c.bf16 %v3726_v34, %v3722_v19  ;;  %v3756_v19 = vld [vmem:[%s7047_s21 + $0x1a8] sm:$0xff]  ;;  %v3754_v34 = vld [vmem:[%s7047_s21 + $0x198] sm:$0xff] }
 0x5ed   :  { %v3451_v21 = vsel %vm2121_vm11, %v8344_v12, 0.0  ;;  %v3471_v43 = vmul.f32 %v8344_v12, %v8344_v12 }
 0x5ee   :  { %v3452_v3 = vsel %vm2121_vm11, %v8350_v18, 0.0  ;;  %v3472_v30 = vmul.f32 %v8350_v18, %v8350_v18  ;;  %6384 = vmatprep.subr.bf16.mxu1 %v6383_v31  ;;  %v6325_v31 = vpack.c.bf16 %v3747_v58, %v3743_v57 }
 0x5ef   :  { %v3453_v40 = vadd.f32 %v3452_v3, %v3451_v21  ;;  %v3474_v38 = vsel %vm2121_vm11, %v3471_v43, 0.0  ;;  %v3723_v21 = vld [vmem:[%s7047_s21 + $0xa0] sm:$0xff]  ;;  %v3721_v43 = vld [vmem:[%s7047_s21 + $0x90] sm:$0xff] }
 0x5f0   :  { %v3475_v16 = vsel %vm2121_vm11, %v3472_v30, 0.0  ;;  %v3725_v3 = vld [vmem:[%s7047_s21 + $0xb0] sm:$0xff]  ;;  %v6313_v30 = vpack.c.bf16 %v3723_v21, %v3719_v25  ;;  %v3758_v25 = vld [vmem:[%s7047_s21 + $0x1b8] sm:$0xff]  ;;  %v6397_v21 = vpack.c.bf16 %v3749_v62, %v3745_v33 }
 0x5f1   :  { %v3456_v44 = vadd.f32 %v3455_v37, %v3453_v40  ;;  %v3476_v13 = vadd.f32 %v3475_v16, %v3474_v38  ;;  %v3728_v40 = vld [vmem:[%s7047_s21 + $0xc8] sm:$0xff]  ;;  %v6385_v37 = vpack.c.bf16 %v3725_v3, %v3721_v43  ;;  %v6327_v43 = vpack.c.bf16 %v3756_v19, %v3752_v0  ;;  %v3751_v3 = vld [vmem:[%s7047_s21 + $0x180] sm:$0xff] }
 0x5f2   :  { %v3732_v38 = vld [vmem:[%s7047_s21 + $0xe8] sm:$0xff]  ;;  %6314 = vmatpush1.bf16.msra.mxu0 %v6313_v30  ;;  %v3755_v30 = vld [vmem:[%s7047_s21 + $0x1a0] sm:$0xff] }
 0x5f3   :  { %3457 = vadd.xlane.f32.xlu0 %v3456_v44  ;;  %v3478_v15 = vadd.f32 %v3477_v52, %v3476_v13  ;;  %v6315_v16 = vpack.c.bf16 %v3732_v38, %v3728_v40  ;;  %v3734_v44 = vld [vmem:[%s7047_s21 + $0xf8] sm:$0xff]  ;;  %v3727_v13 = vld [vmem:[%s7047_s21 + $0xc0] sm:$0xff]  ;;  %6386 = vmatpush1.bf16.msra.mxu1 %v6385_v37  ;;  %v3753_v40 = vld [vmem:[%s7047_s21 + $0x190] sm:$0xff]  ;;  %v6399_v38 = vpack.c.bf16 %v3758_v25, %v3754_v34 }
 0x5f4   :  { %v3731_v52 = vld [vmem:[%s7047_s21 + $0xe0] sm:$0xff]  ;;  %v3760_v37 = vld [vmem:[%s7047_s21 + $0x1c8] sm:$0xff]  ;;  %v3770_v25 = vld [vmem:[%s7047_s21 + $0x218] sm:$0xff] }
 0x5f5   :  { %v6317_v22 = vpack.c.bf16 %v3731_v52, %v3727_v13  ;;  %6316 = vmatprep.subr.bf16.mxu0 %v6315_v16  ;;  %v3764_v16 = vld [vmem:[%s7047_s21 + $0x1e8] sm:$0xff]  ;;  %v3766_v13 = vld [vmem:[%s7047_s21 + $0x1f8] sm:$0xff]  ;;  %v6329_v52 = vpack.c.bf16 %v3755_v30, %v3751_v3  ;;  %v3771_v3 = vld [vmem:[%s7047_s21 + $0x220] sm:$0xff] }
 0x5f6   :  { %v6331_v59 = vpack.c.bf16 %v3764_v16, %v3760_v37  ;;  %v3768_v19 = vld [vmem:[%s7047_s21 + $0x208] sm:$0xff]  ;;  %v3499_v30 = vld [vmem:[%s9226_s5] sm:$0x3]  ;;  %v3773_v37 = vld [vmem:[%s7047_s21 + $0x230] sm:$0xff] }
 0x5f7   :  { %3479 = vadd.xlane.f32.xlu0 %v3478_v15  ;;  %v6387_v15 = vpack.c.bf16 %v3734_v44, %v3730_v27  ;;  %6318 = vmatpush1.bf16.msra.mxu0 %v6317_v22  ;;  %v3757_v27 = vld [vmem:[%s7047_s21 + $0x1b0] sm:$0xff]  ;;  %v3762_v44 = vld [vmem:[%s7047_s21 + $0x1d8] sm:$0xff]  ;;  %v6333_v22 = vpack.c.bf16 %v3763_v54, %v3759_v45  ;;  %v3772_v34 = vld [vmem:[%s7047_s21 + $0x228] sm:$0xff] }
 0x5f8   :  { %6320 = vmatprep.subr.bf16.mxu0 %v6319_v46  ;;  %v6403_v49 = vpack.c.bf16 %v3766_v13, %v3762_v44  ;;  %v3776_v44 = vld [vmem:[%s7047_s21 + $0x248] sm:$0xff]  ;;  %v3775_v45 = vld [vmem:[%s7047_s21 + $0x240] sm:$0xff] }
 0x5f9   :  { %6388 = vmatprep.subr.bf16.mxu1 %v6387_v15  ;;  %v6401_v15 = vpack.c.bf16 %v3757_v27, %v3753_v40  ;;  %v3769_v27 = vld [vmem:[%s7047_s21 + $0x210] sm:$0xff]  ;;  %v3780_v13 = vld [vmem:[%s7047_s21 + $0x268] sm:$0xff]  ;;  %v3779_v54 = vld [vmem:[%s7047_s21 + $0x260] sm:$0xff] }
 0x5fa   :  { %6390 = vmatpush1.bf16.msra.mxu1 %v6389_v56  ;;  %v6405_v56 = vpack.c.bf16 %v3765_v50, %v3761_v7  ;;  %v6409_v16 = vpack.c.bf16 %v3773_v37, %v3769_v27  ;;  %v6341_v50 = vpack.c.bf16 %v3779_v54, %v3775_v45  ;;  %v3797_v27 = vld [vmem:[%s7047_s21 + $0x2f0] sm:$0xff]  ;;  %v1794_v37 = vld [vmem:[%s9232_s14] sm:$0xf] }
 0x5fb   :  { %6392 = vmatprep.subr.bf16.mxu1 %v6391_v53  ;;  %6322 = vmatpush1.bf16.msra.mxu0 %v6321_v14  ;;  %v3799_v45 = vld [vmem:[%s7047_s21 + $0x300] sm:$0xff] }
 0x5fc   :  { %6324 = vmatprep.subr.bf16.mxu0 %v6323_v29  ;;  %v3803_v54 = vld [vmem:[%s7047_s21 + $0x320] sm:$0xff] }
 0x5fe   :  { %6394 = vmatpush1.bf16.msra.mxu1 %v6393_v10 }
 0x5ff   :  { %6396 = vmatprep.subr.bf16.mxu1 %v6395_v8  ;;  %6326 = vmatpush1.bf16.msra.mxu0 %v6325_v31  ;;  %v6335_v31 = vpack.c.bf16 %v3772_v34, %v3768_v19  ;;  %v3796_v19 = vld [vmem:[%s7047_s21 + $0x2e8] sm:$0xff]  ;;  %v3794_v34 = vld [vmem:[%s7047_s21 + $0x2d8] sm:$0xff] }
 0x600   :  { %6328 = vmatprep.subr.bf16.mxu0 %v6327_v43  ;;  %v3767_v43 = vld [vmem:[%s7047_s21 + $0x200] sm:$0xff] }
 0x602   :  { %6398 = vmatpush1.bf16.msra.mxu1 %v6397_v21  ;;  %v3774_v21 = vld [vmem:[%s7047_s21 + $0x238] sm:$0xff] }
 0x603   :  { %6400 = vmatprep.subr.bf16.mxu1 %v6399_v38  ;;  %6330 = vmatpush1.bf16.msra.mxu0 %v6329_v52  ;;  %v6407_v40 = vpack.c.bf16 %v3774_v21, %v3770_v25  ;;  %v6337_v38 = vpack.c.bf16 %v3771_v3, %v3767_v43  ;;  %v3778_v52 = vld [vmem:[%s7047_s21 + $0x258] sm:$0xff]  ;;  %v3791_v21 = vld [vmem:[%s7047_s21 + $0x2c0] sm:$0xff] }
 0x604   :  { %6332 = vmatprep.subr.bf16.mxu0 %v6331_v59  ;;  %v3782_v59 = vld [vmem:[%s7047_s21 + $0x278] sm:$0xff]  ;;  %v3795_v43 = vld [vmem:[%s7047_s21 + $0x2e0] sm:$0xff] }
 0x605   :  { %v6411_v7 = vpack.c.bf16 %v3782_v59, %v3778_v52  ;;  %v818_v3 = vld [vmem:[%s9231_s8] sm:$0xf]  ;;  %v3802_v52 = vld [vmem:[%s7047_s21 + $0x318] sm:$0xff] }
 0x606   :  { %6402 = vmatpush1.bf16.msra.mxu1 %v6401_v15  ;;  %v6339_v15 = vpack.c.bf16 %v3780_v13, %v3776_v44  ;;  %v3800_v44 = vld [vmem:[%s7047_s21 + $0x308] sm:$0xff]  ;;  %v3806_v59 = vld [vmem:[%s7047_s21 + $0x338] sm:$0xff] }
 0x607   :  { %6404 = vmatprep.subr.bf16.mxu1 %v6403_v49  ;;  %6334 = vmatpush1.bf16.msra.mxu0 %v6333_v22  ;;  %v3501_v49 = vld [vmem:[%s9227_s9] sm:$0x3]  ;;  %v3777_v22 = vld [vmem:[%s7047_s21 + $0x250] sm:$0xff]  ;;  %v3804_v13 = vld [vmem:[%s7047_s21 + $0x328] sm:$0xff] }
 0x608   :  { %6336 = vmatprep.subr.bf16.mxu0 %v6335_v31  ;;  %v3798_v31 = vld [vmem:[%s7047_s21 + $0x2f8] sm:$0xff] }
 0x60a   :  { %6406 = vmatpush1.bf16.msra.mxu1 %v6405_v56  ;;  %v3781_v56 = vld [vmem:[%s7047_s21 + $0x270] sm:$0xff] }
 0x60b   :  { %6408 = vmatprep.subr.bf16.mxu1 %v6407_v40  ;;  %6338 = vmatpush1.bf16.msra.mxu0 %v6337_v38  ;;  %v6349_v40 = vpack.c.bf16 %v3795_v43, %v3791_v21  ;;  %v3793_v38 = vld [vmem:[%s7047_s21 + $0x2d0] sm:$0xff] }
 0x60c   :  { %6340 = vmatprep.subr.bf16.mxu0 %v6339_v15  ;;  %v6351_v15 = vpack.c.bf16 %v3804_v13, %v3800_v44  ;;  %v3817_v21 = vld [vmem:[%s7047_s21 + $0x390] sm:$0xff]  ;;  %v3827_v44 = vld [vmem:[%s7047_s21 + $0x3e0] sm:$0xff] }
 0x60d   :  { %v3821_v43 = vld [vmem:[%s7047_s21 + $0x3b0] sm:$0xff] }
 0x60e   :  { %6410 = vmatpush1.bf16.msra.mxu1 %v6409_v16  ;;  %v6421_v16 = vpack.c.bf16 %v3797_v27, %v3793_v38  ;;  %v3826_v38 = vld [vmem:[%s7047_s21 + $0x3d8] sm:$0xff] }
 0x60f   :  { %6412 = vmatprep.subr.bf16.mxu1 %v6411_v7  ;;  %6342 = vmatpush1.bf16.msra.mxu0 %v6341_v50  ;;  %v6353_v7 = vpack.c.bf16 %v3803_v54, %v3799_v45  ;;  %v3801_v50 = vld [vmem:[%s7047_s21 + $0x310] sm:$0xff]  ;;  %v3832_v54 = vld [vmem:[%s7047_s21 + $0x408] sm:$0xff] }
 0x62e   :  { %v3447_v46 = vpop.f32.mrb[14].mxu1 }
 0x62f   :  { %v5870_v41 = vpop.f32.mrb[15].mxu1  ;;  %v8432_v47 = vadd.f32 %v3447_v46, %v8341_v20  ;;  %v3500_v46 = vld [vmem:[%s9228_s17] sm:$0x3] }
 0x630   :  { %v6413_v41 = vpack.c.bf16 %v3781_v56, %v3777_v22  ;;  %v3805_v22 = vld [vmem:[%s7047_s21 + $0x330] sm:$0xff] }
 0x631   :  { %v3484_v35 = vmul.f32 %v8432_v47, %v8432_v47  ;;  %v3464_v57 = vsel %vm3454_vm12, %v8432_v47, 0.0  ;;  %v6425_v56 = vpack.c.bf16 %v3805_v22, %v3801_v50  ;;  %v3838_v22 = vld [vmem:[%s7047_s21 + $0x438] sm:$0xff] }
 0x632   :  { %6414 = vmatpush1.bf16.msra.mxu1 %v6413_v41  ;;  %v3812_v41 = vld [vmem:[%s7047_s21 + $0x368] sm:$0xff] }
 0x633   :  { %v3488_v62 = vsel %vm3454_vm12, %v3484_v35, 0.0  ;;  %v3790_v35 = vld [vmem:[%s7047_s21 + $0x2b8] sm:$0xff] }
 0x64a   :  { %v3376_v39 = vpop.f32.mrb[14].mxu0 }
 0x64b   :  { %v8435_v53 = vadd.f32 %v3376_v39, %v8341_v20  ;;  %v3378_v11 = vpop.f32.mrb[15].mxu0  ;;  %v3784_v39 = vld [vmem:[%s7047_s21 + $0x288] sm:$0xff] }
 0x64c   :  { %v8438_v28 = vadd.f32 %v3378_v11, %v8341_v20  ;;  %v3788_v11 = vld [vmem:[%s7047_s21 + $0x2a8] sm:$0xff] }
 0x64d   :  { %v3461_v2 = vsel %vm2121_vm11, %v8435_v53, 0.0  ;;  %v3482_v32 = vmul.f32 %v8435_v53, %v8435_v53 }
 0x64e   :  { %v3462_v14 = vsel %vm2121_vm11, %v8438_v28, 0.0  ;;  %v3483_v20 = vmul.f32 %v8438_v28, %v8438_v28 }
 0x64f   :  { %v3463_v10 = vadd.f32 %v3462_v14, %v3461_v2  ;;  %v3485_v29 = vsel %vm2121_vm11, %v3482_v32, 0.0  ;;  %v3786_v2 = vld [vmem:[%s7047_s21 + $0x298] sm:$0xff]  ;;  %v6343_v32 = vpack.c.bf16 %v3788_v11, %v3784_v39  ;;  %v3783_v14 = vld [vmem:[%s7047_s21 + $0x280] sm:$0xff] }
 0x650   :  { %v3486_v58 = vsel %vm2121_vm11, %v3483_v20, 0.0  ;;  %v3787_v20 = vld [vmem:[%s7047_s21 + $0x2a0] sm:$0xff]  ;;  %v3810_v39 = vld [vmem:[%s7047_s21 + $0x358] sm:$0xff] }
 0x651   :  { %v3465_v33 = vadd.f32 %v3464_v57, %v3463_v10  ;;  %v3487_v8 = vadd.f32 %v3486_v58, %v3485_v29  ;;  %v984_v10 = vld [vmem:[%s9229_s25] sm:$0xf]  ;;  %v6415_v29 = vpack.c.bf16 %v3790_v35, %v3786_v2  ;;  %v6345_v57 = vpack.c.bf16 %v3787_v20, %v3783_v14  ;;  %v3785_v58 = vld [vmem:[%s7047_s21 + $0x290] sm:$0xff]  ;;  %6344 = vmatprep.subr.bf16.mxu0 %v6343_v32  ;;  %v3814_v2 = vld [vmem:[%s7047_s21 + $0x378] sm:$0xff] }
 0x652   :  { %v3807_v32 = vld [vmem:[%s7047_s21 + $0x340] sm:$0xff]  ;;  %v6427_v14 = vpack.c.bf16 %v3814_v2, %v3810_v39 }
 0x653   :  { %3466 = vadd.xlane.f32.xlu1 %v3465_v33  ;;  %v3489_v0 = vadd.f32 %v3488_v62, %v3487_v8  ;;  %v3789_v33 = vld [vmem:[%s7047_s21 + $0x2b0] sm:$0xff]  ;;  %v4427_v8 = vld [vmem:[%s9230_s29] sm:$0xf]  ;;  %6416 = vmatprep.subr.bf16.mxu1 %v6415_v29 }
 0x654   :  { %v6417_v62 = vpack.c.bf16 %v3789_v33, %v3785_v58  ;;  %6346 = vmatpush1.bf16.msra.mxu0 %v6345_v57  ;;  %v3811_v35 = vld [vmem:[%s7047_s21 + $0x360] sm:$0xff]  ;;  %v3813_v29 = vld [vmem:[%s7047_s21 + $0x370] sm:$0xff]  ;;  %v3816_v58 = vld [vmem:[%s7047_s21 + $0x388] sm:$0xff] }
 0x655   :  { %3490 = vadd.xlane.f32.xlu0 %v3489_v0  ;;  %v3792_v0 = vld [vmem:[%s7047_s21 + $0x2c8] sm:$0xff]  ;;  %v6357_v20 = vpack.c.bf16 %v3811_v35, %v3807_v32 }
 0x656   :  { %v6347_v25 = vpack.c.bf16 %v3796_v19, %v3792_v0  ;;  %6418 = vmatpush1.bf16.msra.mxu1 %v6417_v62  ;;  %v3820_v33 = vld [vmem:[%s7047_s21 + $0x3a8] sm:$0xff]  ;;  %v3822_v0 = vld [vmem:[%s7047_s21 + $0x3b8] sm:$0xff]  ;;  %v3815_v19 = vld [vmem:[%s7047_s21 + $0x380] sm:$0xff] }
 0x657   :  { %v6359_v62 = vpack.c.bf16 %v3820_v33, %v3816_v58 }
 0x658   :  { %6348 = vmatprep.subr.bf16.mxu0 %v6347_v25 }
 0x659   :  { %6350 = vmatpush1.bf16.msra.mxu0 %v6349_v40  ;;  %v3828_v40 = vld [vmem:[%s7047_s21 + $0x3e8] sm:$0xff] }
 0x65a   :  { %6352 = vmatprep.subr.bf16.mxu0 %v6351_v15  ;;  %v3825_v15 = vld [vmem:[%s7047_s21 + $0x3d0] sm:$0xff] }
 0x65d   :  { %6354 = vmatpush1.bf16.msra.mxu0 %v6353_v7  ;;  %v3834_v7 = vld [vmem:[%s7047_s21 + $0x418] sm:$0xff] }
 0x664   :  { %3510 = vperm.xlu1 %6711, %v3499_v30   ;;  %v6419_v30 = vpack.c.bf16 %v3798_v31, %v3794_v34  ;;  %v3819_v34 = vld [vmem:[%s7047_s21 + $0x3a0] sm:$0xff] }
 0x665   :  { %v6361_v31 = vpack.c.bf16 %v3819_v34, %v3815_v19 }
 0x666   :  { %6420 = vmatprep.subr.bf16.mxu1 %v6419_v30  ;;  %v3824_v30 = vld [vmem:[%s7047_s21 + $0x3c8] sm:$0xff] }
 0x667   :  { %6422 = vmatpush1.bf16.msra.mxu1 %v6421_v16  ;;  %v6363_v27 = vpack.c.bf16 %v3828_v40, %v3824_v30  ;;  %v3823_v16 = vld [vmem:[%s7047_s21 + $0x3c0] sm:$0xff] }
 0x668   :  { %3529 = vperm.xlu1 %6711, %v3501_v49   ;;  %v6423_v49 = vpack.c.bf16 %v3806_v59, %v3802_v52  ;;  %v6365_v52 = vpack.c.bf16 %v3827_v44, %v3823_v16  ;;  %v3829_v59 = vld [vmem:[%s7047_s21 + $0x3f0] sm:$0xff] }
 0x669   :  { %v6437_v45 = vpack.c.bf16 %v3829_v59, %v3825_v15 }
 0x66a   :  { %6424 = vmatprep.subr.bf16.mxu1 %v6423_v49  ;;  %v3836_v49 = vld [vmem:[%s7047_s21 + $0x428] sm:$0xff] }
 0x66b   :  { %3518 = vperm.xlu0 %6710, %v3500_v46   ;;  %v3808_v46 = vld [vmem:[%s7047_s21 + $0x348] sm:$0xff]  ;;  %6426 = vmatpush1.bf16.msra.mxu1 %v6425_v56  ;;  %v6367_v50 = vpack.c.bf16 %v3836_v49, %v3832_v54  ;;  %v6439_v56 = vpack.c.bf16 %v3838_v22, %v3834_v7  ;;  %v3831_v7 = vld [vmem:[%s7047_s21 + $0x400] sm:$0xff] }
 0x66c   :  { %987 = vperm.xlu1 %6711, %v984_v10   ;;  %v6355_v11 = vpack.c.bf16 %v3812_v41, %v3808_v46  ;;  %v3809_v10 = vld [vmem:[%s7047_s21 + $0x350] sm:$0xff]  ;;  %6428 = vmatprep.subr.bf16.mxu1 %v6427_v14  ;;  %v3835_v22 = vld [vmem:[%s7047_s21 + $0x420] sm:$0xff] }
 0x66d   :  { %v6429_v57 = vpack.c.bf16 %v3813_v29, %v3809_v10 }
 0x66e   :  { %6356 = vmatprep.subr.bf16.mxu0 %v6355_v11 }
 0x66f   :  { %4430 = vperm.xlu0 %6710, %v4427_v8   ;;  %v3818_v8 = vld [vmem:[%s7047_s21 + $0x398] sm:$0xff]  ;;  %6358 = vmatpush1.bf16.msra.mxu0 %v6357_v20 }
 0x670   :  { %821 = vperm.xlu1 %6711, %v818_v3   ;;  %6430 = vmatpush1.bf16.msra.mxu1 %v6429_v57  ;;  %v6431_v25 = vpack.c.bf16 %v3822_v0, %v3818_v8  ;;  %v6433_v3 = vpack.c.bf16 %v3821_v43, %v3817_v21 }
 0x671   :  { %6360 = vmatprep.subr.bf16.mxu0 %v6359_v62 }
 0x672   :  { %6432 = vmatprep.subr.bf16.mxu1 %v6431_v25 }
 0x673   :  { %1797 = vperm.xlu0 %6710, %v1794_v37   ;;  %v3830_v37 = vld [vmem:[%s7047_s21 + $0x3f8] sm:$0xff]  ;;  %6362 = vmatpush1.bf16.msra.mxu0 %v6361_v31 }
 0x674   :  { %v6435_v13 = vpack.c.bf16 %v3830_v37, %v3826_v38  ;;  %6434 = vmatpush1.bf16.msra.mxu1 %v6433_v3  ;;  %6364 = vmatprep.subr.bf16.mxu0 %v6363_v27 }
 0x676   :  { %6436 = vmatprep.subr.bf16.mxu1 %v6435_v13 }
 0x677   :  { %6366 = vmatpush1.bf16.msra.mxu0 %v6365_v52 }
 0x678   :  { %6438 = vmatpush1.bf16.msra.mxu1 %v6437_v45  ;;  %6368 = vmatprep.subr.bf16.mxu0 %v6367_v50 }
 0x679   :  { %6440 = vmatprep.subr.bf16.mxu1 %v6439_v56  ;;  %v3833_v56 = vld [vmem:[%s7047_s21 + $0x410] sm:$0xff] }
 0x680   :  { %v3458_v46 = vpop.xlane.xlu0 %3457 }
 0x681   :  { %v3460_v11 = vmul.f32 0.0034722222, %v3458_v46  ;;  %v3837_v46 = vld [vmem:[%s7047_s21 + $0x430] sm:$0xff] }
 0x684   :  { %v3480_v41 = vpop.xlane.xlu0 %3479 }
 0x685   :  { %v3481_v35 = vmul.f32 0.0034722222, %v3480_v41 }
 0x6e0   :  { %v3467_v39 = vpop.xlane.xlu1 %3466 }
 0x6e1   :  { %v3468_v2 = vmul.f32 0.0034722222, %v3467_v39 }
 0x6e2   :  { %v3491_v32 = vpop.xlane.xlu0 %3490 }
 0x6e3   :  { %v3469_v14 = vadd.f32 %v3468_v2, %v3460_v11  ;;  %v3492_v20 = vmul.f32 0.0034722222, %v3491_v32  ;;  %v3840_v32 = vld [vmem:[%s7047_s21 + $0x448] sm:$0xff] }
 0x6e4   :  { %v8530_v10 = vpop.permute.xlu1 %3510 }
 0x6e5   :  { %v3470_v29 = vmul.f32 0.5, %v3469_v14  ;;  %v3493_v57 = vadd.f32 %v3492_v20, %v3481_v35  ;;  %v3844_v35 = vld [vmem:[%s7047_s21 + $0x468] sm:$0xff] }
 0x6e7   :  { %v3495_v58 = vmul.f32 %v3470_v29, %v3470_v29  ;;  %v3494_v33 = vmul.f32 0.5, %v3493_v57  ;;  %v3504_v27 = vsub.f32 %v8347_v60, %v3470_v29  ;;  %v3540_v37 = vsub.f32 %v8432_v47, %v3470_v29  ;;  %v3842_v57 = vld [vmem:[%s7047_s21 + $0x458] sm:$0xff] }
 0x6e8   :  { %v8532_v8 = vpop.permute.xlu1 %3529  ;;  %v3539_v16 = vsub.f32 %v8438_v28, %v3470_v29  ;;  %v3538_v44 = vsub.f32 %v8435_v53, %v3470_v29  ;;  %v3503_v53 = vsub.f32 %v8350_v18, %v3470_v29 }
 0x6e9   :  { %v3496_v62 = vsub.f32 %v3494_v33, %v3495_v58  ;;  %v3846_v58 = vld [vmem:[%s7047_s21 + $0x478] sm:$0xff] }
 0x6ea   :  { %v8534_v0 = vpop.permute.xlu0 %3518 }
 0x6eb   :  { %v3497_v19 = vadd.f32 1e-05, %v3496_v62 }
 0x6ec   :  { %v988_v34 = vpop.permute.xlu1 %987 }
 0x6ed   :  { %6784 = vrsqrt.f32 %v3497_v19  ;;  %v6369_v19 = vpack.c.bf16 %v3835_v22, %v3831_v7  ;;  %v3565_v22 = vld [vmem:[%s9233_s19 + $0x30] sm:$0xff] }
 0x6ee   :  { %v4431_v25 = vpop.permute.xlu0 %4430 }
 0x6ef   :  { %v8536_v31 = vadd.f32 %v4431_v25, %v988_v34  ;;  %v6441_v34 = vpack.c.bf16 %v3837_v46, %v3833_v56  ;;  %v8604_v56 = vld [vmem:[#allocation2] sm:$0xff]  ;;  %v3568_v46 = vld [vmem:[%s9233_s19 + $0x48] sm:$0xff] }
 0x6f0   :  { %v822_v21 = vpop.permute.xlu1 %821 }
 0x6f2   :  { %v1798_v43 = vpop.permute.xlu0 %1797 }
 0x6f3   :  { %v6623_v3 = vadd.f32 %v1798_v43, %v822_v21  ;;  %v6371_v21 = vpack.c.bf16 %v3844_v35, %v3840_v32  ;;  %v3839_v43 = vld [vmem:[%s7047_s21 + $0x440] sm:$0xff] }
 0x6f5   :  { %v8539_v30 = vadd.f32 %v6623_v3, %v7834_v17  ;;  %v8542_v40 = vadd.f32 %v6623_v3, %v7836_v63  ;;  %v8545_v38 = vadd.f32 %v6623_v3, %v7838_v9  ;;  %v8552_v52 = vadd.f32 %v6623_v3, %v7840_v55  ;;  %v3843_v3 = vld [vmem:[%s7047_s21 + $0x460] sm:$0xff] }
 0x6f6   :  { %v3502_v9 = vsub.f32 %v8344_v12, %v3470_v29 }
 0x6f7   :  { %v6785_v13 = vpop.eup %6784  ;;  %v4597_v17 = vsel %vm828_vm8, %v8539_v30, 0.0  ;;  %v4598_v63 = vsel %vm828_vm8, %v8542_v40, 0.0  ;;  %v4600_v55 = vsel %vm828_vm8, %v8545_v38, 0.0  ;;  %v4602_v50 = vsel %vm828_vm8, %v8552_v52, 0.0 }
 0x6f8   :  { %v3507_v60 = vmul.f32 %v6785_v13, %v3504_v27  ;;  %v4599_v47 = vadd.f32 %v4598_v63, %v4597_v17  ;;  %v3542_v28 = vmul.f32 %v6785_v13, %v3539_v16  ;;  %v3543_v15 = vmul.f32 %v6785_v13, %v3540_v37  ;;  %v3560_v17 = vld [vmem:[%s9233_s19 + $0x8] sm:$0xff] }
 0x6f9   :  { %v3541_v59 = vmul.f32 %v6785_v13, %v3538_v44  ;;  %v3505_v45 = vmul.f32 %v6785_v13, %v3502_v9  ;;  %v3506_v41 = vmul.f32 %v6785_v13, %v3503_v53  ;;  %v6443_v16 = vpack.c.bf16 %v3846_v58, %v3842_v57  ;;  %v3841_v44 = vld [vmem:[%s7047_s21 + $0x450] sm:$0xff]  ;;  %v3576_v58 = vld [vmem:[%s9233_s19 + $0x88] sm:$0xff] }
 0x6fa   :  { %v3515_v54 = vmul.f32 %v8530_v10, %v3507_v60  ;;  %v4601_v49 = vadd.f32 %v4600_v55, %v4599_v47  ;;  %v3545_v12 = vmul.f32 %v3542_v28, %v8530_v10  ;;  %v3546_v20 = vmul.f32 %v3543_v15, %v8530_v10  ;;  %v3845_v13 = vld [vmem:[%s7047_s21 + $0x470] sm:$0xff]  ;;  %v3564_v60 = vld [vmem:[%s9233_s19 + $0x28] sm:$0xff]  ;;  %v3562_v47 = vld [vmem:[%s9233_s19 + $0x18] sm:$0xff]  ;;  %s9234_s21 = sld [smem:[#allocation24_spill]] }
 0x6fb   :  { %v3544_v18 = vmul.f32 %v3541_v59, %v8530_v10  ;;  %v3513_v39 = vmul.f32 %v8530_v10, %v3505_v45  ;;  %v3514_v27 = vmul.f32 %v8530_v10, %v3506_v41  ;;  %v3566_v28 = vld [vmem:[%s9233_s19 + $0x38] sm:$0xff]  ;;  %v6373_v15 = vpack.c.bf16 %v3843_v3, %v3839_v43  ;;  %v3559_v45 = vld [vmem:[%s9233_s19] sm:$0xff]  ;;  %v3572_v41 = vld [vmem:[%s9233_s19 + $0x68] sm:$0xff] }
 0x6fc   :  { %v4603_v11 = vadd.f32 %v4602_v50, %v4601_v49  ;;  %v3548_v2 = vadd.f32 %v3545_v12, %v8534_v0  ;;  %v3523_v14 = vadd.f32 %v8534_v0, %v3515_v54  ;;  %v3549_v53 = vadd.f32 %v3546_v20, %v8534_v0  ;;  %v3563_v50 = vld [vmem:[%s9233_s19 + $0x20] sm:$0xff]  ;;  %v3573_v57 = vld [vmem:[%s9233_s19 + $0x70] sm:$0xff] }
 0x6fd   :  { %v3547_v29 = vadd.f32 %v3544_v18, %v8534_v0  ;;  %v3521_v33 = vadd.f32 %v8534_v0, %v3513_v39  ;;  %v6445_v59 = vpack.c.bf16 %v3845_v13, %v3841_v44  ;;  %v3522_v54 = vadd.f32 %v8534_v0, %v3514_v27  ;;  %v3561_v18 = vld [vmem:[%s9233_s19 + $0x10] sm:$0xff]  ;;  %v3570_v39 = vld [vmem:[%s9233_s19 + $0x58] sm:$0xff]  ;;  %v3571_v20 = vld [vmem:[%s9233_s19 + $0x60] sm:$0xff] }
 0x6fe   :  { %4604 = vadd.xlane.f32.xlu0 %v4603_v11  ;;  %vm3551_vm13 = vcmp.ge.f32.partialorder %v3548_v2, 0.0  ;;  %v3554_v62 = vmul.f32 %v3548_v2, %v8532_v8  ;;  %vm3526_vm9 = vcmp.ge.f32.partialorder %v3523_v14, 0.0  ;;  %v3534_v10 = vmul.f32 %v8532_v8, %v3523_v14  ;;  %v3574_v11 = vld [vmem:[%s9233_s19 + $0x78] sm:$0xff]  ;;  %v3575_v27 = vld [vmem:[%s9233_s19 + $0x80] sm:$0xff]  ;;  %v3577_v13 = vld [vmem:[%s9233_s19 + $0x90] sm:$0xff] }
 0x6ff   :  { %vm3550_vm14 = vcmp.ge.f32.partialorder %v3547_v29, 0.0  ;;  %v3553_v25 = vmul.f32 %v3547_v29, %v8532_v8  ;;  %vm3524_vm15 = vcmp.ge.f32.partialorder %v3521_v33, 0.0  ;;  %v3532_v63 = vmul.f32 %v8532_v8, %v3521_v33  ;;  %v3579_v44 = vld [vmem:[%s9233_s19 + $0xa0] sm:$0xff] }
 0x700   :  { %v3557_v37 = vsel %vm3551_vm13, %v3548_v2, %v3554_v62  ;;  %v8599_v49 = vsel %vm3526_vm9, %v3523_v14, %v3534_v10  ;;  %v6447_v12 = vpack.c.bf16 %v3564_v60, %v3560_v17  ;;  %v6519_v7 = vpack.c.bf16 %v3566_v28, %v3562_v47  ;;  %v3567_v14 = vld [vmem:[%s9233_s19 + $0x40] sm:$0xff]  ;;  %v3581_v17 = vld [vmem:[%s9233_s19 + $0xb0] sm:$0xff]  ;;  %v3586_v60 = vld [vmem:[%s9233_s19 + $0xd8] sm:$0xff] }
 0x701   :  { %3915 = vmatprep.mubr.f32.mxu0 %v3557_v37  ;;  %4057 = vmatprep.mubr.f32.mxu1 %v3557_v37  ;;  %v3556_v9 = vsel %vm3550_vm14, %v3547_v29, %v3553_v25  ;;  %v8595_v55 = vsel %vm3524_vm15, %v3521_v33, %v3532_v63  ;;  %v3555_v0 = vmul.f32 %v3549_v53, %v8532_v8  ;;  %vm3552_vm12 = vcmp.ge.f32.partialorder %v3549_v53, 0.0  ;;  %v3569_v29 = vld [vmem:[%s9233_s19 + $0x50] sm:$0xff]  ;;  %v3578_v25 = vld [vmem:[%s9233_s19 + $0x98] sm:$0xff]  ;;  %v3584_v63 = vld [vmem:[%s9233_s19 + $0xc8] sm:$0xff] }
 0x702   :  { %3916 = vmatmul.mubr.f32.vlgmr.msra.gmra.mrb[16].mxu0 %v3556_v9  ;;  %4058 = vmatmul.mubr.f32.vlgmr.msra.gmra.mrb[16].mxu1 %v3556_v9  ;;  %vm3847_vm13 = vcmask 261120   ;;  %v6449_v2 = vpack.c.bf16 %v3563_v50, %v3559_v45  ;;  %v6521_v32 = vpack.c.bf16 %v3565_v22, %v3561_v18  ;;  %v3533_v35 = vmul.f32 %v8532_v8, %v3522_v54  ;;  %v3588_v9 = vld [vmem:[%s9233_s19 + $0xe8] sm:$0xff]  ;;  %v3590_v47 = vld [vmem:[%s9233_s19 + $0xf8] sm:$0xff]  ;;  %v3583_v10 = vld [vmem:[%s9233_s19 + $0xc0] sm:$0xff] }
 0x703   :  { %6370 = vmatpush1.bf16.msra.mxu0 %v6369_v19  ;;  %6442 = vmatpush1.bf16.msra.mxu1 %v6441_v34  ;;  %vm3525_vm14 = vcmp.ge.f32.partialorder %v3522_v54, 0.0  ;;  %v3558_v33 = vsel %vm3552_vm12, %v3549_v53, %v3555_v0  ;;  %v6451_v62 = vpack.c.bf16 %v3572_v41, %v3568_v46  ;;  %v6523_v19 = vpack.c.bf16 %v3574_v11, %v3570_v39  ;;  %v3580_v34 = vld [vmem:[%s9233_s19 + $0xa8] sm:$0xff]  ;;  %v3585_v45 = vld [vmem:[%s9233_s19 + $0xd0] sm:$0xff]  ;;  %v3594_v22 = vld [vmem:[%s9233_s19 + $0x118] sm:$0xff] }
 0x704   :  { %6372 = vmatprep.subr.bf16.mxu0 %v6371_v21  ;;  %6444 = vmatprep.subr.bf16.mxu1 %v6443_v16  ;;  %v3582_v21 = vld [vmem:[%s9233_s19 + $0xb8] sm:$0xff]  ;;  %v3536_v8 = vsel %vm3525_vm14, %v3522_v54, %v3533_v35  ;;  %v6453_v43 = vpack.c.bf16 %v3571_v20, %v3567_v14  ;;  %v6525_v3 = vpack.c.bf16 %v3573_v57, %v3569_v29  ;;  %v3589_v54 = vld [vmem:[%s9233_s19 + $0xf0] sm:$0xff]  ;;  %v3592_v50 = vld [vmem:[%s9233_s19 + $0x108] sm:$0xff] }
 0x705   :  { %3986 = vmatprep.mubr.f32.mxu0 %v8604_v56  ;;  %4128 = vmatprep.mubr.f32.mxu1 %v8604_v56  ;;  %v6455_v37 = vpack.c.bf16 %v3580_v34, %v3576_v58  ;;  %v6527_v16 = vpack.c.bf16 %v3582_v21, %v3578_v25  ;;  %v6457_v28 = vpack.c.bf16 %v3579_v44, %v3575_v27  ;;  %v3596_v18 = vld [vmem:[%s9233_s19 + $0x128] sm:$0xff]  ;;  %v3598_v0 = vld [vmem:[%s9233_s19 + $0x138] sm:$0xff]  ;;  %v3591_v39 = vld [vmem:[%s9233_s19 + $0x100] sm:$0xff] }
 0x706   :  { %v6529_v53 = vpack.c.bf16 %v3581_v17, %v3577_v13  ;;  %v6533_v41 = vpack.c.bf16 %v3589_v54, %v3585_v45  ;;  %v6463_v11 = vpack.c.bf16 %v3596_v18, %v3592_v50  ;;  %v3597_v35 = vld [vmem:[%s9233_s19 + $0x130] sm:$0xff]  ;;  %v4595_v14 = vld [vmem:[%s9235_s24] sm:$0xf]  ;;  %v6535_v20 = vpack.c.bf16 %v3598_v0, %v3594_v22  ;;  %v3600_v29 = vld [vmem:[%s9233_s19 + $0x148] sm:$0xff] }
 0x707   :  { %6374 = vmatpush1.bf16.msra.mxu0 %v6373_v15  ;;  %6446 = vmatpush1.bf16.msra.mxu1 %v6445_v59  ;;  %v6459_v15 = vpack.c.bf16 %v3588_v9, %v3584_v63  ;;  %v3587_v59 = vld [vmem:[%s9233_s19 + $0xe0] sm:$0xff]  ;;  %v3604_v57 = vld [vmem:[%s9233_s19 + $0x168] sm:$0xff]  ;;  %v3602_v58 = vld [vmem:[%s9233_s19 + $0x158] sm:$0xff] }
 0x708   :  { %6448 = vmatprep.subr.bf16.mxu0 %v6447_v12  ;;  %6520 = vmatprep.subr.bf16.mxu1 %v6519_v7  ;;  %v4674_v12 = vld [vmem:[%s9234_s21] sm:$0xf]  ;;  %v6531_v7 = vpack.c.bf16 %v3590_v47, %v3586_v60  ;;  %v6461_v46 = vpack.c.bf16 %v3587_v59, %v3583_v10  ;;  %v3608_v27 = vld [vmem:[%s9233_s19 + $0x188] sm:$0xff]  ;;  %v3610_v44 = vld [vmem:[%s9233_s19 + $0x198] sm:$0xff] }
 0x709   :  { %v4596_v34 = vld [vmem:[%s9236_s30] sm:$0xf]  ;;  %v3614_v13 = vld [vmem:[%s9233_s19 + $0x1b8] sm:$0xff]  ;;  %v3613_v10 = vld [vmem:[%s9233_s19 + $0x1b0] sm:$0xff] }
 0x70a   :  { %5697 = vmatmul.mubr.msk.f32.vlgmr.msra.gmra.mrb[16].mxu0 %vm3847_vm13, %v3558_v33  ;;  %5698 = vmatmul.mubr.msk.f32.vlgmr.msra.gmra.mrb[16].mxu1 %vm3847_vm13, %v3558_v33  ;;  %v3606_v33 = vld [vmem:[%s9233_s19 + $0x178] sm:$0xff]  ;;  %v3599_v25 = vld [vmem:[%s9233_s19 + $0x140] sm:$0xff]  ;;  %v3620_v59 = vld [vmem:[%s9233_s19 + $0x1e8] sm:$0xff] }
 0x70b   :  { %6450 = vmatpush1.bf16.msra.mxu0 %v6449_v2  ;;  %6522 = vmatpush1.bf16.msra.mxu1 %v6521_v32  ;;  %v3595_v2 = vld [vmem:[%s9233_s19 + $0x120] sm:$0xff]  ;;  %v3593_v32 = vld [vmem:[%s9233_s19 + $0x110] sm:$0xff]  ;;  %v3618_v45 = vld [vmem:[%s9233_s19 + $0x1d8] sm:$0xff] }
 0x70c   :  { %4202 = vmatprep.mubr.f32.mxu0 %v3536_v8  ;;  %4344 = vmatprep.mubr.f32.mxu1 %v3536_v8  ;;  %v3603_v21 = vld [vmem:[%s9233_s19 + $0x160] sm:$0xff]  ;;  %v6467_v8 = vpack.c.bf16 %v3604_v57, %v3600_v29  ;;  %v3622_v54 = vld [vmem:[%s9233_s19 + $0x1f8] sm:$0xff] }
 0x70d   :  { %6452 = vmatprep.subr.bf16.mxu0 %v6451_v62  ;;  %6524 = vmatprep.subr.bf16.mxu1 %v6523_v19  ;;  %v6465_v62 = vpack.c.bf16 %v3595_v2, %v3591_v39  ;;  %v6537_v19 = vpack.c.bf16 %v3597_v35, %v3593_v32  ;;  %v6469_v17 = vpack.c.bf16 %v3603_v21, %v3599_v25  ;;  %v3607_v9 = vld [vmem:[%s9233_s19 + $0x180] sm:$0xff]  ;;  %v3624_v39 = vld [vmem:[%s9233_s19 + $0x208] sm:$0xff]  ;;  %v3626_v2 = vld [vmem:[%s9233_s19 + $0x218] sm:$0xff] }
 0x70e   :  { %v3611_v60 = vld [vmem:[%s9233_s19 + $0x1a0] sm:$0xff]  ;;  %v6547_v0 = vpack.c.bf16 %v3622_v54, %v3618_v45  ;;  %v3630_v32 = vld [vmem:[%s9233_s19 + $0x238] sm:$0xff]  ;;  %v3641_v45 = vld [vmem:[%s9233_s19 + $0x290] sm:$0xff] }
 0x70f   :  { %6454 = vmatpush1.bf16.msra.mxu0 %v6453_v43  ;;  %6526 = vmatpush1.bf16.msra.mxu1 %v6525_v3  ;;  %v3601_v43 = vld [vmem:[%s9233_s19 + $0x150] sm:$0xff]  ;;  %v3615_v50 = vld [vmem:[%s9233_s19 + $0x1c0] sm:$0xff]  ;;  %v3634_v25 = vld [vmem:[%s9233_s19 + $0x258] sm:$0xff] }
 0x710   :  { %6456 = vmatprep.subr.bf16.mxu0 %v6455_v37  ;;  %6528 = vmatprep.subr.bf16.mxu1 %v6527_v16  ;;  %v3605_v3 = vld [vmem:[%s9233_s19 + $0x170] sm:$0xff]  ;;  %v6539_v37 = vpack.c.bf16 %v3606_v33, %v3602_v58  ;;  %v3612_v16 = vld [vmem:[%s9233_s19 + $0x1a8] sm:$0xff]  ;;  %v3619_v18 = vld [vmem:[%s9233_s19 + $0x1e0] sm:$0xff]  ;;  %v6551_v58 = vpack.c.bf16 %v3630_v32, %v3626_v2 }
 0x711   :  { %v6541_v63 = vpack.c.bf16 %v3605_v3, %v3601_v43  ;;  %v6471_v47 = vpack.c.bf16 %v3612_v16, %v3608_v27  ;;  %v6477_v35 = vpack.c.bf16 %v3619_v18, %v3615_v50  ;;  %v3627_v29 = vld [vmem:[%s9233_s19 + $0x220] sm:$0xff]  ;;  %v3625_v33 = vld [vmem:[%s9233_s19 + $0x210] sm:$0xff]  ;;  %v3638_v21 = vld [vmem:[%s9233_s19 + $0x278] sm:$0xff] }
 0x712   :  { %v3631_v3 = vld [vmem:[%s9233_s19 + $0x240] sm:$0xff]  ;;  %v6555_v16 = vpack.c.bf16 %v3638_v21, %v3634_v25  ;;  %v3645_v54 = vld [vmem:[%s9233_s19 + $0x2b0] sm:$0xff]  ;;  %v3650_v50 = vld [vmem:[%s9233_s19 + $0x2d8] sm:$0xff] }
 0x713   :  { %6458 = vmatpush1.bf16.msra.mxu0 %v6457_v28  ;;  %6530 = vmatpush1.bf16.msra.mxu1 %v6529_v53  ;;  %v6543_v28 = vpack.c.bf16 %v3614_v13, %v3610_v44  ;;  %v3609_v53 = vld [vmem:[%s9233_s19 + $0x190] sm:$0xff]  ;;  %v3635_v27 = vld [vmem:[%s9233_s19 + $0x260] sm:$0xff]  ;;  %v3654_v18 = vld [vmem:[%s9233_s19 + $0x2f8] sm:$0xff] }
 0x714   :  { %4713 = vperm.xlu0 %6710, %v4674_v12   ;;  %6460 = vmatprep.subr.bf16.mxu0 %v6459_v15  ;;  %v3616_v15 = vld [vmem:[%s9233_s19 + $0x1c8] sm:$0xff]  ;;  %v6473_v12 = vpack.c.bf16 %v3611_v60, %v3607_v9  ;;  %v3633_v44 = vld [vmem:[%s9233_s19 + $0x250] sm:$0xff]  ;;  %v3642_v9 = vld [vmem:[%s9233_s19 + $0x298] sm:$0xff] }
 0x715   :  { %6532 = vmatprep.subr.bf16.mxu1 %v6531_v7  ;;  %v6545_v7 = vpack.c.bf16 %v3613_v10, %v3609_v53  ;;  %v6475_v22 = vpack.c.bf16 %v3620_v59, %v3616_v15  ;;  %v3637_v13 = vld [vmem:[%s9233_s19 + $0x270] sm:$0xff]  ;;  %v3646_v60 = vld [vmem:[%s9233_s19 + $0x2b8] sm:$0xff]  ;;  %v3639_v53 = vld [vmem:[%s9233_s19 + $0x280] sm:$0xff] }
 0x716   :  { %v3643_v10 = vld [vmem:[%s9233_s19 + $0x2a0] sm:$0xff]  ;;  %v6559_v59 = vpack.c.bf16 %v3646_v60, %v3642_v9  ;;  %v3649_v2 = vld [vmem:[%s9233_s19 + $0x2d0] sm:$0xff] }
 0x717   :  { %6462 = vmatpush1.bf16.msra.mxu0 %v6461_v46  ;;  %6534 = vmatpush1.bf16.msra.mxu1 %v6533_v41  ;;  %v3617_v46 = vld [vmem:[%s9233_s19 + $0x1d0] sm:$0xff] }
 0x718   :  { %4642 = vperm.xlu0 %6710, %v4595_v14   ;;  %6464 = vmatprep.subr.bf16.mxu0 %v6463_v11  ;;  %v3621_v41 = vld [vmem:[%s9233_s19 + $0x1f0] sm:$0xff]  ;;  %v3628_v11 = vld [vmem:[%s9233_s19 + $0x228] sm:$0xff] }
 0x719   :  { %6536 = vmatprep.subr.bf16.mxu1 %v6535_v20  ;;  %v6549_v14 = vpack.c.bf16 %v3621_v41, %v3617_v46  ;;  %v3623_v20 = vld [vmem:[%s9233_s19 + $0x200] sm:$0xff]  ;;  %v6479_v57 = vpack.c.bf16 %v3628_v11, %v3624_v39  ;;  %v6563_v11 = vpack.c.bf16 %v3654_v18, %v3650_v50  ;;  %v3653_v32 = vld [vmem:[%s9233_s19 + $0x2f0] sm:$0xff] }
 0x71a   :  { %v3647_v46 = vld [vmem:[%s9233_s19 + $0x2c0] sm:$0xff]  ;;  %v3657_v25 = vld [vmem:[%s9233_s19 + $0x310] sm:$0xff] }
 0x71b   :  { %6466 = vmatpush1.bf16.msra.mxu0 %v6465_v62  ;;  %6538 = vmatpush1.bf16.msra.mxu1 %v6537_v19  ;;  %v3629_v62 = vld [vmem:[%s9233_s19 + $0x230] sm:$0xff]  ;;  %v3632_v19 = vld [vmem:[%s9233_s19 + $0x248] sm:$0xff]  ;;  %v3651_v41 = vld [vmem:[%s9233_s19 + $0x2e0] sm:$0xff] }
 0x71c   :  { %4655 = vperm.xlu0 %6710, %v4596_v34   ;;  %6468 = vmatprep.subr.bf16.mxu0 %v6467_v8  ;;  %v3636_v34 = vld [vmem:[%s9233_s19 + $0x268] sm:$0xff]  ;;  %v6481_v8 = vpack.c.bf16 %v3627_v29, %v3623_v20  ;;  %v6553_v43 = vpack.c.bf16 %v3629_v62, %v3625_v33  ;;  %v3658_v20 = vld [vmem:[%s9233_s19 + $0x318] sm:$0xff]  ;;  %v3655_v33 = vld [vmem:[%s9233_s19 + $0x300] sm:$0xff] }
 0x71d   :  { %6540 = vmatprep.subr.bf16.mxu1 %v6539_v37  ;;  %v6483_v37 = vpack.c.bf16 %v3636_v34, %v3632_v19  ;;  %v3662_v29 = vld [vmem:[%s9233_s19 + $0x338] sm:$0xff]  ;;  %v3659_v62 = vld [vmem:[%s9233_s19 + $0x320] sm:$0xff]  ;;  %v3661_v21 = vld [vmem:[%s9233_s19 + $0x330] sm:$0xff] }
 0x71e   :  { %v6567_v34 = vpack.c.bf16 %v3662_v29, %v3658_v20  ;;  %v3665_v9 = vld [vmem:[%s9233_s19 + $0x350] sm:$0xff] }
 0x71f   :  { %6470 = vmatpush1.bf16.msra.mxu0 %v6469_v17  ;;  %6542 = vmatpush1.bf16.msra.mxu1 %v6541_v63  ;;  %v3640_v17 = vld [vmem:[%s9233_s19 + $0x288] sm:$0xff]  ;;  %v3669_v60 = vld [vmem:[%s9233_s19 + $0x370] sm:$0xff] }
 0x720   :  { %6472 = vmatprep.subr.bf16.mxu0 %v6471_v47  ;;  %6544 = vmatprep.subr.bf16.mxu1 %v6543_v28  ;;  %v3644_v63 = vld [vmem:[%s9233_s19 + $0x2a8] sm:$0xff]  ;;  %v6485_v47 = vpack.c.bf16 %v3635_v27, %v3631_v3  ;;  %v6557_v28 = vpack.c.bf16 %v3637_v13, %v3633_v44  ;;  %v3666_v3 = vld [vmem:[%s9233_s19 + $0x358] sm:$0xff]  ;;  %v3663_v44 = vld [vmem:[%s9233_s19 + $0x340] sm:$0xff] }
 0x721   :  { %v6487_v15 = vpack.c.bf16 %v3644_v63, %v3640_v17  ;;  %v3670_v27 = vld [vmem:[%s9233_s19 + $0x378] sm:$0xff]  ;;  %v3667_v13 = vld [vmem:[%s9233_s19 + $0x360] sm:$0xff]  ;;  %v3673_v50 = vld [vmem:[%s9233_s19 + $0x390] sm:$0xff] }
 0x722   :  { %v6571_v63 = vpack.c.bf16 %v3670_v27, %v3666_v3  ;;  %v3677_v18 = vld [vmem:[%s9233_s19 + $0x3b0] sm:$0xff] }
 0x723   :  { %6474 = vmatpush1.bf16.msra.mxu0 %v6473_v12  ;;  %6546 = vmatpush1.bf16.msra.mxu1 %v6545_v7  ;;  %v3648_v12 = vld [vmem:[%s9233_s19 + $0x2c8] sm:$0xff]  ;;  %v3681_v20 = vld [vmem:[%s9233_s19 + $0x3d0] sm:$0xff] }
 0x724   :  { %6476 = vmatprep.subr.bf16.mxu0 %v6475_v22  ;;  %6548 = vmatprep.subr.bf16.mxu1 %v6547_v0  ;;  %v3652_v7 = vld [vmem:[%s9233_s19 + $0x2e8] sm:$0xff]  ;;  %v6489_v22 = vpack.c.bf16 %v3643_v10, %v3639_v53  ;;  %v6561_v0 = vpack.c.bf16 %v3645_v54, %v3641_v45  ;;  %v3674_v53 = vld [vmem:[%s9233_s19 + $0x398] sm:$0xff]  ;;  %v3671_v45 = vld [vmem:[%s9233_s19 + $0x380] sm:$0xff] }
 0x725   :  { %v6491_v39 = vpack.c.bf16 %v3652_v7, %v3648_v12  ;;  %v3678_v10 = vld [vmem:[%s9233_s19 + $0x3b8] sm:$0xff]  ;;  %v3675_v54 = vld [vmem:[%s9233_s19 + $0x3a0] sm:$0xff]  ;;  %v3685_v29 = vld [vmem:[%s9233_s19 + $0x3f0] sm:$0xff] }
 0x726   :  { %v6575_v7 = vpack.c.bf16 %v3678_v10, %v3674_v53  ;;  %v3689_v3 = vld [vmem:[%s9233_s19 + $0x410] sm:$0xff] }
 0x727   :  { %6478 = vmatpush1.bf16.msra.mxu0 %v6477_v35  ;;  %6550 = vmatpush1.bf16.msra.mxu1 %v6549_v14  ;;  %v3656_v35 = vld [vmem:[%s9233_s19 + $0x308] sm:$0xff]  ;;  %v3693_v27 = vld [vmem:[%s9233_s19 + $0x430] sm:$0xff] }
 0x728   :  { %6480 = vmatprep.subr.bf16.mxu0 %v6479_v57  ;;  %6552 = vmatprep.subr.bf16.mxu1 %v6551_v58  ;;  %v3660_v14 = vld [vmem:[%s9233_s19 + $0x328] sm:$0xff]  ;;  %v6493_v57 = vpack.c.bf16 %v3651_v41, %v3647_v46  ;;  %v6565_v58 = vpack.c.bf16 %v3653_v32, %v3649_v2  ;;  %v3682_v46 = vld [vmem:[%s9233_s19 + $0x3d8] sm:$0xff]  ;;  %v3679_v2 = vld [vmem:[%s9233_s19 + $0x3c0] sm:$0xff] }
 0x729   :  { %v6495_v19 = vpack.c.bf16 %v3660_v14, %v3656_v35  ;;  %v3686_v41 = vld [vmem:[%s9233_s19 + $0x3f8] sm:$0xff]  ;;  %v3683_v32 = vld [vmem:[%s9233_s19 + $0x3e0] sm:$0xff]  ;;  %v3697_v53 = vld [vmem:[%s9233_s19 + $0x450] sm:$0xff] }
 0x72a   :  { %v6579_v14 = vpack.c.bf16 %v3686_v41, %v3682_v46  ;;  %v3701_v10 = vld [vmem:[%s9233_s19 + $0x470] sm:$0xff] }
 0x72b   :  { %6482 = vmatpush1.bf16.msra.mxu0 %v6481_v8  ;;  %6554 = vmatpush1.bf16.msra.mxu1 %v6553_v43  ;;  %v3664_v8 = vld [vmem:[%s9233_s19 + $0x348] sm:$0xff] }
 0x72c   :  { %6484 = vmatprep.subr.bf16.mxu0 %v6483_v37  ;;  %6556 = vmatprep.subr.bf16.mxu1 %v6555_v16  ;;  %v3668_v43 = vld [vmem:[%s9233_s19 + $0x368] sm:$0xff]  ;;  %v6497_v37 = vpack.c.bf16 %v3659_v62, %v3655_v33  ;;  %v6569_v16 = vpack.c.bf16 %v3661_v21, %v3657_v25  ;;  %v3690_v33 = vld [vmem:[%s9233_s19 + $0x418] sm:$0xff]  ;;  %v3687_v25 = vld [vmem:[%s9233_s19 + $0x400] sm:$0xff] }
 0x72d   :  { %v6499_v17 = vpack.c.bf16 %v3668_v43, %v3664_v8  ;;  %v3694_v62 = vld [vmem:[%s9233_s19 + $0x438] sm:$0xff]  ;;  %v3691_v21 = vld [vmem:[%s9233_s19 + $0x420] sm:$0xff] }
 0x72e   :  { %v6583_v43 = vpack.c.bf16 %v3694_v62, %v3690_v33  ;;  %v5708_v41 = vld [vmem:[%s7052_s4 + $0x2] ss:$8 sm:$0xf] }
 0x72f   :  { %6486 = vmatpush1.bf16.msra.mxu0 %v6485_v47  ;;  %6558 = vmatpush1.bf16.msra.mxu1 %v6557_v28  ;;  %v3672_v47 = vld [vmem:[%s9233_s19 + $0x388] sm:$0xff] }
 0x730   :  { %6488 = vmatprep.subr.bf16.mxu0 %v6487_v15  ;;  %6560 = vmatprep.subr.bf16.mxu1 %v6559_v59  ;;  %v3676_v28 = vld [vmem:[%s9233_s19 + $0x3a8] sm:$0xff]  ;;  %v6501_v15 = vpack.c.bf16 %v3667_v13, %v3663_v44  ;;  %v6573_v59 = vpack.c.bf16 %v3669_v60, %v3665_v9  ;;  %v3698_v44 = vld [vmem:[%s9233_s19 + $0x458] sm:$0xff]  ;;  %v3695_v9 = vld [vmem:[%s9233_s19 + $0x440] sm:$0xff] }
 0x731   :  { %v6503_v12 = vpack.c.bf16 %v3676_v28, %v3672_v47  ;;  %v3702_v13 = vld [vmem:[%s9233_s19 + $0x478] sm:$0xff]  ;;  %v3699_v28 = vld [vmem:[%s9233_s19 + $0x460] sm:$0xff] }
 0x732   :  { %v6587_v47 = vpack.c.bf16 %v3702_v13, %v3698_v44 }
 0x733   :  { %6490 = vmatpush1.bf16.msra.mxu0 %v6489_v22  ;;  %6562 = vmatpush1.bf16.msra.mxu1 %v6561_v0  ;;  %v3680_v22 = vld [vmem:[%s9233_s19 + $0x3c8] sm:$0xff] }
 0x734   :  { %6492 = vmatprep.subr.bf16.mxu0 %v6491_v39  ;;  %6564 = vmatprep.subr.bf16.mxu1 %v6563_v11  ;;  %v3684_v0 = vld [vmem:[%s9233_s19 + $0x3e8] sm:$0xff]  ;;  %v6505_v39 = vpack.c.bf16 %v3675_v54, %v3671_v45  ;;  %v6577_v11 = vpack.c.bf16 %v3677_v18, %v3673_v50 }
 0x735   :  { %v6507_v35 = vpack.c.bf16 %v3684_v0, %v3680_v22  ;;  %v4422_v0 = vld [vmem:[%s9237_s6] sm:$0xf] }
 0x737   :  { %6494 = vmatpush1.bf16.msra.mxu0 %v6493_v57  ;;  %6566 = vmatpush1.bf16.msra.mxu1 %v6565_v58  ;;  %v3688_v57 = vld [vmem:[%s9233_s19 + $0x408] sm:$0xff] }
 0x738   :  { %6496 = vmatprep.subr.bf16.mxu0 %v6495_v19  ;;  %6568 = vmatprep.subr.bf16.mxu1 %v6567_v34  ;;  %v3692_v58 = vld [vmem:[%s9233_s19 + $0x428] sm:$0xff]  ;;  %v6509_v19 = vpack.c.bf16 %v3683_v32, %v3679_v2  ;;  %v6581_v34 = vpack.c.bf16 %v3685_v29, %v3681_v20 }
 0x739   :  { %v6511_v8 = vpack.c.bf16 %v3692_v58, %v3688_v57 }
 0x73b   :  { %6498 = vmatpush1.bf16.msra.mxu0 %v6497_v37  ;;  %6570 = vmatpush1.bf16.msra.mxu1 %v6569_v16  ;;  %v3696_v37 = vld [vmem:[%s9233_s19 + $0x448] sm:$0xff] }
 0x73c   :  { %6500 = vmatprep.subr.bf16.mxu0 %v6499_v17  ;;  %6572 = vmatprep.subr.bf16.mxu1 %v6571_v63  ;;  %v3700_v16 = vld [vmem:[%s9233_s19 + $0x468] sm:$0xff]  ;;  %v6513_v17 = vpack.c.bf16 %v3691_v21, %v3687_v25  ;;  %v6585_v63 = vpack.c.bf16 %v3693_v27, %v3689_v3 }
 0x73d   :  { %v6515_v60 = vpack.c.bf16 %v3700_v16, %v3696_v37 }
 0x73f   :  { %6502 = vmatpush1.bf16.msra.mxu0 %v6501_v15  ;;  %6574 = vmatpush1.bf16.msra.mxu1 %v6573_v59  ;;  %v6517_v15 = vpack.c.bf16 %v3699_v28, %v3695_v9  ;;  %v6589_v59 = vpack.c.bf16 %v3701_v10, %v3697_v53  ;;  %v4594_v28 = vld [vmem:[%s9238_s12] sm:$0xf] }
 0x740   :  { %6504 = vmatprep.subr.bf16.mxu0 %v6503_v12  ;;  %6576 = vmatprep.subr.bf16.mxu1 %v6575_v7  ;;  %v4675_v53 = vld [vmem:[%s9239_s20] sm:$0xf] }
 0x741   :  { %v4676_v10 = vld [vmem:[%s9240_s1] sm:$0xf] }
 0x743   :  { %6506 = vmatpush1.bf16.msra.mxu0 %v6505_v39  ;;  %6578 = vmatpush1.bf16.msra.mxu1 %v6577_v11  ;;  %v4942_v39 = vrot.slane %v5708_v41, %v7074_v6  ;;  %v4950_v11 = vrot.slane %v5708_v41, %v7117_v26 }
 0x744   :  { %6508 = vmatprep.subr.bf16.mxu0 %v6507_v35  ;;  %6580 = vmatprep.subr.bf16.mxu1 %v6579_v14 }
 0x747   :  { %6510 = vmatpush1.bf16.msra.mxu0 %v6509_v19  ;;  %6582 = vmatpush1.bf16.msra.mxu1 %v6581_v34 }
 0x748   :  { %6512 = vmatprep.subr.bf16.mxu0 %v6511_v8  ;;  %6584 = vmatprep.subr.bf16.mxu1 %v6583_v43 }
 0x74a   :  { %4203 = vmatmul.mubr.f32.vlgmr.msra.gmra.mrb[16].mxu0 %v8595_v55  ;;  %4345 = vmatmul.mubr.f32.vlgmr.msra.gmra.mrb[16].mxu1 %v8595_v55 }
 0x74b   :  { %6514 = vmatpush1.bf16.msra.mxu0 %v6513_v17  ;;  %6586 = vmatpush1.bf16.msra.mxu1 %v6585_v63 }
 0x74c   :  { %6516 = vmatprep.subr.bf16.mxu0 %v6515_v60  ;;  %6588 = vmatprep.subr.bf16.mxu1 %v6587_v47 }
 0x74d   :  { %4273 = vmatprep.mubr.f32.mxu0 %v8604_v56  ;;  %4415 = vmatprep.mubr.f32.mxu1 %v8604_v56 }
 0x74f   :  { %6518 = vmatpush1.bf16.msra.mxu0 %v6517_v15  ;;  %6590 = vmatpush1.bf16.msra.mxu1 %v6589_v59 }
 0x752   :  { %5699 = vmatmul.mubr.msk.f32.vlgmr.msra.gmra.mrb[16].mxu0 %vm3847_vm13, %v8599_v49  ;;  %5700 = vmatmul.mubr.msk.f32.vlgmr.msra.gmra.mrb[16].mxu1 %vm3847_vm13, %v8599_v49 }
 0x753   :  { %4512 = vmatprep.mubr.f32.mxu0 %v8604_v56  ;;  %4583 = vmatprep.mubr.f32.mxu1 %v8604_v56 }
 0x78b   :  { %v4605_v2 = vpop.xlane.xlu0 %4604 }
 0x78c   :  { %v4606_v32 = vmul.f32 0.001953125, %v4605_v2 }
 0x78e   :  { %v8791_v35 = vsub.f32 %v8539_v30, %v4606_v32  ;;  %v8794_v14 = vsub.f32 %v8542_v40, %v4606_v32  ;;  %v8801_v57 = vsub.f32 %v8545_v38, %v4606_v32  ;;  %v8820_v43 = vsub.f32 %v8552_v52, %v4606_v32 }
 0x790   :  { %v4611_v20 = vmul.f32 %v8791_v35, %v8791_v35  ;;  %v4612_v29 = vmul.f32 %v8794_v14, %v8794_v14  ;;  %v4613_v27 = vmul.f32 %v8801_v57, %v8801_v57  ;;  %v4614_v52 = vmul.f32 %v8820_v43, %v8820_v43 }
 0x792   :  { %v4615_v21 = vsel %vm828_vm8, %v4611_v20, 0.0  ;;  %v4616_v38 = vsel %vm828_vm8, %v4612_v29, 0.0  ;;  %v4618_v17 = vsel %vm828_vm8, %v4613_v27, 0.0  ;;  %v4620_v60 = vsel %vm828_vm8, %v4614_v52, 0.0 }
 0x793   :  { %v4617_v37 = vadd.f32 %v4616_v38, %v4615_v21  ;;  %v8894_v29 = vpop.permute.xlu0 %4713 }
 0x795   :  { %v4619_v9 = vadd.f32 %v4618_v17, %v4617_v37 }
 0x797   :  { %v4621_v47 = vadd.f32 %v4620_v60, %v4619_v9 }
 0x825   :  { %v4275_v55 = vpop.f32.mrb[16].mxu0  ;;  %v4417_v45 = vpop.f32.mrb[16].mxu1 }
 0x826   :  { %v4277_v54 = vpop.f32.mrb[17].mxu0  ;;  %v4419_v12 = vpop.f32.mrb[17].mxu1  ;;  %v4423_v18 = vadd.f32 %v4275_v55, %v8021_v42  ;;  %v4425_v22 = vadd.f32 %v4417_v45, %v8103_v61  ;;  %v5707_v61 = vld [vmem:[%s7052_s4 + $0x1] ss:$8 sm:$0xf] }
 0x827   :  { %v4424_v7 = vadd.f32 %v4277_v54, %v8019_v23  ;;  %v4426_v50 = vadd.f32 %v4419_v12, %v8033_v36  ;;  %v4786_v23 = vld [vmem:[%s7052_s4] ss:$8 sm:$0xf]  ;;  %v4871_v49 = vrot.slane %v5707_v61, %v7074_v6  ;;  %v4879_v46 = vrot.slane %v5707_v61, %v7117_v26 }
 0x828   :  { %v4800_v42 = vrot.slane %v4786_v23, %v7074_v6  ;;  %v4808_v36 = vrot.slane %v4786_v23, %v7117_v26  ;;  %v4796_v15 = vrot.slane %v4786_v23, %v7072_v5  ;;  %v4804_v59 = vrot.slane %v4786_v23, %v7070_v4 }
 0x829   :  { %5701 = vmatprep.subr.msk.mxu0 %vm2121_vm11, %v4424_v7  ;;  %5704 = vmatprep.subr.msk.mxu1 %vm2121_vm11, %v4426_v50  ;;  %v4867_v55 = vrot.slane %v5707_v61, %v7072_v5  ;;  %v4875_v45 = vrot.slane %v5707_v61, %v7070_v4  ;;  %v4938_v54 = vrot.slane %v5708_v41, %v7072_v5  ;;  %v8849_v7 = vld [vmem:[%s7052_s4 + $0x3] ss:$8 sm:$0xf] }
 0x82a   :  { %5702 = vmatpush1.msk.msra.mxu0 %vm2121_vm11, %v4423_v18  ;;  %5705 = vmatpush1.msk.msra.mxu1 %vm2121_vm11, %v4425_v22  ;;  %v4946_v12 = vrot.slane %v5708_v41, %v7070_v4  ;;  %v5009_v50 = vrot.slane %v8849_v7, %v7072_v5  ;;  %v5017_v18 = vrot.slane %v8849_v7, %v7070_v4  ;;  %v8858_v22 = vld [vmem:[%s7052_s4 + $0x5] ss:$8 sm:$0xf] }
 0x82b   :  { %5703 = vmatmul.mubr.msk.f32.vlgmr.msra.gmra.mrb[2].mxu0 %vm3147_vm10, %v4422_v0  ;;  %5706 = vmatmul.mubr.msk.f32.vlgmr.msra.gmra.mrb[2].mxu1 %vm3147_vm10, %v4422_v0  ;;  %v5114_v0 = vrot.slane %v8858_v22, %v7072_v5  ;;  %v5122_v23 = vrot.slane %v8858_v22, %v7070_v4 }
 0x82c   :  { %5499 = vmatprep.mubr.f32.mxu0 %v8604_v56  ;;  %5570 = vmatprep.mubr.f32.mxu1 %v8604_v56 }
 0x82d   :  { %4811 = vrot.lane.b32.xlu0 %v4800_v42, %s6879_s16  ;;  %v8867_v42 = vld [vmem:[%s7052_s4 + $0x6] ss:$8 sm:$0xf] }
 0x82e   :  { %v5193_v61 = vrot.slane %v8867_v42, %v7070_v4 }
 0x831   :  { %4815 = vrot.lane.b32.xlu0 %v4808_v36, %s6879_s16  ;;  %v5185_v36 = vrot.slane %v8867_v42, %v7072_v5 }
 0x835   :  { %4882 = vrot.lane.b32.xlu0 %v4871_v49, %s6877_s0  ;;  %v8876_v49 = vld [vmem:[%s7052_s4 + $0x7] ss:$8 sm:$0xf] }
 0x836   :  { %v5264_v41 = vrot.slane %v8876_v49, %v7070_v4 }
 0x839   :  { %4886 = vrot.lane.b32.xlu0 %v4879_v46, %s6877_s0  ;;  %v5256_v46 = vrot.slane %v8876_v49, %v7072_v5 }
 0x83d   :  { %4953 = vrot.lane.b32.xlu0 %v4942_v39, %s6880_s18  ;;  %v8885_v39 = vld [vmem:[%s7052_s4 + $0x20] ss:$8 sm:$0xf] }
 0x83e   :  { %v5335_v2 = vrot.slane %v8885_v39, %v7070_v4 }
 0x841   :  { %4957 = vrot.lane.b32.xlu0 %v4950_v11, %s6880_s18  ;;  %v5327_v11 = vrot.slane %v8885_v39, %v7072_v5 }
 0x8fe   :  { %v4514_v58 = vpop.f32.mrb[2].mxu0  ;;  %v4585_v33 = vpop.f32.mrb[2].mxu1 }
 0x8ff   :  { %v8804_v62 = vadd.f32 %v8536_v31, %v4514_v58  ;;  %v8807_v30 = vadd.f32 %v8536_v31, %v4585_v33  ;;  %v4516_v19 = vpop.f32.mrb[3].mxu0  ;;  %v4587_v40 = vpop.f32.mrb[3].mxu1 }
 0x900   :  { %v8810_v34 = vadd.f32 %v8536_v31, %v4516_v19  ;;  %v8813_v25 = vadd.f32 %v8536_v31, %v4587_v40 }
 0x901   :  { %v4677_v8 = vsel %vm828_vm8, %v8804_v62, 0.0  ;;  %v4680_v16 = vsel %vm828_vm8, %v8807_v30, 0.0 }
 0x902   :  { %v4678_v3 = vsel %vm828_vm8, %v8810_v34, 0.0  ;;  %v4682_v13 = vsel %vm828_vm8, %v8813_v25, 0.0 }
 0x903   :  { %v4679_v31 = vadd.f32 %v4678_v3, %v4677_v8 }
 0x905   :  { %v4681_v44 = vadd.f32 %v4680_v16, %v4679_v31  ;;  %v4643_v31 = vpop.permute.xlu0 %4642 }
 0x907   :  { %v4683_v63 = vadd.f32 %v4682_v13, %v4681_v44 }
 0x909   :  { %4684 = vadd.xlane.f32.xlu1 %v4683_v63  ;;  %v4656_v9 = vpop.permute.xlu0 %4655 }
 0x90d   :  { %4622 = vadd.xlane.f32.xlu1 %v4621_v47  ;;  %v4812_v47 = vpop.permute.xlu0 %4811 }
 0x91e   :  { %4633 = vperm.xlu1 %6711, %v4594_v28  }
 0x922   :  { %4722 = vperm.xlu1 %6711, %v4675_v53  }
 0x926   :  { %4735 = vperm.xlu1 %6711, %v4676_v10  }
 0x92a   :  { %4809 = vrot.lane.b32.xlu1 %v4796_v15, %s6879_s16 }
 0x92e   :  { %4813 = vrot.lane.b32.xlu1 %v4804_v59, %s6879_s16 }
 0x932   :  { %4880 = vrot.lane.b32.xlu1 %v4867_v55, %s6877_s0 }
 0x936   :  { %4884 = vrot.lane.b32.xlu1 %v4875_v45, %s6877_s0 }
 0x93a   :  { %4951 = vrot.lane.b32.xlu1 %v4938_v54, %s6880_s18 }
 0x93e   :  { %4955 = vrot.lane.b32.xlu1 %v4946_v12, %s6880_s18 }
 0x942   :  { %5022 = vrot.lane.b32.xlu1 %v5009_v50, %s6878_s15 }
 0x946   :  { %5026 = vrot.lane.b32.xlu1 %v5017_v18, %s6878_s15 }
 0x94a   :  { %5127 = vrot.lane.b32.xlu1 %v5114_v0, %s6881_s22 }
 0x94e   :  { %5131 = vrot.lane.b32.xlu1 %v5122_v23, %s6881_s22 }
 0x952   :  { %5198 = vrot.lane.b32.xlu1 %v5185_v36, %s6883_s26 }
 0x956   :  { %5202 = vrot.lane.b32.xlu1 %v5193_v61, %s6883_s26 }
 0x95a   :  { %5269 = vrot.lane.b32.xlu1 %v5256_v46, %s6882_s23 }
 0x95e   :  { %5273 = vrot.lane.b32.xlu1 %v5264_v41, %s6882_s23 }
 0x962   :  { %5340 = vrot.lane.b32.xlu1 %v5327_v11, %s6884_s28 }
 0x966   :  { %5344 = vrot.lane.b32.xlu1 %v5335_v2, %s6884_s28 }
 0x996   :  { %v4685_v32 = vpop.xlane.xlu1 %4684 }
 0x997   :  { %v4686_v20 = vmul.f32 0.001953125, %v4685_v32 }
 0x999   :  { %v8897_v58 = vsub.f32 %v8804_v62, %v4686_v20  ;;  %v8900_v33 = vsub.f32 %v8810_v34, %v4686_v20  ;;  %v8903_v19 = vsub.f32 %v8807_v30, %v4686_v20  ;;  %v8906_v40 = vsub.f32 %v8813_v25, %v4686_v20 }
 0x99a   :  { %v4623_v21 = vpop.xlane.xlu1 %4622 }
 0x99b   :  { %v4691_v38 = vmul.f32 %v8897_v58, %v8897_v58  ;;  %v4692_v8 = vmul.f32 %v8900_v33, %v8900_v33  ;;  %v4624_v3 = vmul.f32 0.001953125, %v4623_v21  ;;  %v4693_v62 = vmul.f32 %v8903_v19, %v8903_v19 }
 0x99c   :  { %v4694_v34 = vmul.f32 %v8906_v40, %v8906_v40 }
 0x99d   :  { %v4625_v27 = vadd.f32 1e-05, %v4624_v3  ;;  %v4695_v30 = vsel %vm828_vm8, %v4691_v38, 0.0  ;;  %v4696_v25 = vsel %vm828_vm8, %v4692_v8, 0.0  ;;  %v4698_v44 = vsel %vm828_vm8, %v4693_v62, 0.0  ;;  %v9241_v8 = vld [vmem:[#allocation28_spill] sm:$0xff] }
 0x99e   :  { %v4634_v37 = vpop.permute.xlu1 %4633  ;;  %v4697_v16 = vadd.f32 %v4696_v25, %v4695_v30  ;;  %v4700_v52 = vsel %vm828_vm8, %v4694_v34, 0.0  ;;  %v9242_v62 = vld [vmem:[#allocation29_spill] sm:$0xff]  ;;  %v9243_v34 = vld [vmem:[#allocation31_spill] sm:$0xff]  ;;  %v9244_v25 = vld [vmem:[#allocation30_spill] sm:$0xff] }
 0x99f   :  { %6786 = vrsqrt.f32 %v4625_v27 }
 0x9a0   :  { %v4699_v13 = vadd.f32 %v4698_v44, %v4697_v16 }
 0x9a2   :  { %v8920_v17 = vpop.permute.xlu1 %4722  ;;  %v4701_v63 = vadd.f32 %v4700_v52, %v4699_v13  ;;  %v5021_v52 = vrot.slane %v8849_v7, %v7117_v26 }
 0x9a4   :  { %4702 = vadd.xlane.f32.xlu0 %v4701_v63 }
 0x9a6   :  { %v8922_v60 = vpop.permute.xlu1 %4735 }
 0x9a9   :  { %v6787_v28 = vpop.eup %6786 }
 0x9aa   :  { %v4627_v53 = vmul.f32 %v6787_v28, %v8791_v35  ;;  %v4628_v10 = vmul.f32 %v6787_v28, %v8794_v14  ;;  %v4629_v15 = vmul.f32 %v6787_v28, %v8801_v57  ;;  %v4630_v59 = vmul.f32 %v6787_v28, %v8820_v43  ;;  %v4810_v55 = vpop.permute.xlu1 %4809 }
 0x9ab   :  { %v4825_v45 = vmul.f32 %v8604_v56, %v4810_v55  ;;  %v8930_v54 = vsel %vm190_vm1, %v4810_v55, %v4812_v47  ;;  %v5126_v28 = vrot.slane %v8858_v22, %v7117_v26 }
 0x9ac   :  { %v4636_v12 = vmul.f32 %v4634_v37, %v4627_v53  ;;  %v4637_v50 = vmul.f32 %v4634_v37, %v4628_v10  ;;  %v4638_v18 = vmul.f32 %v4634_v37, %v4629_v15  ;;  %v4639_v0 = vmul.f32 %v4634_v37, %v4630_v59  ;;  %v8984_v59 = vld [vmem:[#allocation2] sm:$0xff] }
 0x9ad   :  { %4835 = vrot.lane.b32.xlu1 %v4825_v45, %s6884_s28  ;;  %v5013_v37 = vrot.slane %v8849_v7, %v7074_v6  ;;  %v5189_v7 = vrot.slane %v8867_v42, %v7074_v6  ;;  %v5260_v53 = vrot.slane %v8876_v49, %v7074_v6  ;;  %v5331_v10 = vrot.slane %v8885_v39, %v7074_v6 }
 0x9ae   :  { %v4645_v23 = vadd.f32 %v4643_v31, %v4636_v12  ;;  %v4646_v35 = vadd.f32 %v4643_v31, %v4637_v50  ;;  %v4647_v36 = vadd.f32 %v4643_v31, %v4638_v18  ;;  %v4648_v14 = vadd.f32 %v4643_v31, %v4639_v0  ;;  %v8933_v61 = vpop.permute.xlu1 %4813  ;;  %v8994_v12 = vpop.permute.xlu0 %4815 }
 0x9af   :  { %v8937_v57 = vsel %vm190_vm1, %v4812_v47, %v8933_v61  ;;  %v5118_v47 = vrot.slane %v8858_v22, %v7074_v6  ;;  %v5268_v22 = vrot.slane %v8876_v49, %v7117_v26 }
 0x9b0   :  { %vm4649_vm8 = vcmp.ge.f32.partialorder %v4645_v23, 0.0  ;;  %vm4650_vm11 = vcmp.ge.f32.partialorder %v4646_v35, 0.0  ;;  %vm4651_vm10 = vcmp.ge.f32.partialorder %v4647_v36, 0.0  ;;  %vm4652_vm15 = vcmp.ge.f32.partialorder %v4648_v14, 0.0 }
 0x9b1   :  { %v4658_v43 = vmul.f32 %v4656_v9, %v4645_v23  ;;  %v4659_v46 = vmul.f32 %v4656_v9, %v4646_v35  ;;  %v4660_v41 = vmul.f32 %v4656_v9, %v4647_v36  ;;  %v4661_v11 = vmul.f32 %v4656_v9, %v4648_v14 }
 0x9b2   :  { %v8939_v2 = vpop.permute.xlu1 %4880 }
 0x9b3   :  { %v4662_v32 = vsel %vm4649_vm8, %v4645_v23, %v4658_v43  ;;  %v4663_v20 = vsel %vm4650_vm11, %v4646_v35, %v4659_v46  ;;  %v4664_v21 = vsel %vm4651_vm10, %v4647_v36, %v4660_v41  ;;  %v4665_v38 = vsel %vm4652_vm15, %v4648_v14, %v4661_v11 }
 0x9b4   :  { %v4666_v3 = vadd.f32 %v4662_v32, %v9241_v8  ;;  %v4667_v27 = vadd.f32 %v4663_v20, %v9242_v62  ;;  %v4668_v30 = vadd.f32 %v4664_v21, %v9243_v34  ;;  %v4669_v31 = vadd.f32 %v4665_v38, %v9244_v25 }
 0x9b5   :  { %v4896_v55 = vmul.f32 %v8984_v59, %v8939_v2 }
 0x9b6   :  { %4770 = vst [vmem:[#allocation2 + $0x8] sm:$0xf] %v4666_v3  ;;  %4771 = vst [vmem:[#allocation2 + $0x10] sm:$0xf] %v4667_v27  ;;  %v8947_v16 = vpop.permute.xlu1 %4884  ;;  %v4754_v44 = vcombine.low %v4666_v3, %v4667_v27  ;;  %v4755_v13 = vcombine.low %v4668_v30, %v4669_v31 }
 0x9b7   :  { %4772 = vst [vmem:[#allocation2 + $0x18] sm:$0xf] %v4668_v30  ;;  %4773 = vst [vmem:[#allocation2 + $0x20] sm:$0xf] %v4669_v31 }
 0x9b8   :  { %4758 = vst [vmem:[#allocation5] sm:$0xff] %v4754_v44  ;;  %4759 = vst [vmem:[#allocation5 + $0x8] sm:$0xff] %v4755_v13 }
 0x9ba   :  { %5024 = vrot.lane.b32.xlu0 %v5013_v37, %s6878_s15  ;;  %v8952_v63 = vpop.permute.xlu1 %4951 }
 0x9bb   :  { %v4967_v9 = vmul.f32 %v8604_v56, %v8952_v63  ;;  %v5197_v56 = vrot.slane %v8867_v42, %v7117_v26  ;;  %v5339_v42 = vrot.slane %v8885_v39, %v7117_v26  ;;  %v8996_v39 = vpop.permute.xlu0 %4882 }
 0x9bd   :  { %4977 = vrot.lane.b32.xlu1 %v4967_v9, %s6883_s26 }
 0x9be   :  { %5028 = vrot.lane.b32.xlu0 %v5021_v52, %s6878_s15  ;;  %v8981_v15 = vpop.permute.xlu1 %4955 }
 0x9bf   :  { %v8998_v50 = vpop.permute.xlu0 %4886 }
 0x9c2   :  { %5129 = vrot.lane.b32.xlu0 %v5118_v47, %s6881_s22  ;;  %v8988_v49 = vpop.permute.xlu1 %5022 }
 0x9c3   :  { %v5038_v45 = vmul.f32 %v8984_v59, %v8988_v49  ;;  %v9000_v18 = vpop.permute.xlu0 %4953 }
 0x9c6   :  { %5133 = vrot.lane.b32.xlu0 %v5126_v28, %s6881_s22  ;;  %v5027_v52 = vpop.permute.xlu1 %5026 }
 0x9c7   :  { %v9002_v0 = vpop.permute.xlu0 %4957 }
 0x9ca   :  { %5200 = vrot.lane.b32.xlu0 %v5189_v7, %s6883_s26 }
 0x9ce   :  { %5204 = vrot.lane.b32.xlu0 %v5197_v56, %s6883_s26 }
 0x9d2   :  { %5271 = vrot.lane.b32.xlu0 %v5260_v53, %s6882_s23 }
 0x9d6   :  { %5275 = vrot.lane.b32.xlu0 %v5268_v22, %s6882_s23 }
 0x9da   :  { %5342 = vrot.lane.b32.xlu0 %v5331_v10, %s6884_s28 }
 0x9de   :  { %5346 = vrot.lane.b32.xlu0 %v5339_v42, %s6884_s28 }
 0x9e2   :  { %4906 = vrot.lane.b32.xlu0 %v4896_v55, %s6882_s23 }
 0x9e6   :  { %5048 = vrot.lane.b32.xlu0 %v5038_v45, %s6881_s22  ;;  %v4819_v45 = vsel %vm190_vm1, %v8933_v61, %v8994_v12 }
 0xa31   :  { %v4703_v23 = vpop.xlane.xlu0 %4702 }
 0xa32   :  { %v4704_v35 = vmul.f32 0.001953125, %v4703_v23  ;;  %v4888_v23 = vsel %vm264_vm0, %v8939_v2, %v8996_v39 }
 0xa34   :  { %v4705_v36 = vadd.f32 1e-05, %v4704_v35  ;;  %v4889_v35 = vsel %vm264_vm0, %v8996_v39, %v8947_v16  ;;  %v4959_v39 = vsel %vm343_vm3, %v8952_v63, %v9000_v18 }
 0xa35   :  { %v9018_v62 = vpop.permute.xlu0 %5024 }
 0xa36   :  { %6788 = vrsqrt.f32 %v4705_v36  ;;  %v4890_v36 = vsel %vm264_vm0, %v8947_v16, %v8998_v50  ;;  %v4960_v16 = vsel %vm343_vm3, %v9000_v18, %v8981_v15  ;;  %v4961_v18 = vsel %vm343_vm3, %v8981_v15, %v9002_v0 }
 0xa40   :  { %v6789_v14 = vpop.eup %6788 }
 0xa41   :  { %v4707_v43 = vmul.f32 %v6789_v14, %v8897_v58  ;;  %v4708_v46 = vmul.f32 %v6789_v14, %v8900_v33  ;;  %v4709_v41 = vmul.f32 %v6789_v14, %v8903_v19  ;;  %v4710_v11 = vmul.f32 %v6789_v14, %v8906_v40 }
 0xa43   :  { %v4716_v32 = vmul.f32 %v8894_v29, %v4707_v43  ;;  %v4717_v20 = vmul.f32 %v8894_v29, %v4708_v46  ;;  %v4718_v21 = vmul.f32 %v8894_v29, %v4709_v41  ;;  %v4719_v38 = vmul.f32 %v8894_v29, %v4710_v11 }
 0xa45   :  { %v4725_v8 = vadd.f32 %v8920_v17, %v4716_v32  ;;  %v4726_v3 = vadd.f32 %v8920_v17, %v4717_v20  ;;  %v4727_v58 = vadd.f32 %v8920_v17, %v4718_v21  ;;  %v4728_v33 = vadd.f32 %v8920_v17, %v4719_v38 }
 0xa47   :  { %vm4729_vm9 = vcmp.ge.f32.partialorder %v4725_v8, 0.0  ;;  %vm4730_vm12 = vcmp.ge.f32.partialorder %v4726_v3, 0.0  ;;  %v4738_v19 = vmul.f32 %v8922_v60, %v4725_v8  ;;  %v4739_v40 = vmul.f32 %v8922_v60, %v4726_v3 }
 0xa48   :  { %vm4731_vm13 = vcmp.ge.f32.partialorder %v4727_v58, 0.0  ;;  %vm4732_vm14 = vcmp.ge.f32.partialorder %v4728_v33, 0.0  ;;  %v4740_v29 = vmul.f32 %v8922_v60, %v4727_v58  ;;  %v4741_v27 = vmul.f32 %v8922_v60, %v4728_v33  ;;  %v5029_v60 = vpop.permute.xlu0 %5028 }
 0xa49   :  { %v4742_v34 = vsel %vm4729_vm9, %v4725_v8, %v4738_v19  ;;  %v4743_v30 = vsel %vm4730_vm12, %v4726_v3, %v4739_v40  ;;  %v5031_v19 = vsel %vm417_vm2, %v9018_v62, %v5027_v52  ;;  %v5032_v40 = vsel %vm417_vm2, %v5027_v52, %v5029_v60 }
 0xa4a   :  { %v4746_v25 = vadd.f32 %v4742_v34, %v7163_v51  ;;  %v4747_v17 = vadd.f32 %v4743_v30, %v7190_v1  ;;  %v4744_v31 = vsel %vm4731_vm13, %v4727_v58, %v4740_v29  ;;  %v4745_v37 = vsel %vm4732_vm14, %v4728_v33, %v4741_v27  ;;  %v9026_v51 = vpop.permute.xlu1 %5127 }
 0xa4b   :  { %v4748_v44 = vadd.f32 %v4744_v31, %v7221_v24  ;;  %v4749_v13 = vadd.f32 %v4745_v37, %v7257_v48  ;;  %v5030_v29 = vsel %vm417_vm2, %v8988_v49, %v9018_v62 }
 0xa4c   :  { %v4774_v9 = vrot.slane %v4746_v25, 4  ;;  %v4775_v47 = vrot.slane %v4747_v17, 4  ;;  %v4764_v28 = vcombine.low %v4746_v25, %v4747_v17  ;;  %v5130_v1 = vpop.permute.xlu0 %5129 }
 0xa4d   :  { %v4776_v7 = vrot.slane %v4748_v44, 4  ;;  %v4777_v56 = vrot.slane %v4749_v13, 4  ;;  %v4765_v53 = vcombine.low %v4748_v44, %v4749_v13  ;;  %v5135_v34 = vsel %vm451_vm4, %v9026_v51, %v5130_v1 }
 0xa4e   :  { %4782 = vst [vmem:[#allocation2 + $0x8] sm:$0xf0] %v4774_v9  ;;  %4783 = vst [vmem:[#allocation2 + $0x10] sm:$0xf0] %v4775_v47  ;;  %v5132_v24 = vpop.permute.xlu1 %5131 }
 0xa4f   :  { %4768 = vst [vmem:[#allocation7] sm:$0xff] %v4764_v28  ;;  %4784 = vst [vmem:[#allocation2 + $0x18] sm:$0xf0] %v4776_v7  ;;  %v5136_v31 = vsel %vm451_vm4, %v5130_v1, %v5132_v24 }
 0xa50   :  { %4785 = vst [vmem:[#allocation2 + $0x20] sm:$0xf0] %v4777_v56  ;;  %4769 = vst [vmem:[#allocation7 + $0x8] sm:$0xff] %v4765_v53  ;;  %v5134_v48 = vpop.permute.xlu0 %5133 }
 0xa51   :  { %v5137_v49 = vsel %vm451_vm4, %v5132_v24, %v5134_v48  ;;  %v5147_v44 = vmul.f32 %v8984_v59, %v5134_v48 }
 0xa52   :  { %v9048_v14 = vpop.permute.xlu1 %5198 }
 0xa54   :  { %v5201_v32 = vpop.permute.xlu0 %5200 }
 0xa55   :  { %v9028_v22 = vld [vmem:[#allocation2 + $0x8] sm:$0xff]  ;;  %v9030_v10 = vld [vmem:[#allocation2 + $0x10] sm:$0xff]  ;;  %v5206_v7 = vsel %vm372_vm6, %v9048_v14, %v5201_v32 }
 0xa56   :  { %v9032_v42 = vld [vmem:[#allocation2 + $0x18] sm:$0xff]  ;;  %v4826_v61 = vmul.f32 %v9028_v22, %v8930_v54  ;;  %v4827_v2 = vmul.f32 %v9030_v10, %v8937_v57  ;;  %v4897_v41 = vmul.f32 %v9028_v22, %v4888_v23  ;;  %v4898_v11 = vmul.f32 %v9030_v10, %v4889_v35  ;;  %v5203_v3 = vpop.permute.xlu1 %5202 }
 0xa57   :  { %v9034_v55 = vld [vmem:[#allocation2 + $0x20] sm:$0xff]  ;;  %v4828_v43 = vmul.f32 %v9032_v42, %v4819_v45  ;;  %v4899_v54 = vmul.f32 %v9032_v42, %v4890_v36  ;;  %v4968_v38 = vmul.f32 %v9028_v22, %v4959_v39  ;;  %v4969_v63 = vmul.f32 %v9030_v10, %v4960_v16 }
 0xa58   :  { %v4829_v46 = vmul.f32 %v9034_v55, %v8994_v12  ;;  %v6712_v20 = vpack.i.bf16 %v4827_v2, %v4826_v61  ;;  %v4900_v57 = vmul.f32 %v9034_v55, %v8998_v50  ;;  %v6722_v21 = vpack.i.bf16 %v4898_v11, %v4897_v41  ;;  %v5205_v27 = vpop.permute.xlu0 %5204 }
 0xa59   :  { %v6732_v8 = vpack.i.bf16 %v4969_v63, %v4968_v38  ;;  %v4970_v33 = vmul.f32 %v9032_v42, %v4961_v18  ;;  %v4971_v50 = vmul.f32 %v9034_v55, %v9002_v0  ;;  %v5039_v15 = vmul.f32 %v5030_v29, %v9028_v22  ;;  %v5425_v29 = vld [vmem:[%s9245_s2] sm:$0xff] }
 0xa5a   :  { %v6717_v12 = vpack.i.bf16 %v4829_v46, %v4828_v43  ;;  %6713 = vrot.lane.b32.xlu1 %v6712_v20, %s6884_s28  ;;  %v6727_v58 = vpack.i.bf16 %v4900_v57, %v4899_v54  ;;  %v5040_v0 = vmul.f32 %v5031_v19, %v9030_v10  ;;  %v5041_v30 = vmul.f32 %v5032_v40, %v9032_v42  ;;  %v5270_v62 = vpop.permute.xlu1 %5269 }
 0xa5b   :  { %v5042_v25 = vmul.f32 %v5029_v60, %v9034_v55  ;;  %v6737_v17 = vpack.i.bf16 %v4971_v50, %v4970_v33  ;;  %v5144_v37 = vmul.f32 %v5135_v34, %v9030_v10  ;;  %v5145_v9 = vmul.f32 %v5136_v31, %v9032_v42 }
 0xa5c   :  { %6718 = vrot.lane.b32.xlu0 %v6717_v12, %s6884_s28  ;;  %v6742_v13 = vpack.i.bf16 %v5040_v0, %v5039_v15  ;;  %v5146_v47 = vmul.f32 %v5137_v49, %v9034_v55  ;;  %v5272_v28 = vpop.permute.xlu0 %5271  ;;  %v5207_v56 = vsel %vm372_vm6, %v5201_v32, %v5203_v3  ;;  %v5215_v1 = vmul.f32 %v5206_v7, %v9030_v10 }
 0xa5d   :  { %v6747_v52 = vpack.i.bf16 %v5042_v25, %v5041_v30  ;;  %v6752_v53 = vpack.i.bf16 %v5145_v9, %v5144_v37  ;;  %v5216_v24 = vmul.f32 %v5207_v56, %v9032_v42  ;;  %v5208_v45 = vsel %vm372_vm6, %v5203_v3, %v5205_v27 }
 0xa5e   :  { %6723 = vrot.lane.b32.xlu1 %v6722_v21, %s6882_s23  ;;  %v6757_v60 = vpack.i.bf16 %v5147_v44, %v5146_v47  ;;  %v5274_v48 = vpop.permute.xlu1 %5273  ;;  %v5277_v23 = vsel %vm298_vm5, %v5270_v62, %v5272_v28  ;;  %v5143_v43 = vmul.f32 %v9026_v51, %v9028_v22  ;;  %v5218_v46 = vmul.f32 %v8984_v59, %v5205_v27 }
 0xa5f   :  { %v5278_v35 = vsel %vm298_vm5, %v5272_v28, %v5274_v48  ;;  %v6762_v61 = vpack.i.bf16 %v5216_v24, %v5215_v1  ;;  %v5217_v2 = vmul.f32 %v5208_v45, %v9034_v55  ;;  %v5286_v39 = vmul.f32 %v5277_v23, %v9030_v10 }
 0xa60   :  { %6728 = vrot.lane.b32.xlu0 %v6727_v58, %s6882_s23  ;;  %v5276_v36 = vpop.permute.xlu0 %5275  ;;  %v5287_v16 = vmul.f32 %v5278_v35, %v9032_v42  ;;  %v5214_v57 = vmul.f32 %v9048_v14, %v9028_v22 }
 0xa61   :  { %v5279_v41 = vsel %vm298_vm5, %v5274_v48, %v5276_v36  ;;  %v6767_v11 = vpack.i.bf16 %v5218_v46, %v5217_v2  ;;  %v5289_v20 = vmul.f32 %v8984_v59, %v5276_v36  ;;  %v5710_v46 = vld [vmem:[%s7052_s4 + $0x4] ss:$8 sm:$0xf]  ;;  %s9246_s4 = sld [smem:[#allocation14_spill]] }
 0xa62   :  { %6733 = vrot.lane.b32.xlu1 %v6732_v8, %s6883_s26  ;;  %v6772_v32 = vpack.i.bf16 %v5287_v16, %v5286_v39  ;;  %v5341_v12 = vpop.permute.xlu1 %5340  ;;  %v5288_v51 = vmul.f32 %v5279_v41, %v9034_v55  ;;  %v5285_v8 = vmul.f32 %v5270_v62, %v9028_v22 }
 0xa63   :  { %v5356_v19 = vmul.f32 %v5341_v12, %v9028_v22 }
 0xa64   :  { %6738 = vrot.lane.b32.xlu0 %v6737_v17, %s6883_s26  ;;  %v5343_v54 = vpop.permute.xlu0 %5342  ;;  %v6777_v21 = vpack.i.bf16 %v5289_v20, %v5288_v51  ;;  %v5083_v51 = vrot.slane %v5710_v46, %v7074_v6  ;;  %v5091_v20 = vrot.slane %v5710_v46, %v7117_v26 }
 0xa65   :  { %v5348_v38 = vsel %vm219_vm7, %v5341_v12, %v5343_v54  ;;  %v5079_v12 = vrot.slane %v5710_v46, %v7072_v5 }
 0xa66   :  { %6743 = vrot.lane.b32.xlu1 %v6742_v13, %s6881_s22  ;;  %v5345_v63 = vpop.permute.xlu1 %5344  ;;  %v5357_v3 = vmul.f32 %v5348_v38, %v9030_v10 }
 0xa67   :  { %v5349_v58 = vsel %vm219_vm7, %v5343_v54, %v5345_v63 }
 0xa68   :  { %6748 = vrot.lane.b32.xlu0 %v6747_v52, %s6881_s22  ;;  %v5347_v18 = vpop.permute.xlu0 %5346  ;;  %v5358_v14 = vmul.f32 %v5349_v58, %v9032_v42 }
 0xa69   :  { %v5350_v33 = vsel %vm219_vm7, %v5345_v63, %v5347_v18  ;;  %v5360_v40 = vmul.f32 %v8984_v59, %v5347_v18 }
 0xa6a   :  { %6753 = vrot.lane.b32.xlu1 %v6752_v53, %s6878_s15  ;;  %v5359_v50 = vmul.f32 %v5350_v33, %v9034_v55  ;;  %v4836_v27 = vpop.permute.xlu1 %4835 }
 0xa6c   :  { %6758 = vrot.lane.b32.xlu0 %v6757_v60, %s6878_s15  ;;  %v4907_v15 = vpop.permute.xlu0 %4906 }
 0xa6e   :  { %5153 = vrot.lane.b32.xlu1 %v5143_v43, %s6878_s15  ;;  %v4978_v34 = vpop.permute.xlu1 %4977  ;;  %s6794_s15 = scalar_lea.vmem %s5590_s10, 256 }
 0xa6f   :  { %p6795_p0 = scmp.ne.s32.totalorder %s5590_s10, %s6794_s15  ;;  %p6800_p2 = scmp.lt.s32.totalorder %s6794_s15, %s6794_s15 }
 0xa70   :  { %6763 = vrot.lane.b32.xlu0 %v6762_v61, %s6880_s18  ;;  %v5049_v0 = vpop.permute.xlu0 %5048 }
 0xa71   :  { %p6801_p3 = por %p6800_p2, %p6799_p1 }
 0xa72   :  { %6768 = vrot.lane.b32.xlu1 %v6767_v11, %s6880_s18 }
 0xa73   :  { %p6802_p4 = pnand %p6801_p3, %p6795_p0 }
 0xa74   :  { %6773 = vrot.lane.b32.xlu0 %v6772_v32, %s6877_s0  ;;  %v5087_v32 = vrot.slane %v5710_v46, %v7070_v4 }
 0xa76   :  { %6778 = vrot.lane.b32.xlu1 %v6777_v21, %s6877_s0 }
 0xa78   :  { %5224 = vrot.lane.b32.xlu0 %v5214_v57, %s6880_s18 }
 0xa7a   :  { %5295 = vrot.lane.b32.xlu1 %v5285_v8, %s6877_s0  ;;  %s5599_s0 = sshll.u32 %s6888_s11, 4  ;;  %s5600_s0 = int_to_ptr.vmem [resolvable:$true] %s5599_s0 }
 0xa7c   :  { %5368 = vrot.lane.b32.xlu0 %v5357_v3, %s6879_s16 }
 0xa7e   :  { %5370 = vrot.lane.b32.xlu1 %v5358_v14, %s6879_s16 }
 0xa80   :  { %5372 = vrot.lane.b32.xlu0 %v5359_v50, %s6879_s16 }
 0xa82   :  { %5374 = vrot.lane.b32.xlu1 %v5360_v40, %s6879_s16 }
 0xa84   :  { %5366 = vrot.lane.b32.xlu0 %v5356_v19, %s6879_s16 }
 0xa86   :  { %5428 = vperm.xlu1 %6711, %v5425_v29  }
 0xacc   :  { %v6714_v30 = vpop.permute.xlu1 %6713 }
 0xacd   :  { %v6716_v17 = vunpack.i.h.bf16 %v6714_v30  ;;  %v6715_v31 = vunpack.i.l.bf16 %v6714_v30  ;;  %v5098_v30 = vmul.f32 %v5087_v32, %v9032_v42 }
 0xace   :  { %v6719_v25 = vpop.permute.xlu0 %6718 }
 0xacf   :  { %v6721_v49 = vunpack.i.h.bf16 %v6719_v25  ;;  %v6720_v62 = vunpack.i.l.bf16 %v6719_v25  ;;  %v4845_v47 = vsel %vm219_vm7, %v4836_v27, %v6715_v31  ;;  %v4846_v7 = vsel %vm219_vm7, %v6715_v31, %v6716_v17 }
 0xad0   :  { %v6724_v37 = vpop.permute.xlu1 %6723  ;;  %v5099_v25 = vmul.f32 %v5091_v20, %v9034_v55 }
 0xad1   :  { %v6726_v13 = vunpack.i.h.bf16 %v6724_v37  ;;  %v6725_v59 = vunpack.i.l.bf16 %v6724_v37  ;;  %v4847_v28 = vsel %vm219_vm7, %v6716_v17, %v6720_v62  ;;  %v4848_v56 = vsel %vm219_vm7, %v6720_v62, %v6721_v49 }
 0xad2   :  { %v6729_v44 = vpop.permute.xlu0 %6728  ;;  %v5096_v37 = vmul.f32 %v5079_v12, %v9028_v22 }
 0xad3   :  { %v6731_v52 = vunpack.i.h.bf16 %v6729_v44  ;;  %v6730_v9 = vunpack.i.l.bf16 %v6729_v44  ;;  %v4916_v53 = vsel %vm298_vm5, %v4907_v15, %v6725_v59  ;;  %v4917_v1 = vsel %vm298_vm5, %v6725_v59, %v6726_v13 }
 0xad4   :  { %v6593_v48 = vpack.c.bf16 %v4916_v53, %v4845_v47  ;;  %v6734_v23 = vpop.permute.xlu1 %6733  ;;  %v6591_v36 = vpack.c.bf16 %v4917_v1, %v4846_v7 }
 0xad5   :  { %v4918_v60 = vsel %vm298_vm5, %v6726_v13, %v6730_v9  ;;  %v4919_v24 = vsel %vm298_vm5, %v6730_v9, %v6731_v52  ;;  %v6736_v61 = vunpack.i.h.bf16 %v6734_v23  ;;  %v6735_v2 = vunpack.i.l.bf16 %v6734_v23 }
 0xad6   :  { %v6609_v45 = vpack.c.bf16 %v4918_v60, %v4847_v28  ;;  %v6739_v35 = vpop.permute.xlu0 %6738  ;;  %v6607_v43 = vpack.c.bf16 %v4919_v24, %v4848_v56  ;;  %6592 = vmatprep.subr.bf16.mxu0 %v6591_v36 }
 0xad7   :  { %v6741_v39 = vunpack.i.h.bf16 %v6739_v35  ;;  %v6740_v16 = vunpack.i.l.bf16 %v6739_v35  ;;  %6594 = vmatpush1.bf16.msra.mxu0 %v6593_v48  ;;  %v4987_v63 = vsel %vm372_vm6, %v4978_v34, %v6735_v2  ;;  %v4988_v8 = vsel %vm372_vm6, %v6735_v2, %v6736_v61 }
 0xad8   :  { %6608 = vmatprep.subr.bf16.mxu1 %v6607_v43  ;;  %v6744_v41 = vpop.permute.xlu1 %6743 }
 0xad9   :  { %6610 = vmatpush1.bf16.msra.mxu1 %v6609_v45  ;;  %v6746_v54 = vunpack.i.h.bf16 %v6744_v41  ;;  %v6745_v57 = vunpack.i.l.bf16 %v6744_v41  ;;  %v4989_v18 = vsel %vm372_vm6, %v6736_v61, %v6740_v16  ;;  %v4990_v3 = vsel %vm372_vm6, %v6740_v16, %v6741_v39 }
 0xada   :  { %v6749_v11 = vpop.permute.xlu0 %6748 }
 0xadb   :  { %v6751_v21 = vunpack.i.h.bf16 %v6749_v11  ;;  %v6750_v38 = vunpack.i.l.bf16 %v6749_v11  ;;  %v5058_v4 = vsel %vm451_vm4, %v5049_v0, %v6745_v57  ;;  %v5059_v6 = vsel %vm451_vm4, %v6745_v57, %v6746_v54 }
 0xadc   :  { %v6597_v58 = vpack.c.bf16 %v5058_v4, %v4987_v63  ;;  %v6754_v14 = vpop.permute.xlu1 %6753  ;;  %v6595_v19 = vpack.c.bf16 %v5059_v6, %v4988_v8  ;;  %v5097_v0 = vmul.f32 %v5083_v51, %v9030_v10 }
 0xadd   :  { %v5060_v5 = vsel %vm451_vm4, %v6746_v54, %v6750_v38  ;;  %v5061_v26 = vsel %vm451_vm4, %v6750_v38, %v6751_v21  ;;  %v6756_v29 = vunpack.i.h.bf16 %v6754_v14  ;;  %v6755_v27 = vunpack.i.l.bf16 %v6754_v14  ;;  %v5388_v38 = vld [vmem:[%s9246_s4] sm:$0xff] }
 0xade   :  { %v6613_v33 = vpack.c.bf16 %v5060_v5, %v4989_v18  ;;  %v6759_v50 = vpop.permute.xlu0 %6758  ;;  %v6611_v40 = vpack.c.bf16 %v5061_v26, %v4990_v3  ;;  %6596 = vmatprep.subr.bf16.mxu0 %v6595_v19 }
 0xadf   :  { %v6761_v15 = vunpack.i.h.bf16 %v6759_v50  ;;  %v6760_v34 = vunpack.i.l.bf16 %v6759_v50  ;;  %6598 = vmatpush1.bf16.msra.mxu0 %v6597_v58  ;;  %v5164_v31 = vsel %vm417_vm2, %v6755_v27, %v6756_v29 }
 0xae0   :  { %6612 = vmatprep.subr.bf16.mxu1 %v6611_v40  ;;  %v5154_v44 = vpop.permute.xlu1 %5153  ;;  %v6599_v42 = vpack.c.bf16 %v5164_v31, %v5097_v0 }
 0xae1   :  { %v5165_v17 = vsel %vm417_vm2, %v6756_v29, %v6760_v34  ;;  %6614 = vmatpush1.bf16.msra.mxu1 %v6613_v33  ;;  %v5166_v49 = vsel %vm417_vm2, %v6760_v34, %v6761_v15  ;;  %v5163_v52 = vsel %vm417_vm2, %v5154_v44, %v6755_v27  ;;  %vm5431_vm2 = vcmask 588800  }
 0xae2   :  { %v6617_v62 = vpack.c.bf16 %v5165_v17, %v5098_v30  ;;  %v6764_v13 = vpop.permute.xlu0 %6763  ;;  %v6615_v59 = vpack.c.bf16 %v5166_v49, %v5099_v25  ;;  %v6601_v10 = vpack.c.bf16 %v5163_v52, %v5096_v37  ;;  %6600 = vmatprep.subr.bf16.mxu0 %v6599_v42 }
 0xae3   :  { %v6766_v55 = vunpack.i.h.bf16 %v6764_v13  ;;  %v6765_v9 = vunpack.i.l.bf16 %v6764_v13 }
 0xae4   :  { %6616 = vmatprep.subr.bf16.mxu1 %v6615_v59  ;;  %v6769_v47 = vpop.permute.xlu1 %6768  ;;  %6602 = vmatpush1.bf16.msra.mxu0 %v6601_v10 }
 0xae5   :  { %6618 = vmatpush1.bf16.msra.mxu1 %v6617_v62  ;;  %v6771_v53 = vunpack.i.h.bf16 %v6769_v47  ;;  %v6770_v60 = vunpack.i.l.bf16 %v6769_v47  ;;  %v5235_v22 = vsel %vm343_vm3, %v6765_v9, %v6766_v55 }
 0xae6   :  { %v6774_v28 = vpop.permute.xlu0 %6773 }
 0xae7   :  { %v6776_v7 = vunpack.i.h.bf16 %v6774_v28  ;;  %v6775_v56 = vunpack.i.l.bf16 %v6774_v28  ;;  %v5236_v36 = vsel %vm343_vm3, %v6766_v55, %v6770_v60  ;;  %v5237_v46 = vsel %vm343_vm3, %v6770_v60, %v6771_v53 }
 0xae8   :  { %v6779_v24 = vpop.permute.xlu1 %6778 }
 0xae9   :  { %v5306_v1 = vsel %vm264_vm0, %v6775_v56, %v6776_v7  ;;  %v6781_v23 = vunpack.i.h.bf16 %v6779_v24  ;;  %v6780_v35 = vunpack.i.l.bf16 %v6779_v24 }
 0xaea   :  { %v5225_v48 = vpop.permute.xlu0 %5224  ;;  %v6603_v45 = vpack.c.bf16 %v5306_v1, %v5235_v22 }
 0xaeb   :  { %v5307_v43 = vsel %vm264_vm0, %v6776_v7, %v6780_v35  ;;  %v5308_v61 = vsel %vm264_vm0, %v6780_v35, %v6781_v23  ;;  %v5234_v11 = vsel %vm343_vm3, %v5225_v48, %v6765_v9 }
 0xaec   :  { %6604 = vmatprep.subr.bf16.mxu0 %v6603_v45  ;;  %v6621_v2 = vpack.c.bf16 %v5307_v43, %v5236_v36  ;;  %v5296_v39 = vpop.permute.xlu1 %5295  ;;  %v6619_v41 = vpack.c.bf16 %v5308_v61, %v5237_v46 }
 0xaed   :  { %v5305_v32 = vsel %vm264_vm0, %v5296_v39, %v6775_v56 }
 0xaee   :  { %v5369_v16 = vpop.permute.xlu0 %5368  ;;  %v6605_v12 = vpack.c.bf16 %v5305_v32, %v5234_v11  ;;  %6620 = vmatprep.subr.bf16.mxu1 %v6619_v41 }
 0xaef   :  { %6622 = vmatpush1.bf16.msra.mxu1 %v6621_v2 }
 0xaf0   :  { %v5371_v51 = vpop.permute.xlu1 %5370  ;;  %6606 = vmatpush1.bf16.msra.mxu0 %v6605_v12 }
 0xaf1   :  { %v5377_v54 = vsel %vm190_vm1, %v5369_v16, %v5371_v51 }
 0xaf2   :  { %v5373_v20 = vpop.permute.xlu0 %5372  ;;  %5451 = vmatprep.subr.mxu0 %v5377_v54 }
 0xaf3   :  { %v5378_v8 = vsel %vm190_vm1, %v5371_v51, %v5373_v20 }
 0xaf4   :  { %v5375_v57 = vpop.permute.xlu1 %5374 }
 0xaf5   :  { %v5379_v18 = vsel %vm190_vm1, %v5373_v20, %v5375_v57 }
 0xaf6   :  { %v5367_v21 = vpop.permute.xlu0 %5366  ;;  %5522 = vmatprep.subr.mxu1 %v5379_v18 }
 0xaf7   :  { %v5376_v63 = vsel %vm190_vm1, %v5367_v21, %v5369_v16  ;;  %5523 = vmatpush1.msra.mxu1 %v5378_v8 }
 0xaf8   :  { %5452 = vmatpush1.msra.mxu0 %v5376_v63  ;;  %5716 = vmatmul.mubr.msk.f32.vlgmr.msra.gmra.mrb[18].mxu1 %vm5431_vm2, %v5388_v38 }
 0xaf9   :  { %5715 = vmatmul.mubr.msk.f32.vlgmr.msra.gmra.mrb[18].mxu0 %vm5431_vm2, %v5388_v38 }
 0xafa   :  { %6805 = shalt.err (!%p6802_p4)
}
 0xafb   :  { %s6806_s16 = scalar_lea.hbm %s7062_s13, 256 }
 0xafc   :  { %p6807_p5 = scmp.ne.s32.totalorder %s7062_s13, %s6806_s16  ;;  %p6810_p6 = scmp.lt.u32.totalorder %s6806_s16, %s7062_s13 }
 0xafe   :  { %p6812_p7 = pnand %p6810_p6, %p6807_p5 }
 0xb00   :  { %6815 = shalt.err (!%p6812_p7)
}
 0xb01   :  { %5592 = dma.vmem_to_hbm [thread:$0]  %s5590_s10, 256, %s7062_s13, [#allocation6]  }
 0xb02   :  { %s6816_s18 = scalar_lea.vmem %s5600_s0, 256  ;;  %p6821_p9 = scmp.lt.s32.totalorder %s5600_s0, %s5600_s0 }
 0xb03   :  { %p6817_p8 = scmp.ne.s32.totalorder %s5600_s0, %s6816_s18  ;;  %p6822_p10 = scmp.lt.s32.totalorder %s6816_s18, %s6816_s18 }
 0xb05   :  { %p6823_p11 = por %p6822_p10, %p6821_p9 }
 0xb07   :  { %p6824_p12 = pnand %p6823_p11, %p6817_p8 }
 0xb09   :  { %6827 = shalt.err (!%p6824_p12)
}
 0xb0a   :  { %s6828_s22 = scalar_lea.hbm %s7067_s27, 256 }
 0xb0b   :  { %p6829_p13 = scmp.ne.s32.totalorder %s7067_s27, %s6828_s22  ;;  %p6832_p0 = scmp.lt.u32.totalorder %s6828_s22, %s7067_s27 }
 0xb0d   :  { %p6834_p1 = pnand %p6832_p0, %p6829_p13 }
 0xb0f   :  { %6837 = shalt.err (!%p6834_p1)
}
 0xb10   :  { %5602 = dma.vmem_to_hbm [thread:$0]  %s5600_s0, 256, %s7067_s27, [#allocation8]   ;;  %v5429_v3 = vpop.permute.xlu1 %5428 }
 0xbcb   :  { %v5572_v26 = vpop.f32.mrb[18].mxu1 }
 0xbcc   :  { %v5501_v4 = vpop.f32.mrb[18].mxu0  ;;  %v5573_v33 = vadd.f32 %v5572_v26, %v5429_v3  ;;  %v5574_v14 = vpop.f32.mrb[19].mxu1 }
 0xbcd   :  { %v5502_v5 = vadd.f32 %v5501_v4, %v5429_v3  ;;  %v5503_v6 = vpop.f32.mrb[19].mxu0  ;;  %v5575_v50 = vadd.f32 %v5574_v14, %v5429_v3 }
 0xbce   :  { %v5504_v58 = vadd.f32 %v5503_v6, %v5429_v3  ;;  %5579 = vst [vmem:[%s7057_s3 + $0x10] sm:$0xff] %v5573_v33 }
 0xbcf   :  { %5577 = vst [vmem:[%s7057_s3] sm:$0xff] %v5502_v5  ;;  %5580 = vst [vmem:[%s7057_s3 + $0x18] sm:$0xff] %v5575_v50 }
 0xbd0   :  { %5578 = vst [vmem:[%s7057_s3 + $0x8] sm:$0xff] %v5504_v58 }
 0xbd1   :  { %6838 = dma.done.wait [#allocation6], 256  }
 0xbd2   :  { %6839 = vsyncadd [#allocation6], 4294967040 }
 0xbd3   :  { %6840 = dma.done.wait [#allocation8], 256  }
 0xbd4   :  { %6841 = vsyncadd [#allocation8], 4294967040 }
 0xbd5   :  { %5611 = vsyncpa [#allocation6], 1 }
 0xbd6   :  { %5612 = vsyncpa [#allocation8], 1 }

</bundles_post_ra>
